<compile_context>
chip_gen: v7x
topology: tpu7x:2x2x1
jax: 0.10.0
libtpu: 0.0.40
codegen_flags: <defaults>
</compile_context>

<pallas_src>
import functools

import jax
import jax.numpy as jnp
from jax.experimental import pallas as pl
from jax.experimental.pallas import tpu as pltpu


# ----------------------------- in-kernel helpers -----------------------------

def _layernorm(x, gamma, beta, eps=1e-5):
    mu = jnp.mean(x, axis=-1, keepdims=True)
    var = jnp.mean(jnp.square(x - mu), axis=-1, keepdims=True)
    return (x - mu) * jax.lax.rsqrt(var + eps) * gamma + beta


def _gelu_exact(x):
    # matches torch.nn.GELU() (approximate='none', erf-based)
    return 0.5 * x * (1.0 + jax.lax.erf(x * 0.7071067811865476))


def _mha_core(q2, k2, v2, add_mask, w_o, b_o, *, bb, Tq, Sk, H, cdt):
    """Multi-head attention given already-projected fused activations.

    q2       : (bb*Tq, C) f32   (attention scale already folded into q)
    k2, v2   : (bb*Sk, C) f32
    add_mask : (Tq, Sk) additive f32 mask or None
    w_o      : (C, C) bf16, b_o : (1, C) f32
    returns  : (bb*Tq, C) f32
    """
    C = q2.shape[-1]
    hs = C // H
    outs = []
    # bb is a tiny static number (1 or 2 here): static Python loop.  Only the
    # per-(batch,head) score/PV matmuls live here; every projection above is a
    # single fused MXU matmul over the whole (bb*T, C) slab.
    for bi in range(bb):
        qb = q2[bi * Tq:(bi + 1) * Tq, :].reshape(Tq, H, hs).transpose(1, 0, 2)
        kb = k2[bi * Sk:(bi + 1) * Sk, :].reshape(Sk, H, hs).transpose(1, 0, 2)
        vb = v2[bi * Sk:(bi + 1) * Sk, :].reshape(Sk, H, hs).transpose(1, 0, 2)

        s = jnp.einsum('htd,hsd->hts', qb.astype(cdt), kb.astype(cdt),
                       preferred_element_type=jnp.float32)        # (H, Tq, Sk)
        if add_mask is not None:
            s = s + add_mask                                      # broadcast (Tq, Sk)

        m = jnp.max(s, axis=-1, keepdims=True)
        e = jnp.exp(s - m)
        p = e * pl.reciprocal(jnp.sum(e, axis=-1, keepdims=True), approx=True)

        y = jnp.einsum('hts,hsd->htd', p.astype(cdt), vb.astype(cdt),
                       preferred_element_type=jnp.float32)        # (H, Tq, hs)
        outs.append(y.transpose(1, 0, 2).reshape(Tq, C))          # (Tq, C)

    y_all = outs[0] if bb == 1 else jnp.concatenate(outs, axis=0)  # (bb*Tq, C)
    # single output projection (replaces per-head einsum + cross-head sum)
    return jnp.dot(y_all.astype(cdt), w_o,
                   preferred_element_type=jnp.float32) + b_o


# --------------------------------- fused kernel -------------------------------

def block_kernel(x_ref, enc_ref, mask_ref,
                 ln1_g, ln1_b, w_qkv, b_qkv, w_p1, b_p1,
                 ln2_g, ln2_b, w_q, b_q, w_kv, b_kv, w_p2, b_p2,
                 ln3_g, ln3_b, w_fc, b_fc, w_pr, b_pr,
                 out_ref, *, bb, T, S, H, cdt):
    C = x_ref.shape[-1]

    x = x_ref[...]          # (bb*T, C) f32 residual stream (stays in VMEM)
    enc = enc_ref[...]      # (bb*S, C) f32
    mask = mask_ref[...]    # (T, T) additive causal mask (grid-invariant input)

    # --- x = x + attn(ln_1(x))   (causal self-attention, fused QKV) ----------
    h = _layernorm(x, ln1_g[...], ln1_b[...])
    qkv = jnp.dot(h.astype(cdt), w_qkv[...],
                  preferred_element_type=jnp.float32) + b_qkv[...]   # (bb*T, 3C)
    x = x + _mha_core(qkv[:, 0:C], qkv[:, C:2 * C], qkv[:, 2 * C:3 * C], mask,
                      w_p1[...], b_p1[...], bb=bb, Tq=T, Sk=T, H=H, cdt=cdt)

    # --- x = x + cross_attn(ln_2(x), enc, enc)   (fused KV projection) -------
    h = _layernorm(x, ln2_g[...], ln2_b[...])
    q2 = jnp.dot(h.astype(cdt), w_q[...],
                 preferred_element_type=jnp.float32) + b_q[...]      # (bb*T, C)
    kv = jnp.dot(enc.astype(cdt), w_kv[...],
                 preferred_element_type=jnp.float32) + b_kv[...]     # (bb*S, 2C)
    x = x + _mha_core(q2, kv[:, 0:C], kv[:, C:2 * C], None,
                      w_p2[...], b_p2[...], bb=bb, Tq=T, Sk=S, H=H, cdt=cdt)

    # --- x = x + mlp(ln_3(x)) -------------------------------------------------
    h = _layernorm(x, ln3_g[...], ln3_b[...])
    hh = jnp.dot(h.astype(cdt), w_fc[...],
                 preferred_element_type=jnp.float32) + b_fc[...]
    hh = _gelu_exact(hh)
    hh = jnp.dot(hh.astype(cdt), w_pr[...],
                 preferred_element_type=jnp.float32) + b_pr[...]

    # TODO(synk): C=32 store is a masked (25% lane) vst; at real sizes pad C to
    # a multiple of 128 or present a lane-dense (bb, T*C) slab.
    out_ref[...] = (x + hh).astype(out_ref.dtype)


# ----------------------------------- wrapper -----------------------------------

def block_forward(x, enc_out, p, *, n_heads, batch_block=None):
    B, T, C = x.shape
    S = enc_out.shape[1]
    H = n_heads
    hs = C // H
    scale = hs ** (-0.5)
    cdt = jnp.bfloat16

    # Default: fold the whole batch into one grid step (best on 1-TC v5e/v6e).
    # On v7x (2 TensorCores) pass batch_block=B//2 for a 2-way parallel grid.
    if batch_block is None:
        batch_block = B
    assert B % batch_block == 0
    bb = batch_block
    steps = B // bb

    # ---- wrapper-side weight prep (pure JAX, outside the kernel) ------------
    # Fold the attention scale into the Q third of the fused QKV projection and
    # into the cross-attention Q projection; fuse K/V for cross-attention.
    scale_row = jnp.concatenate(
        [jnp.full((1, C), scale, jnp.float32), jnp.ones((1, 2 * C), jnp.float32)],
        axis=1)                                                   # (1, 3C)
    w_qkv = (p['w_qkv'] * scale_row).astype(cdt)                  # (C, 3C)
    b_qkv = p['b_qkv'] * scale_row                                # (1, 3C)
    w_q = (p['w_q'] * scale).astype(cdt)                          # (C, C)
    b_q = p['b_q'] * scale                                        # (1, C)
    w_kv = jnp.concatenate([p['w_k'], p['w_v']], axis=1).astype(cdt)   # (C, 2C)
    b_kv = jnp.concatenate([p['b_k'], p['b_v']], axis=1)               # (1, 2C)

    # Precomputed additive causal mask (grid-invariant input).
    row = jax.lax.broadcasted_iota(jnp.int32, (T, T), 0)
    col = jax.lax.broadcasted_iota(jnp.int32, (T, T), 1)
    attn_mask = jnp.where(col <= row, 0.0, -1e30).astype(jnp.float32)

    params = (
        # self-attention
        p['ln1_g'], p['ln1_b'], w_qkv, b_qkv,
        p['w_attn_proj'].astype(cdt), p['b_attn_proj'],
        # cross-attention
        p['ln2_g'], p['ln2_b'], w_q, b_q, w_kv, b_kv,
        p['w_ca_proj'].astype(cdt), p['b_ca_proj'],
        # MLP
        p['ln3_g'], p['ln3_b'],
        p['w_fc'].astype(cdt), p['b_fc'],
        p['w_mlp_proj'].astype(cdt), p['b_mlp_proj'],
    )

    def full_spec(a):
        zeros = (0,) * a.ndim
        return pl.BlockSpec(a.shape, lambda i: zeros)

    # Flatten (B, T, C) -> (B*T, C) so the residual slab fills sublanes and the
    # batch fold is a plain 2-D block.
    x2 = x.reshape(B * T, C)
    enc2 = enc_out.reshape(B * S, C)

    in_specs = ([pl.BlockSpec((bb * T, C), lambda i: (i, 0)),
                 pl.BlockSpec((bb * S, C), lambda i: (i, 0)),
                 pl.BlockSpec((T, T), lambda i: (0, 0))]
                + [full_spec(a) for a in params])

    kernel = functools.partial(block_kernel, bb=bb, T=T, S=S, H=H, cdt=cdt)

    out2 = pl.pallas_call(
        kernel,
        out_shape=jax.ShapeDtypeStruct((B * T, C), x.dtype),
        grid=(steps,),
        in_specs=in_specs,
        out_specs=pl.BlockSpec((bb * T, C), lambda i: (i, 0)),
        compiler_params=pltpu.CompilerParams(
            dimension_semantics=("parallel",)),
    )(x2, enc2, attn_mask, *params)

    return out2.reshape(B, T, C)


# ------------------------- pure-JAX reference (for check) ---------------------

def block_forward_ref(x, enc_out, p, *, n_heads):
    B, T, C = x.shape
    hs = C // n_heads
    scale = hs ** (-0.5)

    def ln(z, g, b):
        mu = jnp.mean(z, -1, keepdims=True)
        var = jnp.mean(jnp.square(z - mu), -1, keepdims=True)
        return (z - mu) * jax.lax.rsqrt(var + 1e-5) * g[0] + b[0]

    def heads(z):
        return jnp.transpose(z.reshape(z.shape[0], z.shape[1], n_heads, hs),
                             (0, 2, 1, 3))

    # self-attention
    h = ln(x, p['ln1_g'], p['ln1_b'])
    qkv = h @ p['w_qkv'] + p['b_qkv'][0]
    q, k, v = jnp.split(qkv, 3, axis=-1)
    q, k, v = heads(q), heads(k), heads(v)
    att = jnp.einsum('bhtd,bhsd->bhts', q, k) * scale
    causal = jnp.tril(jnp.ones((T, T), bool))
    att = jnp.where(causal[None, None], att, -jnp.inf)
    att = jax.nn.softmax(att, axis=-1)
    y = jnp.einsum('bhts,bhsd->bhtd', att, v)
    y = jnp.transpose(y, (0, 2, 1, 3)).reshape(B, T, C)
    x = x + (y @ p['w_attn_proj'] + p['b_attn_proj'][0])

    # cross-attention
    h = ln(x, p['ln2_g'], p['ln2_b'])
    q = heads(h @ p['w_q'] + p['b_q'][0])
    k = heads(enc_out @ p['w_k'] + p['b_k'][0])
    v = heads(enc_out @ p['w_v'] + p['b_v'][0])
    att = jnp.einsum('bhtd,bhsd->bhts', q, k) * scale
    att = jax.nn.softmax(att, axis=-1)
    y = jnp.einsum('bhts,bhsd->bhtd', att, v)
    y = jnp.transpose(y, (0, 2, 1, 3)).reshape(B, T, C)
    x = x + (y @ p['w_ca_proj'] + p['b_ca_proj'][0])

    # MLP
    h = ln(x, p['ln3_g'], p['ln3_b'])
    h = h @ p['w_fc'] + p['b_fc'][0]
    h = 0.5 * h * (1.0 + jax.lax.erf(h / jnp.sqrt(2.0)))
    h = h @ p['w_mlp_proj'] + p['b_mlp_proj'][0]
    return x + h


# ----------------------------------- main --------------------------------------

def init_params(key, C, mlp_ratio):
    keys = iter(jax.random.split(key, 64))

    def lin(fin, fout):
        w = 0.02 * jax.random.normal(next(keys), (fin, fout), jnp.float32)
        b = 0.02 * jax.random.normal(next(keys), (1, fout), jnp.float32)
        return w, b

    def ln():
        g = 1.0 + 0.02 * jax.random.normal(next(keys), (1, C), jnp.float32)
        b = 0.02 * jax.random.normal(next(keys), (1, C), jnp.float32)
        return g, b

    p = {}
    p['ln1_g'], p['ln1_b'] = ln()
    p['w_qkv'], p['b_qkv'] = lin(C, 3 * C)
    p['w_attn_proj'], p['b_attn_proj'] = lin(C, C)
    p['ln2_g'], p['ln2_b'] = ln()
    p['w_q'], p['b_q'] = lin(C, C)
    p['w_k'], p['b_k'] = lin(C, C)
    p['w_v'], p['b_v'] = lin(C, C)
    p['w_ca_proj'], p['b_ca_proj'] = lin(C, C)
    p['ln3_g'], p['ln3_b'] = ln()
    p['w_fc'], p['b_fc'] = lin(C, mlp_ratio * C)
    p['w_mlp_proj'], p['b_mlp_proj'] = lin(mlp_ratio * C, C)
    return p


if __name__ == "__main__":
    # small config consistent with the module: embed_dim=32, num_heads=4,
    # seq_len=8, mlp_ratio=4, batch=2, encoder seq len=8
    B, T, S, C, H, MLP_RATIO = 2, 8, 8, 32, 4, 4

    key = jax.random.PRNGKey(0)
    kx, kenc, kp = jax.random.split(key, 3)
    x = jax.random.normal(kx, (B, T, C), jnp.float32)
    enc_out = jax.random.normal(kenc, (B, S, C), jnp.float32)
    params = init_params(kp, C, MLP_RATIO)

    out = block_forward(x, enc_out, params, n_heads=H)
    out = jax.block_until_ready(out)

    ref = block_forward_ref(x, enc_out, params, n_heads=H)
    assert out.shape == (B, T, C)
    # bf16 MXU operands + approx reciprocal -> loosened tolerance vs f32 ref
    assert jnp.allclose(out, ref, atol=2e-2, rtol=2e-2), "mismatch vs reference"

    print("KERNEL_OK")
</pallas_src>

<mosaic_0001>
module attributes {stable_mosaic.version = 11 : i64} {
  func.func @block_kernel(%arg0: i32, %arg1: memref<16x32xf32, #tpu.memory_space<vmem>>, %arg2: memref<16x32xf32, #tpu.memory_space<vmem>>, %arg3: memref<8x8xf32, #tpu.memory_space<vmem>>, %arg4: memref<1x32xf32, #tpu.memory_space<vmem>>, %arg5: memref<1x32xf32, #tpu.memory_space<vmem>>, %arg6: memref<32x96xbf16, #tpu.memory_space<vmem>>, %arg7: memref<1x96xf32, #tpu.memory_space<vmem>>, %arg8: memref<32x32xbf16, #tpu.memory_space<vmem>>, %arg9: memref<1x32xf32, #tpu.memory_space<vmem>>, %arg10: memref<1x32xf32, #tpu.memory_space<vmem>>, %arg11: memref<1x32xf32, #tpu.memory_space<vmem>>, %arg12: memref<32x32xbf16, #tpu.memory_space<vmem>>, %arg13: memref<1x32xf32, #tpu.memory_space<vmem>>, %arg14: memref<32x64xbf16, #tpu.memory_space<vmem>>, %arg15: memref<1x64xf32, #tpu.memory_space<vmem>>, %arg16: memref<32x32xbf16, #tpu.memory_space<vmem>>, %arg17: memref<1x32xf32, #tpu.memory_space<vmem>>, %arg18: memref<1x32xf32, #tpu.memory_space<vmem>>, %arg19: memref<1x32xf32, #tpu.memory_space<vmem>>, %arg20: memref<32x128xbf16, #tpu.memory_space<vmem>>, %arg21: memref<1x128xf32, #tpu.memory_space<vmem>>, %arg22: memref<128x32xbf16, #tpu.memory_space<vmem>>, %arg23: memref<1x32xf32, #tpu.memory_space<vmem>>, %arg24: memref<16x32xf32, #tpu.memory_space<vmem>>) attributes {dimension_semantics = [#tpu.dimension_semantics<parallel>], iteration_bounds = array<i64: 1>, scalar_prefetch = 0 : i64, scratch_operands = 0 : i64, tpu.core_type = #tpu.core_type<tc>, window_params = [{transform_indices = @transform_0, window_bounds = array<i64: 16, 32>}, {transform_indices = @transform_1, window_bounds = array<i64: 16, 32>}, {pipeline_mode = #tpu.pipeline_mode<synchronous>, transform_indices = @transform_2, window_bounds = array<i64: 8, 8>}, {pipeline_mode = #tpu.pipeline_mode<synchronous>, transform_indices = @transform_3, window_bounds = array<i64: 1, 32>}, {pipeline_mode = #tpu.pipeline_mode<synchronous>, transform_indices = @transform_4, window_bounds = array<i64: 1, 32>}, {pipeline_mode = #tpu.pipeline_mode<synchronous>, transform_indices = @transform_5, window_bounds = array<i64: 32, 96>}, {pipeline_mode = #tpu.pipeline_mode<synchronous>, transform_indices = @transform_6, window_bounds = array<i64: 1, 96>}, {pipeline_mode = #tpu.pipeline_mode<synchronous>, transform_indices = @transform_7, window_bounds = array<i64: 32, 32>}, {pipeline_mode = #tpu.pipeline_mode<synchronous>, transform_indices = @transform_8, window_bounds = array<i64: 1, 32>}, {pipeline_mode = #tpu.pipeline_mode<synchronous>, transform_indices = @transform_9, window_bounds = array<i64: 1, 32>}, {pipeline_mode = #tpu.pipeline_mode<synchronous>, transform_indices = @transform_10, window_bounds = array<i64: 1, 32>}, {pipeline_mode = #tpu.pipeline_mode<synchronous>, transform_indices = @transform_11, window_bounds = array<i64: 32, 32>}, {pipeline_mode = #tpu.pipeline_mode<synchronous>, transform_indices = @transform_12, window_bounds = array<i64: 1, 32>}, {pipeline_mode = #tpu.pipeline_mode<synchronous>, transform_indices = @transform_13, window_bounds = array<i64: 32, 64>}, {pipeline_mode = #tpu.pipeline_mode<synchronous>, transform_indices = @transform_14, window_bounds = array<i64: 1, 64>}, {pipeline_mode = #tpu.pipeline_mode<synchronous>, transform_indices = @transform_15, window_bounds = array<i64: 32, 32>}, {pipeline_mode = #tpu.pipeline_mode<synchronous>, transform_indices = @transform_16, window_bounds = array<i64: 1, 32>}, {pipeline_mode = #tpu.pipeline_mode<synchronous>, transform_indices = @transform_17, window_bounds = array<i64: 1, 32>}, {pipeline_mode = #tpu.pipeline_mode<synchronous>, transform_indices = @transform_18, window_bounds = array<i64: 1, 32>}, {pipeline_mode = #tpu.pipeline_mode<synchronous>, transform_indices = @transform_19, window_bounds = array<i64: 32, 128>}, {pipeline_mode = #tpu.pipeline_mode<synchronous>, transform_indices = @transform_20, window_bounds = array<i64: 1, 128>}, {pipeline_mode = #tpu.pipeline_mode<synchronous>, transform_indices = @transform_21, window_bounds = array<i64: 128, 32>}, {pipeline_mode = #tpu.pipeline_mode<synchronous>, transform_indices = @transform_22, window_bounds = array<i64: 1, 32>}, {transform_indices = @transform_23, window_bounds = array<i64: 16, 32>}]} {
    %c0 = arith.constant 0 : index
    %c0_0 = arith.constant 0 : index
    %0 = vector.load %arg1[%c0, %c0_0] : memref<16x32xf32, #tpu.memory_space<vmem>>, vector<16x32xf32>
    %c0_1 = arith.constant 0 : index
    %c0_2 = arith.constant 0 : index
    %1 = vector.load %arg2[%c0_1, %c0_2] : memref<16x32xf32, #tpu.memory_space<vmem>>, vector<16x32xf32>
    %c0_3 = arith.constant 0 : index
    %c0_4 = arith.constant 0 : index
    %2 = vector.load %arg3[%c0_3, %c0_4] : memref<8x8xf32, #tpu.memory_space<vmem>>, vector<8x8xf32>
    %c0_5 = arith.constant 0 : index
    %c0_6 = arith.constant 0 : index
    %3 = vector.load %arg4[%c0_5, %c0_6] : memref<1x32xf32, #tpu.memory_space<vmem>>, vector<1x32xf32>
    %c0_7 = arith.constant 0 : index
    %c0_8 = arith.constant 0 : index
    %4 = vector.load %arg5[%c0_7, %c0_8] : memref<1x32xf32, #tpu.memory_space<vmem>>, vector<1x32xf32>
    %cst = arith.constant dense<0.000000e+00> : vector<16xf32>
    %5 = vector.multi_reduction <add>, %0, %cst [1] : vector<16x32xf32> to vector<16xf32>
    %6 = vector.shape_cast %5 : vector<16xf32> to vector<16x1xf32>
    %cst_9 = arith.constant 3.200000e+01 : f32
    %7 = vector.broadcast %cst_9 : f32 to vector<16x1xf32>
    %8 = arith.divf %6, %7 : vector<16x1xf32>
    %9 = vector.broadcast %8 : vector<16x1xf32> to vector<16x32xf32>
    %10 = arith.subf %0, %9 : vector<16x32xf32>
    %11 = arith.mulf %10, %10 : vector<16x32xf32>
    %cst_10 = arith.constant dense<0.000000e+00> : vector<16xf32>
    %12 = vector.multi_reduction <add>, %11, %cst_10 [1] : vector<16x32xf32> to vector<16xf32>
    %13 = vector.shape_cast %12 : vector<16xf32> to vector<16x1xf32>
    %cst_11 = arith.constant 3.200000e+01 : f32
    %14 = vector.broadcast %cst_11 : f32 to vector<16x1xf32>
    %15 = arith.divf %13, %14 : vector<16x1xf32>
    %16 = vector.broadcast %8 : vector<16x1xf32> to vector<16x32xf32>
    %17 = arith.subf %0, %16 : vector<16x32xf32>
    %cst_12 = arith.constant 9.99999974E-6 : f32
    %18 = vector.broadcast %cst_12 : f32 to vector<16x1xf32>
    %19 = arith.addf %15, %18 : vector<16x1xf32>
    %20 = math.rsqrt %19 : vector<16x1xf32>
    %21 = vector.broadcast %20 : vector<16x1xf32> to vector<16x32xf32>
    %22 = arith.mulf %17, %21 : vector<16x32xf32>
    %23 = vector.broadcast %3 : vector<1x32xf32> to vector<16x32xf32>
    %24 = arith.mulf %22, %23 : vector<16x32xf32>
    %25 = vector.broadcast %4 : vector<1x32xf32> to vector<16x32xf32>
    %26 = arith.addf %24, %25 : vector<16x32xf32>
    %27 = arith.truncf %26 : vector<16x32xf32> to vector<16x32xbf16>
    %c0_13 = arith.constant 0 : index
    %c0_14 = arith.constant 0 : index
    %28 = vector.load %arg6[%c0_13, %c0_14] : memref<32x96xbf16, #tpu.memory_space<vmem>>, vector<32x96xbf16>
    %cst_15 = arith.constant dense<0.000000e+00> : vector<16x96xf32>
    %29 = tpu.matmul %27, %28, %cst_15 {dimension_numbers = #tpu.dot_dimension_numbers<[1], [0], [0], [1], [0, 0, 1, 1], [], []>} : vector<16x32xbf16>, vector<32x96xbf16>, vector<16x96xf32> -> vector<16x96xf32>
    %c0_16 = arith.constant 0 : index
    %c0_17 = arith.constant 0 : index
    %30 = vector.load %arg7[%c0_16, %c0_17] : memref<1x96xf32, #tpu.memory_space<vmem>>, vector<1x96xf32>
    %31 = vector.broadcast %30 : vector<1x96xf32> to vector<16x96xf32>
    %32 = arith.addf %29, %31 : vector<16x96xf32>
    %33 = vector.extract_strided_slice %32 {offsets = [0, 0], sizes = [16, 32], strides = [1, 1]} : vector<16x96xf32> to vector<16x32xf32>
    %34 = vector.extract_strided_slice %32 {offsets = [0, 32], sizes = [16, 32], strides = [1, 1]} : vector<16x96xf32> to vector<16x32xf32>
    %35 = vector.extract_strided_slice %32 {offsets = [0, 64], sizes = [16, 32], strides = [1, 1]} : vector<16x96xf32> to vector<16x32xf32>
    %c0_18 = arith.constant 0 : index
    %c0_19 = arith.constant 0 : index
    %36 = vector.load %arg8[%c0_18, %c0_19] : memref<32x32xbf16, #tpu.memory_space<vmem>>, vector<32x32xbf16>
    %c0_20 = arith.constant 0 : index
    %c0_21 = arith.constant 0 : index
    %37 = vector.load %arg9[%c0_20, %c0_21] : memref<1x32xf32, #tpu.memory_space<vmem>>, vector<1x32xf32>
    %38 = vector.extract_strided_slice %33 {offsets = [0, 0], sizes = [8, 32], strides = [1, 1]} : vector<16x32xf32> to vector<8x32xf32>
    %39 = vector.shape_cast %38 : vector<8x32xf32> to vector<8x4x8xf32>
    %40 = tpu.transpose %39, [1, 0, 2] : vector<8x4x8xf32> -> vector<4x8x8xf32>
    %41 = vector.extract_strided_slice %34 {offsets = [0, 0], sizes = [8, 32], strides = [1, 1]} : vector<16x32xf32> to vector<8x32xf32>
    %42 = vector.shape_cast %41 : vector<8x32xf32> to vector<8x4x8xf32>
    %43 = tpu.transpose %42, [1, 0, 2] : vector<8x4x8xf32> -> vector<4x8x8xf32>
    %44 = vector.extract_strided_slice %35 {offsets = [0, 0], sizes = [8, 32], strides = [1, 1]} : vector<16x32xf32> to vector<8x32xf32>
    %45 = vector.shape_cast %44 : vector<8x32xf32> to vector<8x4x8xf32>
    %46 = tpu.transpose %45, [1, 0, 2] : vector<8x4x8xf32> -> vector<4x8x8xf32>
    %47 = arith.truncf %40 : vector<4x8x8xf32> to vector<4x8x8xbf16>
    %48 = arith.truncf %43 : vector<4x8x8xf32> to vector<4x8x8xbf16>
    "tpu.trace_start"() <{level = 10 : i32, message = "htd,hsd->hts"}> : () -> ()
    %cst_22 = arith.constant dense<0.000000e+00> : vector<4x8x8xf32>
    %49 = tpu.matmul %47, %48, %cst_22 {dimension_numbers = #tpu.dot_dimension_numbers<[2], [2], [1], [1], [0, 0, 0, 1, 1, 1], [0], [0]>} : vector<4x8x8xbf16>, vector<4x8x8xbf16>, vector<4x8x8xf32> -> vector<4x8x8xf32>
    "tpu.trace_stop"() : () -> ()
    %50 = vector.shape_cast %2 : vector<8x8xf32> to vector<1x8x8xf32>
    %51 = vector.broadcast %50 : vector<1x8x8xf32> to vector<4x8x8xf32>
    %52 = arith.addf %49, %51 : vector<4x8x8xf32>
    %cst_23 = arith.constant dense<0xFF800000> : vector<4x8xf32>
    %53 = vector.multi_reduction <maximumf>, %52, %cst_23 [2] : vector<4x8x8xf32> to vector<4x8xf32>
    %54 = vector.shape_cast %53 : vector<4x8xf32> to vector<4x8x1xf32>
    %55 = vector.broadcast %54 : vector<4x8x1xf32> to vector<4x8x8xf32>
    %56 = arith.subf %52, %55 : vector<4x8x8xf32>
    %57 = math.exp %56 : vector<4x8x8xf32>
    %cst_24 = arith.constant dense<0.000000e+00> : vector<4x8xf32>
    %58 = vector.multi_reduction <add>, %57, %cst_24 [2] : vector<4x8x8xf32> to vector<4x8xf32>
    %59 = vector.shape_cast %58 : vector<4x8xf32> to vector<4x8x1xf32>
    %60 = tpu.reciprocal %59 {approx = true} : vector<4x8x1xf32> -> vector<4x8x1xf32>
    %61 = vector.broadcast %60 : vector<4x8x1xf32> to vector<4x8x8xf32>
    %62 = arith.mulf %57, %61 : vector<4x8x8xf32>
    %63 = arith.truncf %62 : vector<4x8x8xf32> to vector<4x8x8xbf16>
    %64 = arith.truncf %46 : vector<4x8x8xf32> to vector<4x8x8xbf16>
    "tpu.trace_start"() <{level = 10 : i32, message = "hts,hsd->htd"}> : () -> ()
    %cst_25 = arith.constant dense<0.000000e+00> : vector<4x8x8xf32>
    %65 = tpu.matmul %63, %64, %cst_25 {dimension_numbers = #tpu.dot_dimension_numbers<[2], [1], [1], [2], [0, 0, 0, 1, 1, 2], [0], [0]>} : vector<4x8x8xbf16>, vector<4x8x8xbf16>, vector<4x8x8xf32> -> vector<4x8x8xf32>
    "tpu.trace_stop"() : () -> ()
    %66 = tpu.transpose %65, [1, 0, 2] : vector<4x8x8xf32> -> vector<8x4x8xf32>
    %67 = vector.shape_cast %66 : vector<8x4x8xf32> to vector<8x32xf32>
    %68 = vector.extract_strided_slice %33 {offsets = [8, 0], sizes = [8, 32], strides = [1, 1]} : vector<16x32xf32> to vector<8x32xf32>
    %69 = vector.shape_cast %68 : vector<8x32xf32> to vector<8x4x8xf32>
    %70 = tpu.transpose %69, [1, 0, 2] : vector<8x4x8xf32> -> vector<4x8x8xf32>
    %71 = vector.extract_strided_slice %34 {offsets = [8, 0], sizes = [8, 32], strides = [1, 1]} : vector<16x32xf32> to vector<8x32xf32>
    %72 = vector.shape_cast %71 : vector<8x32xf32> to vector<8x4x8xf32>
    %73 = tpu.transpose %72, [1, 0, 2] : vector<8x4x8xf32> -> vector<4x8x8xf32>
    %74 = vector.extract_strided_slice %35 {offsets = [8, 0], sizes = [8, 32], strides = [1, 1]} : vector<16x32xf32> to vector<8x32xf32>
    %75 = vector.shape_cast %74 : vector<8x32xf32> to vector<8x4x8xf32>
    %76 = tpu.transpose %75, [1, 0, 2] : vector<8x4x8xf32> -> vector<4x8x8xf32>
    %77 = arith.truncf %70 : vector<4x8x8xf32> to vector<4x8x8xbf16>
    %78 = arith.truncf %73 : vector<4x8x8xf32> to vector<4x8x8xbf16>
    "tpu.trace_start"() <{level = 10 : i32, message = "htd,hsd->hts"}> : () -> ()
    %cst_26 = arith.constant dense<0.000000e+00> : vector<4x8x8xf32>
    %79 = tpu.matmul %77, %78, %cst_26 {dimension_numbers = #tpu.dot_dimension_numbers<[2], [2], [1], [1], [0, 0, 0, 1, 1, 1], [0], [0]>} : vector<4x8x8xbf16>, vector<4x8x8xbf16>, vector<4x8x8xf32> -> vector<4x8x8xf32>
    "tpu.trace_stop"() : () -> ()
    %80 = vector.shape_cast %2 : vector<8x8xf32> to vector<1x8x8xf32>
    %81 = vector.broadcast %80 : vector<1x8x8xf32> to vector<4x8x8xf32>
    %82 = arith.addf %79, %81 : vector<4x8x8xf32>
    %cst_27 = arith.constant dense<0xFF800000> : vector<4x8xf32>
    %83 = vector.multi_reduction <maximumf>, %82, %cst_27 [2] : vector<4x8x8xf32> to vector<4x8xf32>
    %84 = vector.shape_cast %83 : vector<4x8xf32> to vector<4x8x1xf32>
    %85 = vector.broadcast %84 : vector<4x8x1xf32> to vector<4x8x8xf32>
    %86 = arith.subf %82, %85 : vector<4x8x8xf32>
    %87 = math.exp %86 : vector<4x8x8xf32>
    %cst_28 = arith.constant dense<0.000000e+00> : vector<4x8xf32>
    %88 = vector.multi_reduction <add>, %87, %cst_28 [2] : vector<4x8x8xf32> to vector<4x8xf32>
    %89 = vector.shape_cast %88 : vector<4x8xf32> to vector<4x8x1xf32>
    %90 = tpu.reciprocal %89 {approx = true} : vector<4x8x1xf32> -> vector<4x8x1xf32>
    %91 = vector.broadcast %90 : vector<4x8x1xf32> to vector<4x8x8xf32>
    %92 = arith.mulf %87, %91 : vector<4x8x8xf32>
    %93 = arith.truncf %92 : vector<4x8x8xf32> to vector<4x8x8xbf16>
    %94 = arith.truncf %76 : vector<4x8x8xf32> to vector<4x8x8xbf16>
    "tpu.trace_start"() <{level = 10 : i32, message = "hts,hsd->htd"}> : () -> ()
    %cst_29 = arith.constant dense<0.000000e+00> : vector<4x8x8xf32>
    %95 = tpu.matmul %93, %94, %cst_29 {dimension_numbers = #tpu.dot_dimension_numbers<[2], [1], [1], [2], [0, 0, 0, 1, 1, 2], [0], [0]>} : vector<4x8x8xbf16>, vector<4x8x8xbf16>, vector<4x8x8xf32> -> vector<4x8x8xf32>
    "tpu.trace_stop"() : () -> ()
    %96 = tpu.transpose %95, [1, 0, 2] : vector<4x8x8xf32> -> vector<8x4x8xf32>
    %97 = vector.shape_cast %96 : vector<8x4x8xf32> to vector<8x32xf32>
    %98 = tpu.concatenate %67, %97 in 0 : vector<8x32xf32>, vector<8x32xf32> -> vector<16x32xf32>
    %99 = arith.truncf %98 : vector<16x32xf32> to vector<16x32xbf16>
    %cst_30 = arith.constant dense<0.000000e+00> : vector<16x32xf32>
    %100 = tpu.matmul %99, %36, %cst_30 {dimension_numbers = #tpu.dot_dimension_numbers<[1], [0], [0], [1], [0, 0, 1, 1], [], []>} : vector<16x32xbf16>, vector<32x32xbf16>, vector<16x32xf32> -> vector<16x32xf32>
    %101 = vector.broadcast %37 : vector<1x32xf32> to vector<16x32xf32>
    %102 = arith.addf %100, %101 : vector<16x32xf32>
    %103 = arith.addf %0, %102 : vector<16x32xf32>
    %c0_31 = arith.constant 0 : index
    %c0_32 = arith.constant 0 : index
    %104 = vector.load %arg10[%c0_31, %c0_32] : memref<1x32xf32, #tpu.memory_space<vmem>>, vector<1x32xf32>
    %c0_33 = arith.constant 0 : index
    %c0_34 = arith.constant 0 : index
    %105 = vector.load %arg11[%c0_33, %c0_34] : memref<1x32xf32, #tpu.memory_space<vmem>>, vector<1x32xf32>
    %cst_35 = arith.constant dense<0.000000e+00> : vector<16xf32>
    %106 = vector.multi_reduction <add>, %103, %cst_35 [1] : vector<16x32xf32> to vector<16xf32>
    %107 = vector.shape_cast %106 : vector<16xf32> to vector<16x1xf32>
    %cst_36 = arith.constant 3.200000e+01 : f32
    %108 = vector.broadcast %cst_36 : f32 to vector<16x1xf32>
    %109 = arith.divf %107, %108 : vector<16x1xf32>
    %110 = vector.broadcast %109 : vector<16x1xf32> to vector<16x32xf32>
    %111 = arith.subf %103, %110 : vector<16x32xf32>
    %112 = arith.mulf %111, %111 : vector<16x32xf32>
    %cst_37 = arith.constant dense<0.000000e+00> : vector<16xf32>
    %113 = vector.multi_reduction <add>, %112, %cst_37 [1] : vector<16x32xf32> to vector<16xf32>
    %114 = vector.shape_cast %113 : vector<16xf32> to vector<16x1xf32>
    %cst_38 = arith.constant 3.200000e+01 : f32
    %115 = vector.broadcast %cst_38 : f32 to vector<16x1xf32>
    %116 = arith.divf %114, %115 : vector<16x1xf32>
    %117 = vector.broadcast %109 : vector<16x1xf32> to vector<16x32xf32>
    %118 = arith.subf %103, %117 : vector<16x32xf32>
    %cst_39 = arith.constant 9.99999974E-6 : f32
    %119 = vector.broadcast %cst_39 : f32 to vector<16x1xf32>
    %120 = arith.addf %116, %119 : vector<16x1xf32>
    %121 = math.rsqrt %120 : vector<16x1xf32>
    %122 = vector.broadcast %121 : vector<16x1xf32> to vector<16x32xf32>
    %123 = arith.mulf %118, %122 : vector<16x32xf32>
    %124 = vector.broadcast %104 : vector<1x32xf32> to vector<16x32xf32>
    %125 = arith.mulf %123, %124 : vector<16x32xf32>
    %126 = vector.broadcast %105 : vector<1x32xf32> to vector<16x32xf32>
    %127 = arith.addf %125, %126 : vector<16x32xf32>
    %128 = arith.truncf %127 : vector<16x32xf32> to vector<16x32xbf16>
    %c0_40 = arith.constant 0 : index
    %c0_41 = arith.constant 0 : index
    %129 = vector.load %arg12[%c0_40, %c0_41] : memref<32x32xbf16, #tpu.memory_space<vmem>>, vector<32x32xbf16>
    %cst_42 = arith.constant dense<0.000000e+00> : vector<16x32xf32>
    %130 = tpu.matmul %128, %129, %cst_42 {dimension_numbers = #tpu.dot_dimension_numbers<[1], [0], [0], [1], [0, 0, 1, 1], [], []>} : vector<16x32xbf16>, vector<32x32xbf16>, vector<16x32xf32> -> vector<16x32xf32>
    %c0_43 = arith.constant 0 : index
    %c0_44 = arith.constant 0 : index
    %131 = vector.load %arg13[%c0_43, %c0_44] : memref<1x32xf32, #tpu.memory_space<vmem>>, vector<1x32xf32>
    %132 = vector.broadcast %131 : vector<1x32xf32> to vector<16x32xf32>
    %133 = arith.addf %130, %132 : vector<16x32xf32>
    %134 = arith.truncf %1 : vector<16x32xf32> to vector<16x32xbf16>
    %c0_45 = arith.constant 0 : index
    %c0_46 = arith.constant 0 : index
    %135 = vector.load %arg14[%c0_45, %c0_46] : memref<32x64xbf16, #tpu.memory_space<vmem>>, vector<32x64xbf16>
    %cst_47 = arith.constant dense<0.000000e+00> : vector<16x64xf32>
    %136 = tpu.matmul %134, %135, %cst_47 {dimension_numbers = #tpu.dot_dimension_numbers<[1], [0], [0], [1], [0, 0, 1, 1], [], []>} : vector<16x32xbf16>, vector<32x64xbf16>, vector<16x64xf32> -> vector<16x64xf32>
    %c0_48 = arith.constant 0 : index
    %c0_49 = arith.constant 0 : index
    %137 = vector.load %arg15[%c0_48, %c0_49] : memref<1x64xf32, #tpu.memory_space<vmem>>, vector<1x64xf32>
    %138 = vector.broadcast %137 : vector<1x64xf32> to vector<16x64xf32>
    %139 = arith.addf %136, %138 : vector<16x64xf32>
    %140 = vector.extract_strided_slice %139 {offsets = [0, 0], sizes = [16, 32], strides = [1, 1]} : vector<16x64xf32> to vector<16x32xf32>
    %141 = vector.extract_strided_slice %139 {offsets = [0, 32], sizes = [16, 32], strides = [1, 1]} : vector<16x64xf32> to vector<16x32xf32>
    %c0_50 = arith.constant 0 : index
    %c0_51 = arith.constant 0 : index
    %142 = vector.load %arg16[%c0_50, %c0_51] : memref<32x32xbf16, #tpu.memory_space<vmem>>, vector<32x32xbf16>
    %c0_52 = arith.constant 0 : index
    %c0_53 = arith.constant 0 : index
    %143 = vector.load %arg17[%c0_52, %c0_53] : memref<1x32xf32, #tpu.memory_space<vmem>>, vector<1x32xf32>
    %144 = vector.extract_strided_slice %133 {offsets = [0, 0], sizes = [8, 32], strides = [1, 1]} : vector<16x32xf32> to vector<8x32xf32>
    %145 = vector.shape_cast %144 : vector<8x32xf32> to vector<8x4x8xf32>
    %146 = tpu.transpose %145, [1, 0, 2] : vector<8x4x8xf32> -> vector<4x8x8xf32>
    %147 = vector.extract_strided_slice %140 {offsets = [0, 0], sizes = [8, 32], strides = [1, 1]} : vector<16x32xf32> to vector<8x32xf32>
    %148 = vector.shape_cast %147 : vector<8x32xf32> to vector<8x4x8xf32>
    %149 = tpu.transpose %148, [1, 0, 2] : vector<8x4x8xf32> -> vector<4x8x8xf32>
    %150 = vector.extract_strided_slice %141 {offsets = [0, 0], sizes = [8, 32], strides = [1, 1]} : vector<16x32xf32> to vector<8x32xf32>
    %151 = vector.shape_cast %150 : vector<8x32xf32> to vector<8x4x8xf32>
    %152 = tpu.transpose %151, [1, 0, 2] : vector<8x4x8xf32> -> vector<4x8x8xf32>
    %153 = arith.truncf %146 : vector<4x8x8xf32> to vector<4x8x8xbf16>
    %154 = arith.truncf %149 : vector<4x8x8xf32> to vector<4x8x8xbf16>
    "tpu.trace_start"() <{level = 10 : i32, message = "htd,hsd->hts"}> : () -> ()
    %cst_54 = arith.constant dense<0.000000e+00> : vector<4x8x8xf32>
    %155 = tpu.matmul %153, %154, %cst_54 {dimension_numbers = #tpu.dot_dimension_numbers<[2], [2], [1], [1], [0, 0, 0, 1, 1, 1], [0], [0]>} : vector<4x8x8xbf16>, vector<4x8x8xbf16>, vector<4x8x8xf32> -> vector<4x8x8xf32>
    "tpu.trace_stop"() : () -> ()
    %cst_55 = arith.constant dense<0xFF800000> : vector<4x8xf32>
    %156 = vector.multi_reduction <maximumf>, %155, %cst_55 [2] : vector<4x8x8xf32> to vector<4x8xf32>
    %157 = vector.shape_cast %156 : vector<4x8xf32> to vector<4x8x1xf32>
    %158 = vector.broadcast %157 : vector<4x8x1xf32> to vector<4x8x8xf32>
    %159 = arith.subf %155, %158 : vector<4x8x8xf32>
    %160 = math.exp %159 : vector<4x8x8xf32>
    %cst_56 = arith.constant dense<0.000000e+00> : vector<4x8xf32>
    %161 = vector.multi_reduction <add>, %160, %cst_56 [2] : vector<4x8x8xf32> to vector<4x8xf32>
    %162 = vector.shape_cast %161 : vector<4x8xf32> to vector<4x8x1xf32>
    %163 = tpu.reciprocal %162 {approx = true} : vector<4x8x1xf32> -> vector<4x8x1xf32>
    %164 = vector.broadcast %163 : vector<4x8x1xf32> to vector<4x8x8xf32>
    %165 = arith.mulf %160, %164 : vector<4x8x8xf32>
    %166 = arith.truncf %165 : vector<4x8x8xf32> to vector<4x8x8xbf16>
    %167 = arith.truncf %152 : vector<4x8x8xf32> to vector<4x8x8xbf16>
    "tpu.trace_start"() <{level = 10 : i32, message = "hts,hsd->htd"}> : () -> ()
    %cst_57 = arith.constant dense<0.000000e+00> : vector<4x8x8xf32>
    %168 = tpu.matmul %166, %167, %cst_57 {dimension_numbers = #tpu.dot_dimension_numbers<[2], [1], [1], [2], [0, 0, 0, 1, 1, 2], [0], [0]>} : vector<4x8x8xbf16>, vector<4x8x8xbf16>, vector<4x8x8xf32> -> vector<4x8x8xf32>
    "tpu.trace_stop"() : () -> ()
    %169 = tpu.transpose %168, [1, 0, 2] : vector<4x8x8xf32> -> vector<8x4x8xf32>
    %170 = vector.shape_cast %169 : vector<8x4x8xf32> to vector<8x32xf32>
    %171 = vector.extract_strided_slice %133 {offsets = [8, 0], sizes = [8, 32], strides = [1, 1]} : vector<16x32xf32> to vector<8x32xf32>
    %172 = vector.shape_cast %171 : vector<8x32xf32> to vector<8x4x8xf32>
    %173 = tpu.transpose %172, [1, 0, 2] : vector<8x4x8xf32> -> vector<4x8x8xf32>
    %174 = vector.extract_strided_slice %140 {offsets = [8, 0], sizes = [8, 32], strides = [1, 1]} : vector<16x32xf32> to vector<8x32xf32>
    %175 = vector.shape_cast %174 : vector<8x32xf32> to vector<8x4x8xf32>
    %176 = tpu.transpose %175, [1, 0, 2] : vector<8x4x8xf32> -> vector<4x8x8xf32>
    %177 = vector.extract_strided_slice %141 {offsets = [8, 0], sizes = [8, 32], strides = [1, 1]} : vector<16x32xf32> to vector<8x32xf32>
    %178 = vector.shape_cast %177 : vector<8x32xf32> to vector<8x4x8xf32>
    %179 = tpu.transpose %178, [1, 0, 2] : vector<8x4x8xf32> -> vector<4x8x8xf32>
    %180 = arith.truncf %173 : vector<4x8x8xf32> to vector<4x8x8xbf16>
    %181 = arith.truncf %176 : vector<4x8x8xf32> to vector<4x8x8xbf16>
    "tpu.trace_start"() <{level = 10 : i32, message = "htd,hsd->hts"}> : () -> ()
    %cst_58 = arith.constant dense<0.000000e+00> : vector<4x8x8xf32>
    %182 = tpu.matmul %180, %181, %cst_58 {dimension_numbers = #tpu.dot_dimension_numbers<[2], [2], [1], [1], [0, 0, 0, 1, 1, 1], [0], [0]>} : vector<4x8x8xbf16>, vector<4x8x8xbf16>, vector<4x8x8xf32> -> vector<4x8x8xf32>
    "tpu.trace_stop"() : () -> ()
    %cst_59 = arith.constant dense<0xFF800000> : vector<4x8xf32>
    %183 = vector.multi_reduction <maximumf>, %182, %cst_59 [2] : vector<4x8x8xf32> to vector<4x8xf32>
    %184 = vector.shape_cast %183 : vector<4x8xf32> to vector<4x8x1xf32>
    %185 = vector.broadcast %184 : vector<4x8x1xf32> to vector<4x8x8xf32>
    %186 = arith.subf %182, %185 : vector<4x8x8xf32>
    %187 = math.exp %186 : vector<4x8x8xf32>
    %cst_60 = arith.constant dense<0.000000e+00> : vector<4x8xf32>
    %188 = vector.multi_reduction <add>, %187, %cst_60 [2] : vector<4x8x8xf32> to vector<4x8xf32>
    %189 = vector.shape_cast %188 : vector<4x8xf32> to vector<4x8x1xf32>
    %190 = tpu.reciprocal %189 {approx = true} : vector<4x8x1xf32> -> vector<4x8x1xf32>
    %191 = vector.broadcast %190 : vector<4x8x1xf32> to vector<4x8x8xf32>
    %192 = arith.mulf %187, %191 : vector<4x8x8xf32>
    %193 = arith.truncf %192 : vector<4x8x8xf32> to vector<4x8x8xbf16>
    %194 = arith.truncf %179 : vector<4x8x8xf32> to vector<4x8x8xbf16>
    "tpu.trace_start"() <{level = 10 : i32, message = "hts,hsd->htd"}> : () -> ()
    %cst_61 = arith.constant dense<0.000000e+00> : vector<4x8x8xf32>
    %195 = tpu.matmul %193, %194, %cst_61 {dimension_numbers = #tpu.dot_dimension_numbers<[2], [1], [1], [2], [0, 0, 0, 1, 1, 2], [0], [0]>} : vector<4x8x8xbf16>, vector<4x8x8xbf16>, vector<4x8x8xf32> -> vector<4x8x8xf32>
    "tpu.trace_stop"() : () -> ()
    %196 = tpu.transpose %195, [1, 0, 2] : vector<4x8x8xf32> -> vector<8x4x8xf32>
    %197 = vector.shape_cast %196 : vector<8x4x8xf32> to vector<8x32xf32>
    %198 = tpu.concatenate %170, %197 in 0 : vector<8x32xf32>, vector<8x32xf32> -> vector<16x32xf32>
    %199 = arith.truncf %198 : vector<16x32xf32> to vector<16x32xbf16>
    %cst_62 = arith.constant dense<0.000000e+00> : vector<16x32xf32>
    %200 = tpu.matmul %199, %142, %cst_62 {dimension_numbers = #tpu.dot_dimension_numbers<[1], [0], [0], [1], [0, 0, 1, 1], [], []>} : vector<16x32xbf16>, vector<32x32xbf16>, vector<16x32xf32> -> vector<16x32xf32>
    %201 = vector.broadcast %143 : vector<1x32xf32> to vector<16x32xf32>
    %202 = arith.addf %200, %201 : vector<16x32xf32>
    %203 = arith.addf %103, %202 : vector<16x32xf32>
    %c0_63 = arith.constant 0 : index
    %c0_64 = arith.constant 0 : index
    %204 = vector.load %arg18[%c0_63, %c0_64] : memref<1x32xf32, #tpu.memory_space<vmem>>, vector<1x32xf32>
    %c0_65 = arith.constant 0 : index
    %c0_66 = arith.constant 0 : index
    %205 = vector.load %arg19[%c0_65, %c0_66] : memref<1x32xf32, #tpu.memory_space<vmem>>, vector<1x32xf32>
    %cst_67 = arith.constant dense<0.000000e+00> : vector<16xf32>
    %206 = vector.multi_reduction <add>, %203, %cst_67 [1] : vector<16x32xf32> to vector<16xf32>
    %207 = vector.shape_cast %206 : vector<16xf32> to vector<16x1xf32>
    %cst_68 = arith.constant 3.200000e+01 : f32
    %208 = vector.broadcast %cst_68 : f32 to vector<16x1xf32>
    %209 = arith.divf %207, %208 : vector<16x1xf32>
    %210 = vector.broadcast %209 : vector<16x1xf32> to vector<16x32xf32>
    %211 = arith.subf %203, %210 : vector<16x32xf32>
    %212 = arith.mulf %211, %211 : vector<16x32xf32>
    %cst_69 = arith.constant dense<0.000000e+00> : vector<16xf32>
    %213 = vector.multi_reduction <add>, %212, %cst_69 [1] : vector<16x32xf32> to vector<16xf32>
    %214 = vector.shape_cast %213 : vector<16xf32> to vector<16x1xf32>
    %cst_70 = arith.constant 3.200000e+01 : f32
    %215 = vector.broadcast %cst_70 : f32 to vector<16x1xf32>
    %216 = arith.divf %214, %215 : vector<16x1xf32>
    %217 = vector.broadcast %209 : vector<16x1xf32> to vector<16x32xf32>
    %218 = arith.subf %203, %217 : vector<16x32xf32>
    %cst_71 = arith.constant 9.99999974E-6 : f32
    %219 = vector.broadcast %cst_71 : f32 to vector<16x1xf32>
    %220 = arith.addf %216, %219 : vector<16x1xf32>
    %221 = math.rsqrt %220 : vector<16x1xf32>
    %222 = vector.broadcast %221 : vector<16x1xf32> to vector<16x32xf32>
    %223 = arith.mulf %218, %222 : vector<16x32xf32>
    %224 = vector.broadcast %204 : vector<1x32xf32> to vector<16x32xf32>
    %225 = arith.mulf %223, %224 : vector<16x32xf32>
    %226 = vector.broadcast %205 : vector<1x32xf32> to vector<16x32xf32>
    %227 = arith.addf %225, %226 : vector<16x32xf32>
    %228 = arith.truncf %227 : vector<16x32xf32> to vector<16x32xbf16>
    %c0_72 = arith.constant 0 : index
    %c0_73 = arith.constant 0 : index
    %229 = vector.load %arg20[%c0_72, %c0_73] : memref<32x128xbf16, #tpu.memory_space<vmem>>, vector<32x128xbf16>
    %cst_74 = arith.constant dense<0.000000e+00> : vector<16x128xf32>
    %230 = tpu.matmul %228, %229, %cst_74 {dimension_numbers = #tpu.dot_dimension_numbers<[1], [0], [0], [1], [0, 0, 1, 1], [], []>} : vector<16x32xbf16>, vector<32x128xbf16>, vector<16x128xf32> -> vector<16x128xf32>
    %c0_75 = arith.constant 0 : index
    %c0_76 = arith.constant 0 : index
    %231 = vector.load %arg21[%c0_75, %c0_76] : memref<1x128xf32, #tpu.memory_space<vmem>>, vector<1x128xf32>
    %232 = vector.broadcast %231 : vector<1x128xf32> to vector<16x128xf32>
    %233 = arith.addf %230, %232 : vector<16x128xf32>
    %cst_77 = arith.constant 5.000000e-01 : f32
    %234 = vector.broadcast %cst_77 : f32 to vector<16x128xf32>
    %235 = arith.mulf %234, %233 : vector<16x128xf32>
    %cst_78 = arith.constant 0.707106769 : f32
    %236 = vector.broadcast %cst_78 : f32 to vector<16x128xf32>
    %237 = arith.mulf %233, %236 : vector<16x128xf32>
    %238 = math.erf %237 : vector<16x128xf32>
    %cst_79 = arith.constant 1.000000e+00 : f32
    %239 = vector.broadcast %cst_79 : f32 to vector<16x128xf32>
    %240 = arith.addf %239, %238 : vector<16x128xf32>
    %241 = arith.mulf %235, %240 : vector<16x128xf32>
    %242 = arith.truncf %241 : vector<16x128xf32> to vector<16x128xbf16>
    %c0_80 = arith.constant 0 : index
    %c0_81 = arith.constant 0 : index
    %243 = vector.load %arg22[%c0_80, %c0_81] : memref<128x32xbf16, #tpu.memory_space<vmem>>, vector<128x32xbf16>
    %cst_82 = arith.constant dense<0.000000e+00> : vector<16x32xf32>
    %244 = tpu.matmul %242, %243, %cst_82 {dimension_numbers = #tpu.dot_dimension_numbers<[1], [0], [0], [1], [0, 0, 1, 1], [], []>} : vector<16x128xbf16>, vector<128x32xbf16>, vector<16x32xf32> -> vector<16x32xf32>
    %c0_83 = arith.constant 0 : index
    %c0_84 = arith.constant 0 : index
    %245 = vector.load %arg23[%c0_83, %c0_84] : memref<1x32xf32, #tpu.memory_space<vmem>>, vector<1x32xf32>
    %246 = vector.broadcast %245 : vector<1x32xf32> to vector<16x32xf32>
    %247 = arith.addf %244, %246 : vector<16x32xf32>
    %248 = arith.addf %203, %247 : vector<16x32xf32>
    %c0_85 = arith.constant 0 : index
    %c0_86 = arith.constant 0 : index
    %249 = vector.load %arg24[%c0_85, %c0_86] : memref<16x32xf32, #tpu.memory_space<vmem>>, vector<16x32xf32>
    tpu.vector_store %arg24[%c0_85, %c0_86], %248 {strides = array<i32>} : memref<16x32xf32, #tpu.memory_space<vmem>>, vector<16x32xf32>,
    return
  }
  func.func @transform_0(%arg0: i32) -> (i32, i32) {
    %c0_i32 = arith.constant 0 : i32
    %c0_i32_0 = arith.constant 0 : i32
    return %arg0, %c0_i32 : i32, i32
  }
  func.func @transform_1(%arg0: i32) -> (i32, i32) {
    %c0_i32 = arith.constant 0 : i32
    %c0_i32_0 = arith.constant 0 : i32
    return %arg0, %c0_i32 : i32, i32
  }
  func.func @transform_2(%arg0: i32) -> (i32, i32) {
    %c0_i32 = arith.constant 0 : i32
    %c0_i32_0 = arith.constant 0 : i32
    %c0_i32_1 = arith.constant 0 : i32
    return %c0_i32, %c0_i32_0 : i32, i32
  }
  func.func @transform_3(%arg0: i32) -> (i32, i32) {
    %c0_i32 = arith.constant 0 : i32
    %c0_i32_0 = arith.constant 0 : i32
    %c0_i32_1 = arith.constant 0 : i32
    return %c0_i32, %c0_i32_0 : i32, i32
  }
  func.func @transform_4(%arg0: i32) -> (i32, i32) {
    %c0_i32 = arith.constant 0 : i32
    %c0_i32_0 = arith.constant 0 : i32
    %c0_i32_1 = arith.constant 0 : i32
    return %c0_i32, %c0_i32_0 : i32, i32
  }
  func.func @transform_5(%arg0: i32) -> (i32, i32) {
    %c0_i32 = arith.constant 0 : i32
    %c0_i32_0 = arith.constant 0 : i32
    %c0_i32_1 = arith.constant 0 : i32
    return %c0_i32, %c0_i32_0 : i32, i32
  }
  func.func @transform_6(%arg0: i32) -> (i32, i32) {
    %c0_i32 = arith.constant 0 : i32
    %c0_i32_0 = arith.constant 0 : i32
    %c0_i32_1 = arith.constant 0 : i32
    return %c0_i32, %c0_i32_0 : i32, i32
  }
  func.func @transform_7(%arg0: i32) -> (i32, i32) {
    %c0_i32 = arith.constant 0 : i32
    %c0_i32_0 = arith.constant 0 : i32
    %c0_i32_1 = arith.constant 0 : i32
    return %c0_i32, %c0_i32_0 : i32, i32
  }
  func.func @transform_8(%arg0: i32) -> (i32, i32) {
    %c0_i32 = arith.constant 0 : i32
    %c0_i32_0 = arith.constant 0 : i32
    %c0_i32_1 = arith.constant 0 : i32
    return %c0_i32, %c0_i32_0 : i32, i32
  }
  func.func @transform_9(%arg0: i32) -> (i32, i32) {
    %c0_i32 = arith.constant 0 : i32
    %c0_i32_0 = arith.constant 0 : i32
    %c0_i32_1 = arith.constant 0 : i32
    return %c0_i32, %c0_i32_0 : i32, i32
  }
  func.func @transform_10(%arg0: i32) -> (i32, i32) {
    %c0_i32 = arith.constant 0 : i32
    %c0_i32_0 = arith.constant 0 : i32
    %c0_i32_1 = arith.constant 0 : i32
    return %c0_i32, %c0_i32_0 : i32, i32
  }
  func.func @transform_11(%arg0: i32) -> (i32, i32) {
    %c0_i32 = arith.constant 0 : i32
    %c0_i32_0 = arith.constant 0 : i32
    %c0_i32_1 = arith.constant 0 : i32
    return %c0_i32, %c0_i32_0 : i32, i32
  }
  func.func @transform_12(%arg0: i32) -> (i32, i32) {
    %c0_i32 = arith.constant 0 : i32
    %c0_i32_0 = arith.constant 0 : i32
    %c0_i32_1 = arith.constant 0 : i32
    return %c0_i32, %c0_i32_0 : i32, i32
  }
  func.func @transform_13(%arg0: i32) -> (i32, i32) {
    %c0_i32 = arith.constant 0 : i32
    %c0_i32_0 = arith.constant 0 : i32
    %c0_i32_1 = arith.constant 0 : i32
    return %c0_i32, %c0_i32_0 : i32, i32
  }
  func.func @transform_14(%arg0: i32) -> (i32, i32) {
    %c0_i32 = arith.constant 0 : i32
    %c0_i32_0 = arith.constant 0 : i32
    %c0_i32_1 = arith.constant 0 : i32
    return %c0_i32, %c0_i32_0 : i32, i32
  }
  func.func @transform_15(%arg0: i32) -> (i32, i32) {
    %c0_i32 = arith.constant 0 : i32
    %c0_i32_0 = arith.constant 0 : i32
    %c0_i32_1 = arith.constant 0 : i32
    return %c0_i32, %c0_i32_0 : i32, i32
  }
  func.func @transform_16(%arg0: i32) -> (i32, i32) {
    %c0_i32 = arith.constant 0 : i32
    %c0_i32_0 = arith.constant 0 : i32
    %c0_i32_1 = arith.constant 0 : i32
    return %c0_i32, %c0_i32_0 : i32, i32
  }
  func.func @transform_17(%arg0: i32) -> (i32, i32) {
    %c0_i32 = arith.constant 0 : i32
    %c0_i32_0 = arith.constant 0 : i32
    %c0_i32_1 = arith.constant 0 : i32
    return %c0_i32, %c0_i32_0 : i32, i32
  }
  func.func @transform_18(%arg0: i32) -> (i32, i32) {
    %c0_i32 = arith.constant 0 : i32
    %c0_i32_0 = arith.constant 0 : i32
    %c0_i32_1 = arith.constant 0 : i32
    return %c0_i32, %c0_i32_0 : i32, i32
  }
  func.func @transform_19(%arg0: i32) -> (i32, i32) {
    %c0_i32 = arith.constant 0 : i32
    %c0_i32_0 = arith.constant 0 : i32
    %c0_i32_1 = arith.constant 0 : i32
    return %c0_i32, %c0_i32_0 : i32, i32
  }
  func.func @transform_20(%arg0: i32) -> (i32, i32) {
    %c0_i32 = arith.constant 0 : i32
    %c0_i32_0 = arith.constant 0 : i32
    %c0_i32_1 = arith.constant 0 : i32
    return %c0_i32, %c0_i32_0 : i32, i32
  }
  func.func @transform_21(%arg0: i32) -> (i32, i32) {
    %c0_i32 = arith.constant 0 : i32
    %c0_i32_0 = arith.constant 0 : i32
    %c0_i32_1 = arith.constant 0 : i32
    return %c0_i32, %c0_i32_0 : i32, i32
  }
  func.func @transform_22(%arg0: i32) -> (i32, i32) {
    %c0_i32 = arith.constant 0 : i32
    %c0_i32_0 = arith.constant 0 : i32
    %c0_i32_1 = arith.constant 0 : i32
    return %c0_i32, %c0_i32_0 : i32, i32
  }
  func.func @transform_23(%arg0: i32) -> (i32, i32) {
    %c0_i32 = arith.constant 0 : i32
    %c0_i32_0 = arith.constant 0 : i32
    return %arg0, %c0_i32 : i32, i32
  }
}

</mosaic_0001>

<bundles_post_ra>
// kernel: tpu_custom_call.1
= control target key start
LH: loop header
LB: loop body
LE: loop exit
PB: predicated region body
PF: predicated region fallthrough
CT: control target
= control target key end

     0   :  { %s7100_s0 = inlined_call_operand.vmem [shape: f32[16,32], index: 0, kind: input, shape index: {}]   ;;  %s7101_s1 = inlined_call_operand.vmem [shape: f32[16,32], index: 1, kind: input, shape index: {}]   ;;  %s7102_s2 = inlined_call_operand.hbm [shape: f32[8,8], index: 2, kind: input, shape index: {}]   ;;  %s7103_s3 = inlined_call_operand.hbm [shape: f32[1,32], index: 3, kind: input, shape index: {}]   ;;  %s7104_s4 = inlined_call_operand.hbm [shape: f32[1,32], index: 4, kind: input, shape index: {}]   ;;  %s7105_s5 = inlined_call_operand.vmem [shape: bf16[32,96], index: 5, kind: input, shape index: {}]   ;;  %s7106_s6 = inlined_call_operand.hbm [shape: f32[1,96], index: 6, kind: input, shape index: {}]   ;;  %s7107_s7 = inlined_call_operand.vmem [shape: bf16[32,32], index: 7, kind: input, shape index: {}]   ;;  %s7108_s8 = inlined_call_operand.hbm [shape: f32[1,32], index: 8, kind: input, shape index: {}]   ;;  %s7109_s9 = inlined_call_operand.hbm [shape: f32[1,32], index: 9, kind: input, shape index: {}]   ;;  %s7110_s10 = inlined_call_operand.hbm [shape: f32[1,32], index: 10, kind: input, shape index: {}]   ;;  %s7111_s11 = inlined_call_operand.vmem [shape: bf16[32,32], index: 11, kind: input, shape index: {}]   ;;  %s7112_s12 = inlined_call_operand.hbm [shape: f32[1,32], index: 12, kind: input, shape index: {}]   ;;  %s7113_s13 = inlined_call_operand.vmem [shape: bf16[32,64], index: 13, kind: input, shape index: {}]   ;;  %s7114_s14 = inlined_call_operand.hbm [shape: f32[1,64], index: 14, kind: input, shape index: {}]   ;;  %s7115_s15 = inlined_call_operand.vmem [shape: bf16[32,32], index: 15, kind: input, shape index: {}]   ;;  %s7116_s16 = inlined_call_operand.hbm [shape: f32[1,32], index: 16, kind: input, shape index: {}]   ;;  %s7117_s17 = inlined_call_operand.hbm [shape: f32[1,32], index: 17, kind: input, shape index: {}]   ;;  %s7118_s18 = inlined_call_operand.vmem [shape: f32[1,32], index: 18, kind: input, shape index: {}]   ;;  %s7119_s19 = inlined_call_operand.vmem [shape: bf16[32,128], index: 19, kind: input, shape index: {}]   ;;  %s7120_s20 = inlined_call_operand.vmem [shape: f32[1,128], index: 20, kind: input, shape index: {}]   ;;  %s7121_s21 = inlined_call_operand.vmem [shape: bf16[128,32], index: 21, kind: input, shape index: {}]   ;;  %s7122_s22 = inlined_call_operand.vmem [shape: f32[1,32], index: 22, kind: input, shape index: {}]   ;;  %s7123_s23 = inlined_call_operand.hbm [shape: f32[16,32], index: 23, kind: output, shape index: {}]  }
   0x1   :  { %7132 = sst [smem:[#allocation28_spill]] %s7100_s0 }
   0x2   :  { %7133 = sst [smem:[#allocation29_spill]] %s7101_s1 }
   0x3   :  { %7134 = sst [smem:[#allocation30_spill]] %s7102_s2 }
   0x4   :  { %7135 = sst [smem:[#allocation31_spill]] %s7103_s3 }
   0x5   :  { %7136 = sst [smem:[#allocation32_spill]] %s7104_s4 }
   0x6   :  { %7137 = sst [smem:[#allocation33_spill]] %s7105_s5 }
   0x7   :  { %7138 = sst [smem:[#allocation34_spill]] %s7106_s6 }
   0x8   :  { %7139 = sst [smem:[#allocation35_spill]] %s7107_s7 }
   0x9   :  { %28 = vsyncpa [#allocation3], 0 }
   0xa   :  { %29 = vsyncpa [#allocation6], 0 }
   0xb   :  { %30 = vsyncpa [#allocation9], 0 }
   0xc   :  { %31 = vsyncpa [#allocation12], 0 }
   0xd   :  { %32 = vsyncpa [#allocation15], 0 }
   0xe   :  { %33 = vsyncpa [#allocation18], 0 }
   0xf   :  { %34 = vsyncpa [#allocation4], 0  ;;  %s5876_s4 = smov [#allocation5]   ;;  %s5877_s24 = smov [#allocation8]  }
  0x10   :  { %s55_s30 = sshll.u32 %s5876_s4, 4  ;;  %s77_s25 = sshll.u32 %s5877_s24, 4  ;;  %s56_s30 = int_to_ptr.vmem [resolvable:$true] %s55_s30  ;;  %s78_s25 = int_to_ptr.vmem [resolvable:$true] %s77_s25 }
  0x11   :  { %s7140_s26 = sld [smem:[#allocation31_spill]] }
  0x17   :  { %s5598_s2 = scalar_lea.hbm %s7140_s26, 16 }
  0x18   :  { %p5599_p0 = scmp.ne.s32.totalorder %s7140_s26, %s5598_s2  ;;  %p5602_p1 = scmp.lt.u32.totalorder %s5598_s2, %s7140_s26 }
  0x1a   :  { %p5604_p2 = pnand %p5602_p1, %p5599_p0 }
  0x1c   :  { %5607 = shalt.err (!%p5604_p2)
}
  0x1d   :  { %s5608_s29 = scalar_lea.vmem %s56_s30, 16  ;;  %s5612_s3 = scalar_lea.vmem %s56_s30, 32 }
  0x1e   :  { %p5609_p3 = scmp.ne.s32.totalorder %s56_s30, %s5608_s29  ;;  %p5613_p4 = scmp.lt.s32.totalorder %s56_s30, %s56_s30 }
  0x1f   :  { %p5614_p5 = scmp.lt.s32.totalorder %s5612_s3, %s5608_s29 }
  0x21   :  { %p5615_p6 = por %p5614_p5, %p5613_p4 }
  0x23   :  { %p5616_p7 = pnand %p5615_p6, %p5609_p3 }
  0x25   :  { %5619 = shalt.err (!%p5616_p7)
}
  0x26   :  { %58 = dma.hbm_to_vmem [thread:$0]  %s7140_s26, 16, %s56_s30, [#allocation6]  }
  0x27   :  { %s7141_s1 = sld [smem:[#allocation34_spill]] }
  0x2d   :  { %s5620_s6 = scalar_lea.hbm %s7141_s1, 16 }
  0x2e   :  { %p5621_p8 = scmp.ne.s32.totalorder %s7141_s1, %s5620_s6  ;;  %p5624_p9 = scmp.lt.u32.totalorder %s5620_s6, %s7141_s1 }
  0x30   :  { %p5626_p10 = pnand %p5624_p9, %p5621_p8 }
  0x32   :  { %5629 = shalt.err (!%p5626_p10)
}
  0x33   :  { %s5630_s29 = scalar_lea.vmem %s78_s25, 16  ;;  %s5634_s3 = scalar_lea.vmem %s78_s25, 32 }
  0x34   :  { %p5631_p11 = scmp.ne.s32.totalorder %s78_s25, %s5630_s29  ;;  %p5635_p12 = scmp.lt.s32.totalorder %s78_s25, %s78_s25 }
  0x35   :  { %p5636_p13 = scmp.lt.s32.totalorder %s5634_s3, %s5630_s29 }
  0x37   :  { %p5637_p0 = por %p5636_p13, %p5635_p12 }
  0x39   :  { %p5638_p1 = pnand %p5637_p0, %p5631_p11 }
  0x3b   :  { %5641 = shalt.err (!%p5638_p1)
}
  0x3c   :  { %80 = dma.hbm_to_vmem [thread:$0]  %s7141_s1, 16, %s78_s25, [#allocation9]  }
  0x3d   :  { %s5878_s0 = smov [#allocation11]   ;;  %s5879_s24 = smov [#allocation14]  }
  0x3e   :  { %s99_s4 = sshll.u32 %s5878_s0, 4  ;;  %s121_s5 = sshll.u32 %s5879_s24, 4  ;;  %s100_s4 = int_to_ptr.vmem [resolvable:$true] %s99_s4  ;;  %s122_s5 = int_to_ptr.vmem [resolvable:$true] %s121_s5 }
  0x3f   :  { %s5642_s2 = scalar_lea.hbm %s7109_s9, 16 }
  0x40   :  { %p5643_p2 = scmp.ne.s32.totalorder %s7109_s9, %s5642_s2  ;;  %p5646_p3 = scmp.lt.u32.totalorder %s5642_s2, %s7109_s9 }
  0x42   :  { %p5648_p4 = pnand %p5646_p3, %p5643_p2 }
  0x44   :  { %5651 = shalt.err (!%p5648_p4)
}
  0x45   :  { %s5652_s25 = scalar_lea.vmem %s100_s4, 16  ;;  %s5656_s1 = scalar_lea.vmem %s100_s4, 32 }
  0x46   :  { %p5653_p5 = scmp.ne.s32.totalorder %s100_s4, %s5652_s25  ;;  %p5657_p6 = scmp.lt.s32.totalorder %s100_s4, %s100_s4 }
  0x47   :  { %p5658_p7 = scmp.lt.s32.totalorder %s5656_s1, %s5652_s25 }
  0x49   :  { %p5659_p8 = por %p5658_p7, %p5657_p6 }
  0x4b   :  { %p5660_p9 = pnand %p5659_p8, %p5653_p5 }
  0x4d   :  { %5663 = shalt.err (!%p5660_p9)
}
  0x4e   :  { %102 = dma.hbm_to_vmem [thread:$0]  %s7109_s9, 16, %s100_s4, [#allocation12]  }
  0x4f   :  { %s5664_s6 = scalar_lea.hbm %s7112_s12, 16 }
  0x50   :  { %p5665_p10 = scmp.ne.s32.totalorder %s7112_s12, %s5664_s6  ;;  %p5668_p11 = scmp.lt.u32.totalorder %s5664_s6, %s7112_s12 }
  0x52   :  { %p5670_p12 = pnand %p5668_p11, %p5665_p10 }
  0x54   :  { %5673 = shalt.err (!%p5670_p12)
}
  0x55   :  { %s5674_s29 = scalar_lea.vmem %s122_s5, 16  ;;  %s5678_s3 = scalar_lea.vmem %s122_s5, 32 }
  0x56   :  { %p5675_p13 = scmp.ne.s32.totalorder %s122_s5, %s5674_s29  ;;  %p5679_p0 = scmp.lt.s32.totalorder %s122_s5, %s122_s5 }
  0x57   :  { %p5680_p1 = scmp.lt.s32.totalorder %s5678_s3, %s5674_s29 }
  0x59   :  { %p5681_p2 = por %p5680_p1, %p5679_p0 }
  0x5b   :  { %p5682_p3 = pnand %p5681_p2, %p5675_p13 }
  0x5d   :  { %5685 = shalt.err (!%p5682_p3)
}
  0x5e   :  { %124 = dma.hbm_to_vmem [thread:$0]  %s7112_s12, 16, %s122_s5, [#allocation15]  }
  0x5f   :  { %s5880_s25 = smov [#allocation17]   ;;  %s5881_s30 = smov [#allocation2]  }
  0x60   :  { %s145_s1 = sshll.u32 %s5880_s25, 4  ;;  %s45_s26 = sshll.u32 %s5881_s30, 4  ;;  %s146_s1 = int_to_ptr.vmem [resolvable:$true] %s145_s1  ;;  %s46_s26 = int_to_ptr.vmem [resolvable:$true] %s45_s26 }
  0x61   :  { %s5686_s6 = scalar_lea.hbm %s7116_s16, 16 }
  0x62   :  { %p5687_p4 = scmp.ne.s32.totalorder %s7116_s16, %s5686_s6  ;;  %p5690_p5 = scmp.lt.u32.totalorder %s5686_s6, %s7116_s16 }
  0x64   :  { %p5692_p6 = pnand %p5690_p5, %p5687_p4 }
  0x66   :  { %5695 = shalt.err (!%p5692_p6)
}
  0x67   :  { %s5696_s12 = scalar_lea.vmem %s146_s1, 16  ;;  %s5700_s5 = scalar_lea.vmem %s146_s1, 32 }
  0x68   :  { %p5697_p7 = scmp.ne.s32.totalorder %s146_s1, %s5696_s12  ;;  %p5701_p8 = scmp.lt.s32.totalorder %s146_s1, %s146_s1 }
  0x69   :  { %p5702_p9 = scmp.lt.s32.totalorder %s5700_s5, %s5696_s12 }
  0x6b   :  { %p5703_p10 = por %p5702_p9, %p5701_p8 }
  0x6d   :  { %p5704_p11 = pnand %p5703_p10, %p5697_p7 }
  0x6f   :  { %5707 = shalt.err (!%p5704_p11)
}
  0x70   :  { %148 = dma.hbm_to_vmem [thread:$0]  %s7116_s16, 16, %s146_s1, [#allocation18]  }
  0x71   :  { %s7142_s25 = sld [smem:[#allocation30_spill]] }
  0x77   :  { %s5708_s30 = scalar_lea.hbm %s7142_s25, 128 }
  0x78   :  { %p5709_p12 = scmp.ne.s32.totalorder %s7142_s25, %s5708_s30  ;;  %p5712_p13 = scmp.lt.u32.totalorder %s5708_s30, %s7142_s25 }
  0x7a   :  { %p5714_p0 = pnand %p5712_p13, %p5709_p12 }
  0x7c   :  { %5717 = shalt.err (!%p5714_p0)
}
  0x7d   :  { %s5718_s2 = scalar_lea.vmem %s46_s26, 128  ;;  %p5723_p2 = scmp.lt.s32.totalorder %s46_s26, %s46_s26 }
  0x7e   :  { %p5719_p1 = scmp.ne.s32.totalorder %s46_s26, %s5718_s2  ;;  %p5724_p3 = scmp.lt.s32.totalorder %s5718_s2, %s5718_s2 }
  0x80   :  { %p5725_p4 = por %p5724_p3, %p5723_p2 }
  0x82   :  { %p5726_p5 = pnand %p5725_p4, %p5719_p1 }
  0x84   :  { %5729 = shalt.err (!%p5726_p5)
}
  0x85   :  { %48 = dma.hbm_to_vmem [thread:$0]  %s7142_s25, 128, %s46_s26, [#allocation3]  }
  0x86   :  { %s5882_s7 = smov [#allocation7]   ;;  %s5883_s12 = smov [#allocation10]  }
  0x87   :  { %s65_s28 = sshll.u32 %s5882_s7, 4  ;;  %s89_s5 = sshll.u32 %s5883_s12, 4  ;;  %s66_s28 = int_to_ptr.vmem [resolvable:$true] %s65_s28  ;;  %s90_s5 = int_to_ptr.vmem [resolvable:$true] %s89_s5 }
  0x88   :  { %s7143_s9 = sld [smem:[#allocation32_spill]] }
  0x8e   :  { %s5730_s4 = scalar_lea.hbm %s7143_s9, 16 }
  0x8f   :  { %p5731_p6 = scmp.ne.s32.totalorder %s7143_s9, %s5730_s4  ;;  %p5734_p7 = scmp.lt.u32.totalorder %s5730_s4, %s7143_s9 }
  0x91   :  { %p5736_p8 = pnand %p5734_p7, %p5731_p6 }
  0x93   :  { %5739 = shalt.err (!%p5736_p8)
}
  0x94   :  { %s5740_s26 = scalar_lea.vmem %s66_s28, 16  ;;  %s5744_s25 = scalar_lea.vmem %s66_s28, 32 }
  0x95   :  { %p5741_p9 = scmp.ne.s32.totalorder %s66_s28, %s5740_s26  ;;  %p5745_p10 = scmp.lt.s32.totalorder %s66_s28, %s66_s28 }
  0x96   :  { %p5746_p11 = scmp.lt.s32.totalorder %s5744_s25, %s5740_s26 }
  0x98   :  { %p5747_p12 = por %p5746_p11, %p5745_p10 }
  0x9a   :  { %p5748_p13 = pnand %p5747_p12, %p5741_p9 }
  0x9c   :  { %5751 = shalt.err (!%p5748_p13)
}
  0x9d   :  { %68 = dma.hbm_to_vmem [thread:$0]  %s7143_s9, 16, %s66_s28, [#allocation6]  }
  0x9e   :  { %s5752_s7 = scalar_lea.hbm %s7108_s8, 16 }
  0x9f   :  { %p5753_p0 = scmp.ne.s32.totalorder %s7108_s8, %s5752_s7  ;;  %p5756_p1 = scmp.lt.u32.totalorder %s5752_s7, %s7108_s8 }
  0xa1   :  { %p5758_p2 = pnand %p5756_p1, %p5753_p0 }
  0xa3   :  { %5761 = shalt.err (!%p5758_p2)
}
  0xa4   :  { %s5762_s30 = scalar_lea.vmem %s90_s5, 16  ;;  %s5766_s0 = scalar_lea.vmem %s90_s5, 32 }
  0xa5   :  { %p5763_p3 = scmp.ne.s32.totalorder %s90_s5, %s5762_s30  ;;  %p5767_p4 = scmp.lt.s32.totalorder %s90_s5, %s90_s5 }
  0xa6   :  { %p5768_p5 = scmp.lt.s32.totalorder %s5766_s0, %s5762_s30 }
  0xa8   :  { %p5769_p6 = por %p5768_p5, %p5767_p4 }
  0xaa   :  { %p5770_p7 = pnand %p5769_p6, %p5763_p3 }
  0xac   :  { %5773 = shalt.err (!%p5770_p7)
}
  0xad   :  { %92 = dma.hbm_to_vmem [thread:$0]  %s7108_s8, 16, %s90_s5, [#allocation9]  }
  0xae   :  { %s5884_s24 = smov [#allocation13]   ;;  %s5885_s26 = smov [#allocation16]  }
  0xaf   :  { %s109_s6 = sshll.u32 %s5884_s24, 4  ;;  %s133_s25 = sshll.u32 %s5885_s26, 4  ;;  %s110_s6 = int_to_ptr.vmem [resolvable:$true] %s109_s6  ;;  %s134_s25 = int_to_ptr.vmem [resolvable:$true] %s133_s25 }
  0xb0   :  { %s5774_s16 = scalar_lea.hbm %s7110_s10, 16 }
  0xb1   :  { %p5775_p8 = scmp.ne.s32.totalorder %s7110_s10, %s5774_s16  ;;  %p5778_p9 = scmp.lt.u32.totalorder %s5774_s16, %s7110_s10 }
  0xb3   :  { %p5780_p10 = pnand %p5778_p9, %p5775_p8 }
  0xb5   :  { %5783 = shalt.err (!%p5780_p10)
}
  0xb6   :  { %s5784_s8 = scalar_lea.vmem %s110_s6, 16  ;;  %s5788_s5 = scalar_lea.vmem %s110_s6, 32 }
  0xb7   :  { %p5785_p11 = scmp.ne.s32.totalorder %s110_s6, %s5784_s8  ;;  %p5789_p12 = scmp.lt.s32.totalorder %s110_s6, %s110_s6 }
  0xb8   :  { %p5790_p13 = scmp.lt.s32.totalorder %s5788_s5, %s5784_s8 }
  0xba   :  { %p5791_p0 = por %p5790_p13, %p5789_p12 }
  0xbc   :  { %p5792_p1 = pnand %p5791_p0, %p5785_p11 }
  0xbe   :  { %5795 = shalt.err (!%p5792_p1)
}
  0xbf   :  { %112 = dma.hbm_to_vmem [thread:$0]  %s7110_s10, 16, %s110_s6, [#allocation12]  }
  0xc0   :  { %s5796_s28 = scalar_lea.hbm %s7114_s14, 16 }
  0xc1   :  { %p5797_p2 = scmp.ne.s32.totalorder %s7114_s14, %s5796_s28  ;;  %p5800_p3 = scmp.lt.u32.totalorder %s5796_s28, %s7114_s14 }
  0xc3   :  { %p5802_p4 = pnand %p5800_p3, %p5797_p2 }
  0xc5   :  { %5805 = shalt.err (!%p5802_p4)
}
  0xc6   :  { %s5806_s2 = scalar_lea.vmem %s134_s25, 16  ;;  %s5810_s16 = scalar_lea.vmem %s134_s25, 32 }
  0xc7   :  { %p5807_p5 = scmp.ne.s32.totalorder %s134_s25, %s5806_s2  ;;  %p5811_p6 = scmp.lt.s32.totalorder %s134_s25, %s134_s25 }
  0xc8   :  { %p5812_p7 = scmp.lt.s32.totalorder %s5810_s16, %s5806_s2 }
  0xca   :  { %p5813_p8 = por %p5812_p7, %p5811_p6 }
  0xcc   :  { %p5814_p9 = pnand %p5813_p8, %p5807_p5 }
  0xce   :  { %5817 = shalt.err (!%p5814_p9)
}
  0xcf   :  { %136 = dma.hbm_to_vmem [thread:$0]  %s7114_s14, 16, %s134_s25, [#allocation15]  }
  0xd0   :  { %s5886_s1 = smov [#allocation19]   ;;  %s5818_s8 = scalar_lea.hbm %s7117_s17, 16 }
  0xd1   :  { %s155_s7 = sshll.u32 %s5886_s1, 4  ;;  %p5819_p10 = scmp.ne.s32.totalorder %s7117_s17, %s5818_s8  ;;  %s156_s7 = int_to_ptr.vmem [resolvable:$true] %s155_s7 }
  0xd2   :  { %p5822_p11 = scmp.lt.u32.totalorder %s5818_s8, %s7117_s17 }
  0xd4   :  { %p5824_p12 = pnand %p5822_p11, %p5819_p10 }
  0xd6   :  { %5827 = shalt.err (!%p5824_p12)
}
  0xd7   :  { %s5828_s0 = scalar_lea.vmem %s156_s7, 16  ;;  %s5832_s14 = scalar_lea.vmem %s156_s7, 32 }
  0xd8   :  { %p5829_p13 = scmp.ne.s32.totalorder %s156_s7, %s5828_s0  ;;  %p5833_p0 = scmp.lt.s32.totalorder %s156_s7, %s156_s7 }
  0xd9   :  { %p5834_p1 = scmp.lt.s32.totalorder %s5832_s14, %s5828_s0 }
  0xdb   :  { %p5835_p2 = por %p5834_p1, %p5833_p0 }
  0xdd   :  { %p5836_p3 = pnand %p5835_p2, %p5829_p13 }
  0xdf   :  { %5839 = shalt.err (!%p5836_p3)
}
  0xe0   :  { %158 = dma.hbm_to_vmem [thread:$0]  %s7117_s17, 16, %s156_s7, [#allocation18]  }
  0xe1   :  { %5862 = dma.done.wait [#allocation3], 128  }
  0xe2   :  { %5863 = vsyncadd [#allocation3], 4294967168 }
  0xe3   :  { %5864 = dma.done.wait [#allocation6], 32  }
  0xe4   :  { %5865 = vsyncadd [#allocation6], 4294967264 }
  0xe5   :  { %5866 = dma.done.wait [#allocation9], 32  }
  0xe6   :  { %5867 = vsyncadd [#allocation9], 4294967264 }
  0xe7   :  { %5868 = dma.done.wait [#allocation12], 32  }
  0xe8   :  { %5869 = vsyncadd [#allocation12], 4294967264 }
  0xe9   :  { %5870 = dma.done.wait [#allocation15], 32  }
  0xea   :  { %5871 = vsyncadd [#allocation15], 4294967264 }
  0xeb   :  { %5872 = dma.done.wait [#allocation18], 32  }
  0xec   :  { %5873 = vsyncadd [#allocation18], 4294967264  ;;  %vm210_vm0 = vcmask 261120   ;;  %s7144_s26 = sld [smem:[#allocation28_spill]]  ;;  %s7145_s10 = sld [smem:[#allocation33_spill]]  ;;  %v5887_v15 = vmov 0.0   ;;  %v342_v46 = vlaneseq }
  0xed   :  { %5181 = vmatprep.subr.bf16.mxu1 %v5887_v15  ;;  %5207 = vmatprep.subr.bf16.mxu0 %v5887_v15  ;;  %vm5888_vm1 = vmmov 0   ;;  %v4987_v25 = vld [vmem:[#allocation5] ss:$0 sm:$0xff]  ;;  %v4988_v29 = vld [vmem:[#allocation7] ss:$0 sm:$0xff]  ;;  %s5889_s7 = smov 112  }
  0xee   :  { %5185 = vmatprep.mubr.msk.bf16.mxu1 %vm5888_vm1, %v5887_v15  ;;  %5209 = vmatprep.mubr.msk.bf16.mxu0 %vm5888_vm1, %v5887_v15  ;;  %v4989_v34 = vld [vmem:[#allocation8] ss:$0 sm:$0xff]  ;;  %s5890_s12 = smov 120   ;;  %s5891_s29 = smov 104   ;;  %v5893_v44 = vmov 1983009808  }
  0xef   :  { %s5892_s8 = smov 96   ;;  %v340_v45 = vunpack.c.l.s4 %v5893_v44  ;;  %v343_v48 = vshrl.u32 %v342_v46, 7  ;;  %v5894_v49 = vmov 1934713408   ;;  %vm777_vm2 = vcmask 64512   ;;  %s5895_s5 = smov 64  }
  0xf0   :  { %v372_v50 = vunpack.c.l.s4 %v5894_v49  ;;  %vm1017_vm3 = vcmask 1043456   ;;  %s7146_s30 = sld [smem:[#allocation35_spill]]  ;;  %s5896_s25 = smov 16   ;;  %vm1348_vm4 = vcmask 130048   ;;  %vm1350_vm5 = vcmask 195584  }
  0xf1   :  { %v341_v47 = vunpack.c.0.s8 %v340_v45  ;;  %s5897_s28 = smov 8   ;;  %s5898_s9 = smov 24  }
  0xf2   :  { %v203_v0 = vld [vmem:[%s7144_s26] sm:$0xff]  ;;  %v204_v1 = vld [vmem:[%s7144_s26 + $0x8] sm:$0xff]  ;;  %v373_v57 = vunpack.c.0.s8 %v372_v50  ;;  %s7147_s3 = sld [smem:[#allocation29_spill]] }
  0xf3   :  { %v211_v2 = vsel %vm210_vm0, %v203_v0, 0.0  ;;  %v214_v3 = vsel %vm210_vm0, %v204_v1, 0.0  ;;  %v5496_v14 = vld [vmem:[%s7145_s10] sm:$0xff]   ;;  %v5497_v16 = vld [vmem:[%s7145_s10 + $0x8] sm:$0xff]   ;;  %v6208_v53 = vsub.s32 %v341_v47, %v343_v48 }
  0xf4   :  { %212 = vadd.xlane.f32.xlu0 %v211_v2  ;;  %5182 = vmatpush3.bf16.msra.mxu1 %v5496_v14 }
  0xf5   :  { %5183 = vmatprep.subr.bf16.mxu1 %v5887_v15 }
  0xf8   :  { %215 = vadd.xlane.f32.xlu0 %v214_v3  ;;  %5184 = vmatpush3.bf16.msra.mxu1 %v5497_v16 }
  0xf9   :  { %5189 = vmatprep.subr.bf16.mxu1 %v5887_v15 }
 0x181   :  { %v213_v4 = vpop.xlane.xlu0 %212 }
 0x182   :  { %v218_v5 = vmul.f32 0.03125, %v213_v4 }
 0x184   :  { %v220_v6 = vsub.f32 %v203_v0, %v218_v5  ;;  %v6218_v0 = vsub.s32 %v373_v57, %v343_v48 }
 0x185   :  { %v216_v7 = vpop.xlane.xlu0 %215 }
 0x186   :  { %v219_v8 = vmul.f32 0.03125, %v216_v7  ;;  %v222_v9 = vmul.f32 %v220_v6, %v220_v6 }
 0x188   :  { %v221_v10 = vsub.f32 %v204_v1, %v219_v8  ;;  %v224_v11 = vsel %vm210_vm0, %v222_v9, 0.0 }
 0x189   :  { %225 = vadd.xlane.f32.xlu1 %v224_v11 }
 0x18a   :  { %v223_v12 = vmul.f32 %v221_v10, %v221_v10 }
 0x18c   :  { %v227_v13 = vsel %vm210_vm0, %v223_v12, 0.0 }
 0x18d   :  { %228 = vadd.xlane.f32.xlu1 %v227_v13 }
 0x216   :  { %v226_v17 = vpop.xlane.xlu1 %225 }
 0x217   :  { %v230_v18 = vmul.f32 0.03125, %v226_v17 }
 0x219   :  { %v232_v19 = vadd.f32 1e-05, %v230_v18 }
 0x21a   :  { %v229_v20 = vpop.xlane.xlu1 %228 }
 0x21b   :  { %5516 = vrsqrt.f32 %v232_v19  ;;  %v231_v21 = vmul.f32 0.03125, %v229_v20 }
 0x21d   :  { %v233_v22 = vadd.f32 1e-05, %v231_v21 }
 0x21f   :  { %5518 = vrsqrt.f32 %v233_v22 }
 0x225   :  { %v5517_v23 = vpop.eup %5516 }
 0x226   :  { %v236_v24 = vmul.f32 %v5517_v23, %v220_v6 }
 0x228   :  { %v244_v28 = vmul.f32 %v4987_v25, %v236_v24 }
 0x229   :  { %v5519_v26 = vpop.eup %5518 }
 0x22a   :  { %v237_v27 = vmul.f32 %v5519_v26, %v221_v10  ;;  %v252_v31 = vadd.f32 %v4988_v29, %v244_v28 }
 0x22c   :  { %v245_v30 = vmul.f32 %v4987_v25, %v237_v27 }
 0x22e   :  { %v253_v32 = vadd.f32 %v4988_v29, %v245_v30 }
 0x230   :  { %v254_v33 = vpack.c.bf16 %v253_v32, %v252_v31 }
 0x232   :  { %5186 = vmatmul.mubr.msk.bf16.vlgmr.msra.gmra.mrb[0].mxu1 %vm210_vm0, %v254_v33 }
 0x233   :  { %5191 = vmatprep.mubr.msk.bf16.mxu1 %vm5888_vm1, %v5887_v15 }
 0x305   :  { %v315_v35 = vpop.f32.mrb[0].mxu1 }
 0x306   :  { %v6180_v36 = vadd.f32 %v4989_v34, %v315_v35  ;;  %v5187_v37 = vpop.f32.mrb[1].mxu1 }
 0x307   :  { %v318_v38 = vpop.f32.mrb[2].mxu1 }
 0x308   :  { %v6182_v39 = vadd.f32 %v4989_v34, %v318_v38  ;;  %331 = vrot.lane.b32.xlu1 %v6180_v36, %s5889_s7  ;;  %328 = vrot.lane.b32.xlu0 %v6180_v36, %s5890_s12  ;;  %v5188_v40 = vpop.f32.mrb[3].mxu1 }
 0x30c   :  { %334 = vrot.lane.b32.xlu1 %v6180_v36, %s5891_s29 }
 0x310   :  { %473 = vrot.lane.b32.xlu1 %v6180_v36, %s5892_s8 }
 0x37a   :  { %v6192_v41 = vpop.permute.xlu1 %331  ;;  %v6194_v42 = vpop.permute.xlu0 %328 }
 0x37b   :  { %477 = vrot.lane.b32.xlu1 %v6192_v41, %s5892_s8  ;;  %475 = vrot.lane.b32.xlu0 %v6194_v42, %s5892_s8  ;;  %v337_v54 = vcombine.low %v6180_v36, %v6192_v41  ;;  %v338_v55 = vcombine.high %v6180_v36, %v6192_v41 }
 0x37d   :  { %v345_v60 = vrot.slane %v337_v54, %v6208_v53  ;;  %v352_v61 = vrot.slane %v338_v55, %v6208_v53 }
 0x37e   :  { %v6200_v43 = vpop.permute.xlu1 %334 }
 0x37f   :  { %479 = vrot.lane.b32.xlu0 %v6200_v43, %s5892_s8  ;;  %v353_v51 = vcombine.low %v6194_v42, %v6200_v43  ;;  %v354_v52 = vcombine.high %v6194_v42, %v6200_v43 }
 0x381   :  { %v361_v58 = vrot.slane %v353_v51, %v6208_v53  ;;  %v368_v59 = vrot.slane %v354_v52, %v6208_v53 }
 0x382   :  { %v474_v56 = vpop.permute.xlu1 %473 }
 0x383   :  { %v369_v1 = vcombine.low %v345_v60, %v361_v58  ;;  %v370_v2 = vcombine.high %v345_v60, %v361_v58  ;;  %v385_v3 = vcombine.low %v352_v61, %v368_v59  ;;  %v386_v4 = vcombine.high %v352_v61, %v368_v59 }
 0x385   :  { %v377_v10 = vrot.slane %v369_v1, %v6218_v0  ;;  %v384_v11 = vrot.slane %v370_v2, %v6218_v0  ;;  %v393_v12 = vrot.slane %v385_v3, %v6218_v0  ;;  %v400_v13 = vrot.slane %v386_v4, %v6218_v0 }
 0x387   :  { %v405_v23 = vcombine.low %v377_v10, %v384_v11  ;;  %v4993_v24 = vcombine.high %v377_v10, %v384_v11  ;;  %v421_v25 = vcombine.low %v393_v12, %v400_v13  ;;  %v4994_v26 = vcombine.high %v393_v12, %v400_v13 }
 0x389   :  { %v412_v35 = vrot.slane %v405_v23, %v6208_v53  ;;  %v420_v37 = vrot.slane %v4993_v24, %v6208_v53  ;;  %v428_v38 = vrot.slane %v421_v25, %v6208_v53  ;;  %v436_v40 = vrot.slane %v4994_v26, %v6208_v53  ;;  %v6268_v23 = vld [vmem:[#allocation2] sm:$0xff] }
 0x38b   :  { %v437_v52 = vcombine.low %v412_v35, %v420_v37  ;;  %v453_v54 = vcombine.low %v428_v38, %v436_v40  ;;  %v438_v55 = vcombine.high %v412_v35, %v420_v37 }
 0x38d   :  { %v461_v1 = vrot.slane %v453_v54, %v6218_v0  ;;  %v452_v4 = vrot.slane %v438_v55, %v6218_v0 }
 0x3ed   :  { %v478_v62 = vpop.permute.xlu1 %477  ;;  %v476_v63 = vpop.permute.xlu0 %475 }
 0x3ee   :  { %v485_v5 = vcombine.low %v474_v56, %v478_v62  ;;  %v486_v6 = vcombine.high %v474_v56, %v478_v62  ;;  %v454_v56 = vcombine.high %v428_v38, %v436_v40 }
 0x3f0   :  { %v493_v14 = vrot.slane %v485_v5, %v6208_v53  ;;  %v500_v16 = vrot.slane %v486_v6, %v6208_v53  ;;  %v468_v5 = vrot.slane %v454_v56, %v6218_v0 }
 0x3f1   :  { %v480_v7 = vpop.permute.xlu0 %479 }
 0x3f2   :  { %v501_v8 = vcombine.low %v476_v63, %v480_v7  ;;  %v502_v9 = vcombine.high %v476_v63, %v480_v7  ;;  %v445_v63 = vrot.slane %v437_v52, %v6218_v0  ;;  %v472_v10 = vcombine.high %v452_v4, %v468_v5 }
 0x3f4   :  { %v509_v17 = vrot.slane %v501_v8, %v6208_v53  ;;  %v516_v18 = vrot.slane %v502_v9, %v6208_v53  ;;  %v469_v9 = vcombine.low %v445_v63, %v461_v1  ;;  %v772_v13 = vpack.c.bf16 %v472_v10, %v472_v10 }
 0x3f6   :  { %v517_v19 = vcombine.low %v493_v14, %v509_v17  ;;  %v518_v20 = vcombine.high %v493_v14, %v509_v17  ;;  %v533_v21 = vcombine.low %v500_v16, %v516_v18  ;;  %v534_v22 = vcombine.high %v500_v16, %v516_v18 }
 0x3f7   :  { %v769_v12 = vpack.c.bf16 %v469_v9, %v469_v9  ;;  %v470_v17 = vcombine.high %v445_v63, %v461_v1 }
 0x3f8   :  { %v525_v27 = vrot.slane %v517_v19, %v6218_v0  ;;  %v532_v28 = vrot.slane %v518_v20, %v6218_v0  ;;  %v541_v29 = vrot.slane %v533_v21, %v6218_v0  ;;  %v548_v30 = vrot.slane %v534_v22, %v6218_v0 }
 0x3f9   :  { %v770_v19 = vpack.c.bf16 %v470_v17, %v470_v17  ;;  %v471_v21 = vcombine.low %v452_v4, %v468_v5 }
 0x3fa   :  { %v553_v31 = vcombine.low %v525_v27, %v532_v28  ;;  %v4995_v32 = vcombine.high %v525_v27, %v532_v28  ;;  %v569_v33 = vcombine.low %v541_v29, %v548_v30  ;;  %v4996_v34 = vcombine.high %v541_v29, %v548_v30 }
 0x3fb   :  { %v771_v22 = vpack.c.bf16 %v471_v21, %v471_v21 }
 0x3fc   :  { %v560_v44 = vrot.slane %v553_v31, %v6208_v53  ;;  %v568_v45 = vrot.slane %v4995_v32, %v6208_v53  ;;  %v576_v46 = vrot.slane %v569_v33, %v6208_v53  ;;  %v584_v47 = vrot.slane %v4996_v34, %v6208_v53 }
 0x3fe   :  { %v585_v48 = vcombine.low %v560_v44, %v568_v45  ;;  %v601_v49 = vcombine.low %v576_v46, %v584_v47  ;;  %v586_v50 = vcombine.high %v560_v44, %v568_v45  ;;  %v602_v51 = vcombine.high %v576_v46, %v584_v47 }
 0x400   :  { %v593_v57 = vrot.slane %v585_v48, %v6218_v0  ;;  %v609_v58 = vrot.slane %v601_v49, %v6218_v0  ;;  %v600_v59 = vrot.slane %v586_v50, %v6218_v0  ;;  %v616_v60 = vrot.slane %v602_v51, %v6218_v0 }
 0x402   :  { %v617_v61 = vcombine.low %v593_v57, %v609_v58  ;;  %v620_v62 = vcombine.high %v600_v59, %v616_v60  ;;  %v618_v8 = vcombine.high %v593_v57, %v609_v58  ;;  %v619_v16 = vcombine.low %v600_v59, %v616_v60 }
 0x404   :  { %v773_v2 = vpack.c.bf16 %v617_v61, %v617_v61  ;;  %v776_v3 = vpack.c.bf16 %v620_v62, %v620_v62  ;;  %v774_v11 = vpack.c.bf16 %v618_v8, %v618_v8  ;;  %v775_v18 = vpack.c.bf16 %v619_v16, %v619_v16 }
 0x406   :  { %v782_v6 = vsel %vm777_vm2, %v773_v2, 0  ;;  %v920_v7 = vsel %vm777_vm2, %v776_v3, 0  ;;  %v828_v14 = vsel %vm777_vm2, %v774_v11, 0  ;;  %v874_v20 = vsel %vm777_vm2, %v775_v18, 0 }
 0x407   :  { %5190 = vmatpush3.bf16.xpose.msra.mxu1 %v782_v6  ;;  %5208 = vmatpush3.bf16.xpose.msra.mxu0 %v920_v7 }
 0x408   :  { %5195 = vmatprep.subr.bf16.mxu1 %v5887_v15  ;;  %5219 = vmatprep.subr.bf16.mxu0 %v5887_v15 }
 0x40e   :  { %5192 = vmatmul.mubr.msk.bf16.vlgmr.msra.gmra.mrb[4].mxu1 %vm777_vm2, %v769_v12  ;;  %5210 = vmatmul.mubr.msk.bf16.vlgmr.msra.gmra.mrb[0].mxu0 %vm777_vm2, %v772_v13 }
 0x40f   :  { %5196 = vmatpush3.bf16.xpose.msra.mxu1 %v828_v14  ;;  %5197 = vmatprep.mubr.msk.bf16.mxu1 %vm5888_vm1, %v5887_v15 }
 0x410   :  { %5201 = vmatprep.subr.bf16.mxu1 %v5887_v15  ;;  %5221 = vmatprep.mubr.msk.bf16.mxu0 %vm5888_vm1, %v5887_v15 }
 0x416   :  { %5198 = vmatmul.mubr.msk.bf16.vlgmr.msra.gmra.mrb[8].mxu1 %vm777_vm2, %v770_v19 }
 0x417   :  { %5202 = vmatpush3.bf16.xpose.msra.mxu1 %v874_v20  ;;  %5203 = vmatprep.mubr.msk.bf16.mxu1 %vm5888_vm1, %v5887_v15 }
 0x418   :  { %5213 = vmatprep.subr.bf16.mxu1 %v5887_v15 }
 0x41e   :  { %5204 = vmatmul.mubr.msk.bf16.vlgmr.msra.gmra.mrb[12].mxu1 %vm777_vm2, %v771_v22 }
 0x41f   :  { %5215 = vmatprep.mubr.msk.bf16.mxu1 %vm5888_vm1, %v5887_v15 }
 0x4e1   :  { %v818_v24 = vpop.f32.mrb[4].mxu1  ;;  %v956_v25 = vpop.f32.mrb[0].mxu0 }
 0x4e2   :  { %v819_v26 = vadd.f32 %v818_v24, %v6268_v23  ;;  %v5193_v27 = vpop.f32.mrb[5].mxu1  ;;  %v5211_v28 = vpop.f32.mrb[1].mxu0  ;;  %v957_v49 = vadd.f32 %v956_v25, %v6268_v23 }
 0x4e3   :  { %v821_v29 = vpop.f32.mrb[6].mxu1  ;;  %v959_v30 = vpop.f32.mrb[2].mxu0 }
 0x4e4   :  { %v5194_v31 = vpop.f32.mrb[7].mxu1  ;;  %v5212_v32 = vpop.f32.mrb[3].mxu0  ;;  %v962_v33 = vsel %vm777_vm2, %v819_v26, -inf  ;;  %v971_v52 = vsel %vm777_vm2, %v957_v49, -inf }
 0x4e5   :  { %963 = vmax.xlane.f32.xlu1 %v962_v33 }
 0x4e9   :  { %v864_v34 = vpop.f32.mrb[8].mxu1 }
 0x4ea   :  { %v865_v35 = vadd.f32 %v864_v34, %v6268_v23  ;;  %v5199_v37 = vpop.f32.mrb[9].mxu1 }
 0x4eb   :  { %v867_v38 = vpop.f32.mrb[10].mxu1 }
 0x4ec   :  { %v5200_v40 = vpop.f32.mrb[11].mxu1  ;;  %v965_v44 = vsel %vm777_vm2, %v865_v35, -inf }
 0x4ed   :  { %966 = vmax.xlane.f32.xlu0 %v965_v44 }
 0x4f1   :  { %v910_v45 = vpop.f32.mrb[12].mxu1 }
 0x4f2   :  { %v911_v46 = vadd.f32 %v910_v45, %v6268_v23  ;;  %v5205_v47 = vpop.f32.mrb[13].mxu1 }
 0x4f3   :  { %v913_v48 = vpop.f32.mrb[14].mxu1 }
 0x4f4   :  { %v5206_v50 = vpop.f32.mrb[15].mxu1  ;;  %v968_v51 = vsel %vm777_vm2, %v911_v46, -inf }
 0x4f5   :  { %969 = vmax.xlane.f32.xlu0 %v968_v51 }
 0x4f6   :  { %1353 = vrot.lane.b32.xlu1 %v6182_v39, %s5890_s12 }
 0x4f9   :  { %972 = vmax.xlane.f32.xlu0 %v971_v52 }
 0x4fa   :  { %1359 = vrot.lane.b32.xlu1 %v6182_v39, %s5891_s29 }
 0x4fe   :  { %623 = vrot.lane.b32.xlu1 %v6194_v42, %s5895_s5 }
 0x502   :  { %625 = vrot.lane.b32.xlu1 %v6192_v41, %s5895_s5 }
 0x506   :  { %627 = vrot.lane.b32.xlu1 %v6200_v43, %s5895_s5 }
 0x50f   :  { %1356 = vrot.lane.b32.xlu0 %v6182_v39, %s5889_s7 }
 0x513   :  { %621 = vrot.lane.b32.xlu0 %v6180_v36, %s5895_s5 }
 0x517   :  { %1498 = vrot.lane.b32.xlu0 %v6182_v39, %s5892_s8 }
 0x572   :  { %v964_v54 = vpop.xlane.xlu1 %963 }
 0x573   :  { %v974_v60 = vsub.f32 %v819_v26, %v964_v54 }
 0x575   :  { %v978_v63 = vmul.f32 1.442695, %v974_v60 }
 0x576   :  { %v6294_v55 = vpop.permute.xlu1 %1353 }
 0x577   :  { %1500 = vrot.lane.b32.xlu1 %v6294_v55, %s5892_s8 }
 0x57a   :  { %v6298_v42 = vpop.permute.xlu1 %1359  ;;  %v967_v41 = vpop.xlane.xlu0 %966 }
 0x57b   :  { %v975_v56 = vsub.f32 %v865_v35, %v967_v41 }
 0x57d   :  { %v980_v43 = vmul.f32 1.442695, %v975_v56 }
 0x57e   :  { %v624_v57 = vpop.permute.xlu1 %623 }
 0x57f   :  { %5520 = vpow2.f32 %v980_v43 }
 0x582   :  { %v970_v58 = vpop.xlane.xlu0 %969  ;;  %v626_v36 = vpop.permute.xlu1 %625 }
 0x583   :  { %v976_v59 = vsub.f32 %v911_v46, %v970_v58 }
 0x585   :  { %v982_v61 = vmul.f32 1.442695, %v976_v59 }
 0x586   :  { %v973_v62 = vpop.xlane.xlu0 %972  ;;  %v628_v3 = vpop.permute.xlu1 %627 }
 0x587   :  { %5522 = vpow2.f32 %v982_v61  ;;  %v977_v1 = vsub.f32 %v957_v49, %v973_v62  ;;  %v649_v7 = vcombine.low %v624_v57, %v628_v3  ;;  %v650_v8 = vcombine.high %v624_v57, %v628_v3 }
 0x588   :  { %5524 = vpow2.f32 %v978_v63 }
 0x589   :  { %v6300_v2 = vpop.eup %5520  ;;  %v984_v6 = vmul.f32 1.442695, %v977_v1  ;;  %v657_v13 = vrot.slane %v649_v7, %v6208_v53  ;;  %v664_v14 = vrot.slane %v650_v8, %v6208_v53  ;;  %v1378_v1 = vcombine.low %v6294_v55, %v6298_v42 }
 0x58a   :  { %v6302_v4 = vpop.permute.xlu0 %1356  ;;  %v989_v5 = vsel %vm777_vm2, %v6300_v2, 0.0  ;;  %v1379_v8 = vcombine.high %v6294_v55, %v6298_v42 }
 0x58b   :  { %990 = vadd.xlane.f32.xlu0 %v989_v5  ;;  %5526 = vpow2.f32 %v984_v6  ;;  %v1362_v62 = vcombine.low %v6182_v39, %v6302_v4  ;;  %v1363_v3 = vcombine.high %v6182_v39, %v6302_v4 }
 0x58e   :  { %v622_v9 = vpop.permute.xlu0 %621 }
 0x58f   :  { %v633_v10 = vcombine.low %v622_v9, %v626_v36  ;;  %v634_v11 = vcombine.high %v622_v9, %v626_v36  ;;  %v1370_v9 = vrot.slane %v1362_v62, %v6208_v53 }
 0x591   :  { %v6306_v12 = vpop.eup %5522  ;;  %v641_v16 = vrot.slane %v633_v10, %v6208_v53  ;;  %v648_v17 = vrot.slane %v634_v11, %v6208_v53 }
 0x592   :  { %v992_v18 = vsel %vm777_vm2, %v6306_v12, 0.0  ;;  %v6314_v24 = vpop.eup %5524  ;;  %v1499_v36 = vpop.permute.xlu0 %1498 }
 0x593   :  { %993 = vadd.xlane.f32.xlu0 %v992_v18  ;;  %v665_v19 = vcombine.low %v641_v16, %v657_v13  ;;  %v666_v20 = vcombine.high %v641_v16, %v657_v13  ;;  %v681_v21 = vcombine.low %v648_v17, %v664_v14  ;;  %v682_v22 = vcombine.high %v648_v17, %v664_v14 }
 0x594   :  { %v986_v33 = vsel %vm777_vm2, %v6314_v24, 0.0  ;;  %v1386_v13 = vrot.slane %v1378_v1, %v6208_v53  ;;  %v1377_v14 = vrot.slane %v1363_v3, %v6208_v53 }
 0x595   :  { %v673_v25 = vrot.slane %v665_v19, %v6218_v0  ;;  %v680_v26 = vrot.slane %v666_v20, %v6218_v0  ;;  %v689_v27 = vrot.slane %v681_v21, %v6218_v0  ;;  %v696_v28 = vrot.slane %v682_v22, %v6218_v0  ;;  %v6322_v34 = vpop.eup %5526 }
 0x596   :  { %v995_v48 = vsel %vm777_vm2, %v6322_v34, 0.0  ;;  %v1394_v18 = vcombine.low %v1370_v9, %v1386_v13  ;;  %v1395_v19 = vcombine.high %v1370_v9, %v1386_v13 }
 0x597   :  { %v701_v29 = vcombine.low %v673_v25, %v680_v26  ;;  %v4997_v30 = vcombine.high %v673_v25, %v680_v26  ;;  %v717_v31 = vcombine.low %v689_v27, %v696_v28  ;;  %v4998_v32 = vcombine.high %v689_v27, %v696_v28 }
 0x598   :  { %v1402_v26 = vrot.slane %v1394_v18, %v6218_v0  ;;  %v1409_v27 = vrot.slane %v1395_v19, %v6218_v0 }
 0x599   :  { %v708_v35 = vrot.slane %v701_v29, %v6208_v53  ;;  %v716_v37 = vrot.slane %v4997_v30, %v6208_v53  ;;  %v724_v38 = vrot.slane %v717_v31, %v6208_v53  ;;  %v732_v40 = vrot.slane %v4998_v32, %v6208_v53 }
 0x59b   :  { %987 = vadd.xlane.f32.xlu1 %v986_v33  ;;  %v733_v44 = vcombine.low %v708_v35, %v716_v37  ;;  %v749_v45 = vcombine.low %v724_v38, %v732_v40  ;;  %v734_v46 = vcombine.high %v708_v35, %v716_v37  ;;  %v750_v47 = vcombine.high %v724_v38, %v732_v40 }
 0x59c   :  { %v1430_v37 = vcombine.low %v1402_v26, %v1409_v27 }
 0x59d   :  { %v741_v49 = vrot.slane %v733_v44, %v6218_v0  ;;  %v757_v50 = vrot.slane %v749_v45, %v6218_v0  ;;  %v748_v51 = vrot.slane %v734_v46, %v6218_v0  ;;  %v764_v52 = vrot.slane %v750_v47, %v6218_v0 }
 0x59e   :  { %v5009_v47 = vcombine.high %v1402_v26, %v1409_v27 }
 0x59f   :  { %996 = vadd.xlane.f32.xlu1 %v995_v48  ;;  %v765_v54 = vcombine.low %v741_v49, %v757_v50  ;;  %v766_v41 = vcombine.high %v741_v49, %v757_v50  ;;  %v768_v56 = vcombine.high %v748_v51, %v764_v52  ;;  %v6334_v43 = vcombine.low %v748_v51, %v764_v52 }
 0x5a1   :  { %v1010_v57 = vpack.c.bf16 %v765_v54, %v765_v54  ;;  %v1011_v58 = vpack.c.bf16 %v766_v41, %v766_v41  ;;  %v1013_v7 = vpack.c.bf16 %v768_v56, %v768_v56  ;;  %v1012_v50 = vpack.c.bf16 %v6334_v43, %v6334_v43 }
 0x5a2   :  { %v1445_v43 = vrot.slane %v5009_v47, %v6208_v53 }
 0x5a3   :  { %v1019_v59 = vsel %vm1017_vm3, %v1010_v57, 0  ;;  %v1065_v60 = vsel %vm1017_vm3, %v1011_v58, 0  ;;  %v1157_v17 = vsel %vm1017_vm3, %v1013_v7, 0  ;;  %v6374_v57 = vrot.slane %v1430_v37, %v6208_v53 }
 0x5a4   :  { %5214 = vmatpush3.bf16.msra.mxu1 %v1019_v59  ;;  %5220 = vmatpush3.bf16.msra.mxu0 %v1065_v60  ;;  %v1111_v3 = vsel %vm1017_vm3, %v1012_v50, 0 }
 0x5a5   :  { %5231 = vmatprep.subr.bf16.mxu0 %v5887_v15  ;;  %5225 = vmatprep.subr.bf16.mxu1 %v5887_v15 }
 0x5a9   :  { %1502 = vrot.lane.b32.xlu0 %v6302_v4, %s5892_s8 }
 0x5b0   :  { %1504 = vrot.lane.b32.xlu1 %v6298_v42, %s5892_s8 }
 0x5e9   :  { %v1501_v5 = vpop.permute.xlu1 %1500 }
 0x618   :  { %v991_v61 = vpop.xlane.xlu0 %990 }
 0x619   :  { %5528 = vrcp.f32 %v991_v61 }
 0x620   :  { %v994_v10 = vpop.xlane.xlu0 %993 }
 0x623   :  { %v5529_v63 = vpop.eup %5528 }
 0x624   :  { %v1003_v6 = vmul.f32 %v5529_v63, %v6300_v2  ;;  %v1393_v2 = vrot.slane %v1379_v8, %v6208_v53  ;;  %v1503_v22 = vpop.permute.xlu0 %1502 }
 0x625   :  { %v1510_v28 = vcombine.low %v1499_v36, %v1503_v22  ;;  %v1511_v29 = vcombine.high %v1499_v36, %v1503_v22  ;;  %v1462_v22 = vcombine.low %v6374_v57, %v1445_v43 }
 0x626   :  { %v1007_v11 = vpack.c.bf16 %v1003_v6, %v1003_v6  ;;  %v1410_v20 = vcombine.low %v1377_v14, %v1393_v2  ;;  %v1411_v21 = vcombine.high %v1377_v14, %v1393_v2 }
 0x627   :  { %v1518_v40 = vrot.slane %v1510_v28, %v6208_v53  ;;  %v1525_v44 = vrot.slane %v1511_v29, %v6208_v53 }
 0x628   :  { %v988_v16 = vpop.xlane.xlu1 %987  ;;  %5222 = vmatmul.mubr.msk.bf16.vlgmr.msra.gmra.mrb[4].mxu0 %vm777_vm2, %v1007_v11  ;;  %v1418_v30 = vrot.slane %v1410_v20, %v6218_v0  ;;  %v1425_v31 = vrot.slane %v1411_v21, %v6218_v0 }
 0x629   :  { %5530 = vrcp.f32 %v988_v16  ;;  %5232 = vmatpush3.bf16.msra.mxu0 %v1157_v17  ;;  %5233 = vmatprep.mubr.msk.bf16.mxu0 %vm5888_vm1, %v5887_v15 }
 0x62a   :  { %5243 = vmatprep.subr.bf16.mxu0 %v5887_v15  ;;  %5532 = vrcp.f32 %v994_v10  ;;  %v1446_v48 = vcombine.low %v1418_v30, %v1425_v31  ;;  %v5010_v58 = vcombine.high %v1418_v30, %v1425_v31 }
 0x62c   :  { %v997_v25 = vpop.xlane.xlu1 %996  ;;  %v1453_v63 = vrot.slane %v1446_v48, %v6208_v53  ;;  %v1461_v9 = vrot.slane %v5010_v58, %v6208_v53 }
 0x62d   :  { %5534 = vrcp.f32 %v997_v25 }
 0x62e   :  { %v1478_v25 = vcombine.low %v1453_v63, %v1461_v9  ;;  %v1479_v47 = vcombine.high %v1453_v63, %v1461_v9 }
 0x630   :  { %v1505_v32 = vpop.permute.xlu1 %1504 }
 0x631   :  { %v1526_v33 = vcombine.low %v1501_v5, %v1505_v32  ;;  %v1527_v35 = vcombine.high %v1501_v5, %v1505_v32  ;;  %v1470_v32 = vrot.slane %v1462_v22, %v6218_v0 }
 0x633   :  { %v5531_v38 = vpop.eup %5530  ;;  %v1534_v45 = vrot.slane %v1526_v33, %v6208_v53  ;;  %v1541_v46 = vrot.slane %v1527_v35, %v6208_v53  ;;  %v1486_v33 = vrot.slane %v1478_v25, %v6218_v0 }
 0x634   :  { %v1002_v49 = vmul.f32 %v5531_v38, %v6314_v24  ;;  %v5533_v56 = vpop.eup %5532 }
 0x635   :  { %v1542_v51 = vcombine.low %v1518_v40, %v1534_v45  ;;  %v1543_v52 = vcombine.high %v1518_v40, %v1534_v45  ;;  %v1558_v54 = vcombine.low %v1525_v44, %v1541_v46  ;;  %v1559_v41 = vcombine.high %v1525_v44, %v1541_v46 }
 0x636   :  { %v1006_v59 = vpack.c.bf16 %v1002_v49, %v1002_v49  ;;  %v1004_v10 = vmul.f32 %v5533_v56, %v6306_v12  ;;  %v1463_v44 = vcombine.high %v6374_v57, %v1445_v43  ;;  %v1494_v45 = vcombine.low %v1470_v32, %v1486_v33 }
 0x637   :  { %v5535_v60 = vpop.eup %5534  ;;  %v1550_v36 = vrot.slane %v1542_v51, %v6218_v0  ;;  %v1557_v61 = vrot.slane %v1543_v52, %v6218_v0  ;;  %v1566_v24 = vrot.slane %v1558_v54, %v6218_v0  ;;  %v1573_v62 = vrot.slane %v1559_v41, %v6218_v0 }
 0x638   :  { %v1005_v1 = vmul.f32 %v5535_v60, %v6322_v34  ;;  %5216 = vmatmul.mubr.msk.bf16.vlgmr.msra.gmra.mrb[16].mxu1 %vm777_vm2, %v1006_v59  ;;  %v1008_v19 = vpack.c.bf16 %v1004_v10, %v1004_v10  ;;  %v1495_v46 = vcombine.high %v1470_v32, %v1486_v33  ;;  %v1794_v50 = vpack.c.bf16 %v1494_v45, %v1494_v45 }
 0x639   :  { %v1578_v5 = vcombine.low %v1550_v36, %v1557_v61  ;;  %v5011_v6 = vcombine.high %v1550_v36, %v1557_v61  ;;  %v1594_v7 = vcombine.low %v1566_v24, %v1573_v62  ;;  %v5012_v8 = vcombine.high %v1566_v24, %v1573_v62  ;;  %5226 = vmatpush3.bf16.msra.mxu1 %v1111_v3 }
 0x63a   :  { %v1009_v11 = vpack.c.bf16 %v1005_v1, %v1005_v1  ;;  %5227 = vmatprep.mubr.msk.bf16.mxu1 %vm5888_vm1, %v5887_v15  ;;  %5237 = vmatprep.subr.bf16.mxu1 %v5887_v15  ;;  %v1795_v51 = vpack.c.bf16 %v1495_v46, %v1495_v46  ;;  %v1477_v52 = vrot.slane %v1463_v44, %v6218_v0 }
 0x63b   :  { %v1585_v34 = vrot.slane %v1578_v5, %v6208_v53  ;;  %v1593_v13 = vrot.slane %v5011_v6, %v6208_v53  ;;  %v1601_v14 = vrot.slane %v1594_v7, %v6208_v53  ;;  %v1609_v16 = vrot.slane %v5012_v8, %v6208_v53 }
 0x63c   :  { %5234 = vmatmul.mubr.msk.bf16.vlgmr.msra.gmra.mrb[8].mxu0 %vm777_vm2, %v1009_v11  ;;  %v1493_v54 = vrot.slane %v1479_v47, %v6218_v0 }
 0x63d   :  { %v1610_v17 = vcombine.low %v1585_v34, %v1593_v13  ;;  %v1626_v2 = vcombine.low %v1601_v14, %v1609_v16  ;;  %5245 = vmatprep.mubr.msk.bf16.mxu0 %vm5888_vm1, %v5887_v15  ;;  %v1611_v12 = vcombine.high %v1585_v34, %v1593_v13  ;;  %v1627_v18 = vcombine.high %v1601_v14, %v1609_v16 }
 0x63e   :  { %v1496_v57 = vcombine.low %v1477_v52, %v1493_v54  ;;  %v1497_v58 = vcombine.high %v1477_v52, %v1493_v54 }
 0x63f   :  { %v1618_v20 = vrot.slane %v1610_v17, %v6218_v0  ;;  %v1634_v21 = vrot.slane %v1626_v2, %v6218_v0  ;;  %v1625_v28 = vrot.slane %v1611_v12, %v6218_v0  ;;  %v1641_v29 = vrot.slane %v1627_v18, %v6218_v0 }
 0x640   :  { %5228 = vmatmul.mubr.msk.bf16.vlgmr.msra.gmra.mrb[20].mxu1 %vm777_vm2, %v1008_v19  ;;  %v1796_v59 = vpack.c.bf16 %v1496_v57, %v1496_v57  ;;  %v1797_v60 = vpack.c.bf16 %v1497_v58, %v1497_v58 }
 0x641   :  { %v1642_v26 = vcombine.low %v1618_v20, %v1634_v21  ;;  %v1643_v27 = vcombine.high %v1618_v20, %v1634_v21  ;;  %5239 = vmatprep.mubr.msk.bf16.mxu1 %vm5888_vm1, %v5887_v15  ;;  %v1644_v38 = vcombine.low %v1625_v28, %v1641_v29  ;;  %v1645_v40 = vcombine.high %v1625_v28, %v1641_v29 }
 0x643   :  { %v1798_v30 = vpack.c.bf16 %v1642_v26, %v1642_v26  ;;  %v1799_v31 = vpack.c.bf16 %v1643_v27, %v1643_v27  ;;  %v1800_v48 = vpack.c.bf16 %v1644_v38, %v1644_v38  ;;  %v1801_v49 = vpack.c.bf16 %v1645_v40, %v1645_v40 }
 0x645   :  { %v1806_v35 = vsel %vm777_vm2, %v1798_v30, 0  ;;  %v1852_v37 = vsel %vm777_vm2, %v1799_v31, 0  ;;  %v1898_v41 = vsel %vm777_vm2, %v1800_v48, 0  ;;  %v1944_v56 = vsel %vm777_vm2, %v1801_v49, 0 }
 0x646   :  { %5238 = vmatpush3.bf16.xpose.msra.mxu1 %v1806_v35  ;;  %5244 = vmatpush3.bf16.xpose.msra.mxu0 %v1852_v37 }
 0x647   :  { %5249 = vmatprep.subr.bf16.mxu1 %v5887_v15  ;;  %5255 = vmatprep.subr.bf16.mxu0 %v5887_v15 }
 0x64d   :  { %5240 = vmatmul.mubr.msk.bf16.vlgmr.msra.gmra.mrb[24].mxu1 %vm777_vm2, %v1794_v50  ;;  %5246 = vmatmul.mubr.msk.bf16.vlgmr.msra.gmra.mrb[12].mxu0 %vm777_vm2, %v1795_v51 }
 0x64e   :  { %5250 = vmatpush3.bf16.xpose.msra.mxu1 %v1898_v41  ;;  %5256 = vmatpush3.bf16.xpose.msra.mxu0 %v1944_v56 }
 0x64f   :  { %5251 = vmatprep.mubr.msk.bf16.mxu1 %vm5888_vm1, %v5887_v15  ;;  %5257 = vmatprep.mubr.msk.bf16.mxu0 %vm5888_vm1, %v5887_v15 }
 0x650   :  { %5261 = vmatprep.subr.bf16.mxu1 %v5887_v15  ;;  %5267 = vmatprep.subr.bf16.mxu0 %v5887_v15 }
 0x655   :  { %5252 = vmatmul.mubr.msk.bf16.vlgmr.msra.gmra.mrb[28].mxu1 %vm777_vm2, %v1796_v59  ;;  %5258 = vmatmul.mubr.msk.bf16.vlgmr.msra.gmra.mrb[16].mxu0 %vm777_vm2, %v1797_v60 }
 0x656   :  { %5263 = vmatprep.mubr.msk.bf16.mxu1 %vm5888_vm1, %v5887_v15  ;;  %5269 = vmatprep.mubr.msk.bf16.mxu0 %vm5888_vm1, %v5887_v15 }
 0x6fb   :  { %v1101_v36 = vpop.f32.mrb[4].mxu0 }
 0x6fc   :  { %v5223_v61 = vpop.f32.mrb[5].mxu0 }
 0x6fd   :  { %v1104_v24 = vpop.f32.mrb[6].mxu0 }
 0x6fe   :  { %v5224_v62 = vpop.f32.mrb[7].mxu0 }
 0x70b   :  { %v1055_v43 = vpop.f32.mrb[16].mxu1 }
 0x70c   :  { %v5217_v63 = vpop.f32.mrb[17].mxu1 }
 0x70d   :  { %v1058_v1 = vpop.f32.mrb[18].mxu1 }
 0x70e   :  { %v5218_v3 = vpop.f32.mrb[19].mxu1 }
 0x70f   :  { %v1193_v5 = vpop.f32.mrb[8].mxu0 }
 0x710   :  { %v1215_v6 = vcombine.low %v1101_v36, %v1193_v5  ;;  %v1216_v7 = vcombine.high %v1101_v36, %v1193_v5  ;;  %v5235_v8 = vpop.f32.mrb[9].mxu0 }
 0x711   :  { %v1196_v9 = vpop.f32.mrb[10].mxu0 }
 0x712   :  { %v5236_v10 = vpop.f32.mrb[11].mxu0  ;;  %v1223_v17 = vrot.slane %v1215_v6, %v6208_v53  ;;  %v1230_v2 = vrot.slane %v1216_v7, %v6208_v53 }
 0x713   :  { %v1147_v11 = vpop.f32.mrb[20].mxu1 }
 0x714   :  { %v1199_v34 = vcombine.low %v1055_v43, %v1147_v11  ;;  %v1200_v13 = vcombine.high %v1055_v43, %v1147_v11  ;;  %v5229_v14 = vpop.f32.mrb[21].mxu1 }
 0x715   :  { %v1150_v16 = vpop.f32.mrb[22].mxu1 }
 0x716   :  { %v1207_v12 = vrot.slane %v1199_v34, %v6208_v53  ;;  %v1214_v18 = vrot.slane %v1200_v13, %v6208_v53  ;;  %v5230_v19 = vpop.f32.mrb[23].mxu1 }
 0x718   :  { %v1231_v20 = vcombine.low %v1207_v12, %v1223_v17  ;;  %v1232_v21 = vcombine.high %v1207_v12, %v1223_v17  ;;  %v1247_v22 = vcombine.low %v1214_v18, %v1230_v2  ;;  %v1248_v25 = vcombine.high %v1214_v18, %v1230_v2 }
 0x71a   :  { %v1239_v26 = vrot.slane %v1231_v20, %v6218_v0  ;;  %v1246_v27 = vrot.slane %v1232_v21, %v6218_v0  ;;  %v1255_v28 = vrot.slane %v1247_v22, %v6218_v0  ;;  %v1262_v29 = vrot.slane %v1248_v25, %v6218_v0 }
 0x71c   :  { %v1267_v30 = vcombine.low %v1239_v26, %v1246_v27  ;;  %v5007_v31 = vcombine.high %v1239_v26, %v1246_v27  ;;  %v1283_v32 = vcombine.low %v1255_v28, %v1262_v29  ;;  %v5008_v33 = vcombine.high %v1255_v28, %v1262_v29 }
 0x71e   :  { %v1274_v35 = vrot.slane %v1267_v30, %v6208_v53  ;;  %v1282_v37 = vrot.slane %v5007_v31, %v6208_v53  ;;  %v1290_v38 = vrot.slane %v1283_v32, %v6208_v53  ;;  %v1298_v40 = vrot.slane %v5008_v33, %v6208_v53 }
 0x720   :  { %v1842_v44 = vpop.f32.mrb[24].mxu1  ;;  %v1888_v45 = vpop.f32.mrb[12].mxu0  ;;  %v1300_v46 = vcombine.high %v1274_v35, %v1282_v37  ;;  %v1316_v47 = vcombine.high %v1290_v38, %v1298_v40  ;;  %v1299_v48 = vcombine.low %v1274_v35, %v1282_v37  ;;  %v1315_v49 = vcombine.low %v1290_v38, %v1298_v40 }
 0x721   :  { %v1843_v50 = vadd.f32 %v1842_v44, %v6268_v23  ;;  %v1889_v51 = vadd.f32 %v1888_v45, %v6268_v23  ;;  %v5241_v52 = vpop.f32.mrb[25].mxu1  ;;  %v5247_v54 = vpop.f32.mrb[13].mxu0 }
 0x722   :  { %v1845_v41 = vpop.f32.mrb[26].mxu1  ;;  %v1891_v56 = vpop.f32.mrb[14].mxu0  ;;  %v6445_v57 = vrot.slane %v1300_v46, %v6218_v0  ;;  %v6448_v58 = vrot.slane %v1316_v47, %v6218_v0  ;;  %v6451_v59 = vrot.slane %v1299_v48, %v6218_v0  ;;  %v6454_v60 = vrot.slane %v1315_v49, %v6218_v0 }
 0x723   :  { %v5242_v36 = vpop.f32.mrb[27].mxu1  ;;  %v5248_v61 = vpop.f32.mrb[15].mxu0  ;;  %v1989_v24 = vsel %vm777_vm2, %v1889_v51, -inf  ;;  %v1986_v62 = vsel %vm777_vm2, %v1843_v50, -inf }
 0x724   :  { %1990 = vmax.xlane.f32.xlu1 %v1989_v24  ;;  %1987 = vmax.xlane.f32.xlu0 %v1986_v62  ;;  %v1333_v43 = vcombine.low %v6445_v57, %v6448_v58  ;;  %v1331_v63 = vcombine.low %v6451_v59, %v6454_v60  ;;  %v1332_v1 = vcombine.high %v6451_v59, %v6454_v60  ;;  %v5025_v59 = vld [vmem:[#allocation10] ss:$0 sm:$0xff] }
 0x725   :  { %v1334_v3 = vcombine.high %v6445_v57, %v6448_v58 }
 0x728   :  { %v1934_v5 = vpop.f32.mrb[28].mxu1  ;;  %v1980_v6 = vpop.f32.mrb[16].mxu0 }
 0x729   :  { %v1935_v7 = vadd.f32 %v1934_v5, %v6268_v23  ;;  %v5253_v8 = vpop.f32.mrb[29].mxu1  ;;  %v5259_v9 = vpop.f32.mrb[17].mxu0  ;;  %v1981_v34 = vadd.f32 %v1980_v6, %v6268_v23 }
 0x72a   :  { %v1937_v10 = vpop.f32.mrb[30].mxu1  ;;  %v1983_v11 = vpop.f32.mrb[18].mxu0 }
 0x72b   :  { %v5254_v13 = vpop.f32.mrb[31].mxu1  ;;  %v5260_v14 = vpop.f32.mrb[19].mxu0  ;;  %v1992_v16 = vsel %vm777_vm2, %v1935_v7, -inf  ;;  %v1995_v17 = vsel %vm777_vm2, %v1981_v34, -inf }
 0x72c   :  { %1993 = vmax.xlane.f32.xlu0 %v1992_v16 }
 0x730   :  { %1996 = vmax.xlane.f32.xlu0 %v1995_v17 }
 0x735   :  { %1648 = vrot.lane.b32.xlu1 %v6294_v55, %s5895_s5 }
 0x739   :  { %1650 = vrot.lane.b32.xlu1 %v6302_v4, %s5895_s5 }
 0x7b1   :  { %v1991_v2 = vpop.xlane.xlu1 %1990  ;;  %v1988_v12 = vpop.xlane.xlu0 %1987 }
 0x7b2   :  { %v1999_v18 = vsub.f32 %v1889_v51, %v1991_v2  ;;  %v1998_v19 = vsub.f32 %v1843_v50, %v1988_v12 }
 0x7b4   :  { %v2004_v20 = vmul.f32 1.442695, %v1999_v18  ;;  %v2002_v23 = vmul.f32 1.442695, %v1998_v19 }
 0x7b6   :  { %5536 = vpow2.f32 %v2004_v20 }
 0x7b7   :  { %5538 = vpow2.f32 %v2002_v23 }
 0x7b9   :  { %v1994_v4 = vpop.xlane.xlu0 %1993 }
 0x7ba   :  { %v2000_v28 = vsub.f32 %v1935_v7, %v1994_v4 }
 0x7bc   :  { %v2006_v30 = vmul.f32 1.442695, %v2000_v28 }
 0x7bd   :  { %v1997_v26 = vpop.xlane.xlu0 %1996 }
 0x7be   :  { %v2001_v27 = vsub.f32 %v1981_v34, %v1997_v26 }
 0x7c0   :  { %v6474_v21 = vpop.eup %5536  ;;  %v2008_v29 = vmul.f32 1.442695, %v2001_v27 }
 0x7c1   :  { %v6476_v22 = vpop.eup %5538  ;;  %v2013_v25 = vsel %vm777_vm2, %v6474_v21, 0.0 }
 0x7c2   :  { %2014 = vadd.xlane.f32.xlu1 %v2013_v25  ;;  %v2010_v55 = vsel %vm777_vm2, %v6476_v22, 0.0  ;;  %5540 = vpow2.f32 %v2008_v29 }
 0x7c3   :  { %2011 = vadd.xlane.f32.xlu0 %v2010_v55  ;;  %5542 = vpow2.f32 %v2006_v30 }
 0x7cc   :  { %v6486_v31 = vpop.eup %5540 }
 0x7cd   :  { %v6488_v32 = vpop.eup %5542  ;;  %v2019_v33 = vsel %vm777_vm2, %v6486_v31, 0.0 }
 0x7d3   :  { %1652 = vrot.lane.b32.xlu1 %v6298_v42, %s5895_s5  ;;  %v2016_v42 = vsel %vm777_vm2, %v6488_v32, 0.0 }
 0x7d9   :  { %1646 = vrot.lane.b32.xlu0 %v6182_v39, %s5895_s5  ;;  %v1649_v39 = vpop.permute.xlu1 %1648 }
 0x7dd   :  { %v1651_v35 = vpop.permute.xlu1 %1650 }
 0x7f7   :  { %2020 = vadd.xlane.f32.xlu1 %v2019_v33 }
 0x7f8   :  { %2017 = vadd.xlane.f32.xlu0 %v2016_v42 }
 0x84f   :  { %v2015_v37 = vpop.xlane.xlu1 %2014 }
 0x850   :  { %v2012_v38 = vpop.xlane.xlu0 %2011  ;;  %5544 = vrcp.f32 %v2015_v37 }
 0x851   :  { %5546 = vrcp.f32 %v2012_v38 }
 0x853   :  { %v1653_v40 = vpop.permute.xlu1 %1652 }
 0x854   :  { %v1674_v44 = vcombine.low %v1649_v39, %v1653_v40  ;;  %v1675_v45 = vcombine.high %v1649_v39, %v1653_v40  ;;  %v1647_v46 = vpop.permute.xlu0 %1646 }
 0x855   :  { %v1658_v47 = vcombine.low %v1647_v46, %v1651_v35  ;;  %v1659_v48 = vcombine.high %v1647_v46, %v1651_v35 }
 0x856   :  { %v1682_v49 = vrot.slane %v1674_v44, %v6208_v53  ;;  %v1689_v50 = vrot.slane %v1675_v45, %v6208_v53 }
 0x857   :  { %v1666_v51 = vrot.slane %v1658_v47, %v6208_v53  ;;  %v1673_v52 = vrot.slane %v1659_v48, %v6208_v53 }
 0x859   :  { %v1690_v54 = vcombine.low %v1666_v51, %v1682_v49  ;;  %v1691_v41 = vcombine.high %v1666_v51, %v1682_v49  ;;  %v1706_v56 = vcombine.low %v1673_v52, %v1689_v50  ;;  %v1707_v36 = vcombine.high %v1673_v52, %v1689_v50 }
 0x85a   :  { %v5545_v19 = vpop.eup %5544 }
 0x85b   :  { %v1698_v61 = vrot.slane %v1690_v54, %v6218_v0  ;;  %v1705_v24 = vrot.slane %v1691_v41, %v6218_v0  ;;  %v1714_v62 = vrot.slane %v1706_v56, %v6218_v0  ;;  %v1721_v5 = vrot.slane %v1707_v36, %v6218_v0  ;;  %v5547_v25 = vpop.eup %5546 }
 0x85c   :  { %v2027_v28 = vmul.f32 %v5545_v19, %v6474_v21  ;;  %v2026_v29 = vmul.f32 %v5547_v25, %v6476_v22 }
 0x85d   :  { %v1726_v6 = vcombine.low %v1698_v61, %v1705_v24  ;;  %v5013_v7 = vcombine.high %v1698_v61, %v1705_v24  ;;  %v1742_v8 = vcombine.low %v1714_v62, %v1721_v5  ;;  %v5014_v9 = vcombine.high %v1714_v62, %v1721_v5 }
 0x85e   :  { %v2030_v38 = vpack.c.bf16 %v2026_v29, %v2026_v29  ;;  %v2031_v40 = vpack.c.bf16 %v2027_v28, %v2027_v28 }
 0x85f   :  { %v1733_v10 = vrot.slane %v1726_v6, %v6208_v53  ;;  %v1741_v11 = vrot.slane %v5013_v7, %v6208_v53  ;;  %v1749_v34 = vrot.slane %v1742_v8, %v6208_v53  ;;  %v1757_v13 = vrot.slane %v5014_v9, %v6208_v53 }
 0x861   :  { %v1758_v14 = vcombine.low %v1733_v10, %v1741_v11  ;;  %v1759_v16 = vcombine.high %v1733_v10, %v1741_v11  ;;  %v1774_v17 = vcombine.low %v1749_v34, %v1757_v13  ;;  %v1775_v2 = vcombine.high %v1749_v34, %v1757_v13 }
 0x863   :  { %v1766_v12 = vrot.slane %v1758_v14, %v6218_v0  ;;  %v1773_v18 = vrot.slane %v1759_v16, %v6218_v0  ;;  %v1782_v20 = vrot.slane %v1774_v17, %v6218_v0  ;;  %v1789_v23 = vrot.slane %v1775_v2, %v6218_v0 }
 0x865   :  { %v1790_v55 = vcombine.low %v1766_v12, %v1782_v20  ;;  %v1791_v4 = vcombine.high %v1766_v12, %v1782_v20  ;;  %v1792_v26 = vcombine.low %v1773_v18, %v1789_v23  ;;  %v1793_v27 = vcombine.high %v1773_v18, %v1789_v23 }
 0x867   :  { %v2034_v30 = vpack.c.bf16 %v1790_v55, %v1790_v55  ;;  %v2035_v33 = vpack.c.bf16 %v1791_v4, %v1791_v4  ;;  %v2036_v35 = vpack.c.bf16 %v1792_v26, %v1792_v26  ;;  %v2037_v37 = vpack.c.bf16 %v1793_v27, %v1793_v27 }
 0x869   :  { %v2042_v42 = vsel %vm1017_vm3, %v2034_v30, 0  ;;  %v2088_v39 = vsel %vm1017_vm3, %v2035_v33, 0  ;;  %v2134_v21 = vsel %vm1017_vm3, %v2036_v35, 0  ;;  %v2180_v22 = vsel %vm1017_vm3, %v2037_v37, 0  ;;  %v5498_v33 = vld [vmem:[%s7146_s30] sm:$0xff]  }
 0x86a   :  { %5262 = vmatpush3.bf16.msra.mxu1 %v2042_v42  ;;  %5268 = vmatpush3.bf16.msra.mxu0 %v2088_v39 }
 0x86b   :  { %5273 = vmatprep.subr.bf16.mxu1 %v5887_v15  ;;  %5279 = vmatprep.subr.bf16.mxu0 %v5887_v15 }
 0x86d   :  { %5264 = vmatmul.mubr.msk.bf16.vlgmr.msra.gmra.mrb[32].mxu1 %vm777_vm2, %v2030_v38  ;;  %5270 = vmatmul.mubr.msk.bf16.vlgmr.msra.gmra.mrb[20].mxu0 %vm777_vm2, %v2031_v40 }
 0x86e   :  { %5274 = vmatpush3.bf16.msra.mxu1 %v2134_v21  ;;  %5280 = vmatpush3.bf16.msra.mxu0 %v2180_v22 }
 0x86f   :  { %5275 = vmatprep.mubr.msk.bf16.mxu1 %vm5888_vm1, %v5887_v15  ;;  %5281 = vmatprep.mubr.msk.bf16.mxu0 %vm5888_vm1, %v5887_v15 }
 0x870   :  { %5285 = vmatprep.subr.bf16.mxu1 %v5887_v15  ;;  %5293 = vmatprep.subr.bf16.mxu0 %v5887_v15 }
 0x884   :  { %v2021_v44 = vpop.xlane.xlu1 %2020 }
 0x885   :  { %5548 = vrcp.f32 %v2021_v44  ;;  %v2018_v45 = vpop.xlane.xlu0 %2017  ;;  %v5499_v44 = vld [vmem:[%s7146_s30 + $0x8] sm:$0xff]  }
 0x886   :  { %5550 = vrcp.f32 %v2018_v45 }
 0x88f   :  { %v5549_v46 = vpop.eup %5548 }
 0x890   :  { %v5551_v47 = vpop.eup %5550  ;;  %v2029_v48 = vmul.f32 %v5549_v46, %v6486_v31 }
 0x891   :  { %v2028_v49 = vmul.f32 %v5551_v47, %v6488_v32 }
 0x892   :  { %v2033_v50 = vpack.c.bf16 %v2029_v48, %v2029_v48 }
 0x893   :  { %v2032_v51 = vpack.c.bf16 %v2028_v49, %v2028_v49 }
 0x894   :  { %5282 = vmatmul.mubr.msk.bf16.vlgmr.msra.gmra.mrb[24].mxu0 %vm777_vm2, %v2033_v50 }
 0x895   :  { %5276 = vmatmul.mubr.msk.bf16.vlgmr.msra.gmra.mrb[36].mxu1 %vm777_vm2, %v2032_v51  ;;  %5297 = vmatprep.mubr.msk.bf16.mxu0 %vm5888_vm1, %v5887_v15 }
 0x896   :  { %5289 = vmatprep.mubr.msk.bf16.mxu1 %vm5888_vm1, %v5887_v15  ;;  %5286 = vmatpush3.bf16.msra.mxu1 %v5498_v33 }
 0x897   :  { %5287 = vmatprep.subr.bf16.mxu1 %v5887_v15 }
 0x89a   :  { %5288 = vmatpush3.bf16.msra.mxu1 %v5499_v44 }
 0x89b   :  { %5301 = vmatprep.subr.bf16.mxu1 %v5887_v15 }
 0x940   :  { %v2078_v52 = vpop.f32.mrb[32].mxu1  ;;  %v2124_v54 = vpop.f32.mrb[20].mxu0 }
 0x941   :  { %v5265_v41 = vpop.f32.mrb[33].mxu1  ;;  %v5271_v56 = vpop.f32.mrb[21].mxu0 }
 0x942   :  { %v2081_v36 = vpop.f32.mrb[34].mxu1  ;;  %v2127_v31 = vpop.f32.mrb[22].mxu0 }
 0x943   :  { %v5266_v61 = vpop.f32.mrb[35].mxu1  ;;  %v5272_v32 = vpop.f32.mrb[23].mxu0 }
 0x967   :  { %v2216_v24 = vpop.f32.mrb[24].mxu0 }
 0x968   :  { %v2170_v62 = vpop.f32.mrb[36].mxu1  ;;  %v2238_v5 = vcombine.low %v2124_v54, %v2216_v24  ;;  %v2239_v6 = vcombine.high %v2124_v54, %v2216_v24  ;;  %v5283_v7 = vpop.f32.mrb[25].mxu0 }
 0x969   :  { %v2222_v8 = vcombine.low %v2078_v52, %v2170_v62  ;;  %v2223_v9 = vcombine.high %v2078_v52, %v2170_v62  ;;  %v5277_v10 = vpop.f32.mrb[37].mxu1  ;;  %v2219_v11 = vpop.f32.mrb[26].mxu0 }
 0x96a   :  { %v2246_v34 = vrot.slane %v2238_v5, %v6208_v53  ;;  %v2253_v13 = vrot.slane %v2239_v6, %v6208_v53  ;;  %v2173_v14 = vpop.f32.mrb[38].mxu1  ;;  %v5284_v16 = vpop.f32.mrb[27].mxu0 }
 0x96b   :  { %v2230_v17 = vrot.slane %v2222_v8, %v6208_v53  ;;  %v2237_v2 = vrot.slane %v2223_v9, %v6208_v53  ;;  %v5278_v12 = vpop.f32.mrb[39].mxu1 }
 0x96d   :  { %v2254_v18 = vcombine.low %v2230_v17, %v2246_v34  ;;  %v2255_v19 = vcombine.high %v2230_v17, %v2246_v34  ;;  %v2270_v20 = vcombine.low %v2237_v2, %v2253_v13  ;;  %v2271_v23 = vcombine.high %v2237_v2, %v2253_v13  ;;  %v5596_v34 = vld [vmem:[%s7144_s26] sm:$0xff]  ;;  %v5597_v17 = vld [vmem:[%s7144_s26 + $0x8] sm:$0xff] }
 0x96f   :  { %v2262_v25 = vrot.slane %v2254_v18, %v6218_v0  ;;  %v2269_v55 = vrot.slane %v2255_v19, %v6218_v0  ;;  %v2278_v4 = vrot.slane %v2270_v20, %v6218_v0  ;;  %v2285_v26 = vrot.slane %v2271_v23, %v6218_v0  ;;  %v5500_v19 = vld [vmem:[%s7113_s13] sm:$0xff]   ;;  %v5501_v20 = vld [vmem:[%s7113_s13 + $0x8] sm:$0xff]  }
 0x970   :  { %v205_v23 = vld [vmem:[%s7147_s3] sm:$0xff] }
 0x971   :  { %v2290_v27 = vcombine.low %v2262_v25, %v2269_v55  ;;  %v5023_v28 = vcombine.high %v2262_v25, %v2269_v55  ;;  %v2306_v29 = vcombine.low %v2278_v4, %v2285_v26  ;;  %v5024_v30 = vcombine.high %v2278_v4, %v2285_v26  ;;  %v206_v25 = vld [vmem:[%s7147_s3 + $0x8] sm:$0xff] }
 0x972   :  { %v2550_v55 = vpack.c.bf16 %v206_v25, %v205_v23 }
 0x973   :  { %v2297_v42 = vrot.slane %v2290_v27, %v6208_v53  ;;  %v2305_v39 = vrot.slane %v5023_v28, %v6208_v53  ;;  %v2313_v35 = vrot.slane %v2306_v29, %v6208_v53  ;;  %v2321_v37 = vrot.slane %v5024_v30, %v6208_v53 }
 0x975   :  { %v2323_v38 = vcombine.high %v2297_v42, %v2305_v39  ;;  %v2339_v40 = vcombine.high %v2313_v35, %v2321_v37  ;;  %v2322_v21 = vcombine.low %v2297_v42, %v2305_v39  ;;  %v2338_v22 = vcombine.low %v2313_v35, %v2321_v37  ;;  %v5502_v37 = vld [vmem:[%s7111_s11] sm:$0xff]  }
 0x976   :  { %5294 = vmatpush3.bf16.msra.mxu0 %v5502_v37 }
 0x977   :  { %v2337_v45 = vrot.slane %v2323_v38, %v6218_v0  ;;  %v2353_v46 = vrot.slane %v2339_v40, %v6218_v0  ;;  %v2330_v47 = vrot.slane %v2322_v21, %v6218_v0  ;;  %v2346_v48 = vrot.slane %v2338_v22, %v6218_v0  ;;  %v5503_v38 = vld [vmem:[%s7111_s11 + $0x8] sm:$0xff]   ;;  %5295 = vmatprep.subr.bf16.mxu0 %v5887_v15  ;;  %v5035_v40 = vld [vmem:[#allocation16] ss:$0 sm:$0xff] }
 0x979   :  { %v2356_v49 = vcombine.low %v2337_v45, %v2353_v46  ;;  %v2355_v50 = vcombine.high %v2330_v47, %v2346_v48  ;;  %v2354_v51 = vcombine.low %v2330_v47, %v2346_v48  ;;  %v2357_v52 = vcombine.high %v2337_v45, %v2353_v46 }
 0x97a   :  { %5296 = vmatpush3.bf16.msra.mxu0 %v5503_v38 }
 0x97b   :  { %v5471_v54 = vpack.i.bf16 %v2356_v49, %v1333_v43  ;;  %v5466_v41 = vpack.i.bf16 %v2355_v50, %v1332_v1  ;;  %v5476_v56 = vpack.i.bf16 %v2357_v52, %v1334_v3  ;;  %5309 = vmatprep.subr.bf16.mxu0 %v5887_v15 }
 0x97d   :  { %5472 = vrot.lane.b32.xlu1 %v5471_v54, %s5896_s25  ;;  %5467 = vrot.lane.b32.xlu0 %v5466_v41, %s5897_s28 }
 0x981   :  { %5477 = vrot.lane.b32.xlu0 %v5476_v56, %s5898_s9 }
 0x9ef   :  { %v5473_v36 = vpop.permute.xlu1 %5472  ;;  %v5468_v31 = vpop.permute.xlu0 %5467 }
 0x9f0   :  { %v5470_v43 = vunpack.i.h.bf16 %v5468_v31  ;;  %v5469_v61 = vunpack.i.l.bf16 %v5468_v31  ;;  %v5475_v32 = vunpack.i.h.bf16 %v5473_v36  ;;  %v5474_v24 = vunpack.i.l.bf16 %v5473_v36  ;;  %v5029_v36 = vld [vmem:[#allocation11] ss:$0 sm:$0xff] }
 0x9f2   :  { %v1347_v57 = vsel %vm777_vm2, %v1331_v63, %v5469_v61  ;;  %v2370_v58 = vsel %vm777_vm2, %v2354_v51, %v5470_v43 }
 0x9f3   :  { %v5478_v1 = vpop.permute.xlu0 %5477  ;;  %v1349_v5 = vsel %vm1348_vm4, %v1347_v57, %v5474_v24  ;;  %v2371_v6 = vsel %vm1348_vm4, %v2370_v58, %v5475_v32  ;;  %v5030_v32 = vld [vmem:[#allocation13] ss:$0 sm:$0xff] }
 0x9f4   :  { %v5480_v3 = vunpack.i.h.bf16 %v5478_v1  ;;  %v5479_v62 = vunpack.i.l.bf16 %v5478_v1 }
 0x9f6   :  { %v1351_v7 = vsel %vm1350_vm5, %v1349_v5, %v5479_v62  ;;  %v2372_v8 = vsel %vm1350_vm5, %v2371_v6, %v5480_v3 }
 0x9f7   :  { %v2373_v9 = vpack.c.bf16 %v2372_v8, %v1351_v7 }
 0x9f9   :  { %5290 = vmatmul.mubr.msk.bf16.vlgmr.msra.gmra.mrb[40].mxu1 %vm210_vm0, %v2373_v9 }
 0x9fa   :  { %5305 = vmatprep.mubr.msk.bf16.mxu1 %vm5888_vm1, %v5887_v15  ;;  %5302 = vmatpush3.bf16.msra.mxu1 %v5500_v19 }
 0x9fb   :  { %5303 = vmatprep.subr.bf16.mxu1 %v5887_v15 }
 0x9fe   :  { %5304 = vmatpush3.bf16.msra.mxu1 %v5501_v20 }
 0x9ff   :  { %5315 = vmatprep.subr.bf16.mxu1 %v5887_v15 }
 0xa01   :  { %5306 = vmatmul.mubr.msk.bf16.vlgmr.msra.gmra.mrb[44].mxu1 %vm210_vm0, %v2550_v55 }
 0xa02   :  { %5317 = vmatprep.mubr.msk.bf16.mxu1 %vm5888_vm1, %v5887_v15 }
 0xacc   :  { %v2429_v60 = vpop.f32.mrb[40].mxu1 }
 0xacd   :  { %v2430_v63 = vadd.f32 %v5025_v59, %v2429_v60  ;;  %v5291_v10 = vpop.f32.mrb[41].mxu1 }
 0xace   :  { %v2432_v11 = vpop.f32.mrb[42].mxu1 }
 0xacf   :  { %v6585_v13 = vadd.f32 %v5596_v34, %v2430_v63  ;;  %v2433_v14 = vadd.f32 %v5025_v59, %v2432_v11  ;;  %v5292_v16 = vpop.f32.mrb[43].mxu1 }
 0xad1   :  { %v6590_v2 = vadd.f32 %v5597_v17, %v2433_v14  ;;  %v2440_v12 = vsel %vm210_vm0, %v6585_v13, 0.0 }
 0xad2   :  { %2441 = vadd.xlane.f32.xlu1 %v2440_v12 }
 0xad3   :  { %v2443_v18 = vsel %vm210_vm0, %v6590_v2, 0.0 }
 0xad4   :  { %2444 = vadd.xlane.f32.xlu0 %v2443_v18  ;;  %v2611_v21 = vpop.f32.mrb[44].mxu1 }
 0xad5   :  { %v6625_v22 = vadd.f32 %v5035_v40, %v2611_v21  ;;  %v5307_v44 = vpop.f32.mrb[45].mxu1 }
 0xad6   :  { %v2614_v45 = vpop.f32.mrb[46].mxu1 }
 0xad7   :  { %v6631_v46 = vadd.f32 %v5035_v40, %v2614_v45  ;;  %v5308_v47 = vpop.f32.mrb[47].mxu1 }
 0xae3   :  { %2770 = vrot.lane.b32.xlu1 %v6625_v22, %s5890_s12 }
 0xae7   :  { %2776 = vrot.lane.b32.xlu1 %v6625_v22, %s5891_s29 }
 0xb5f   :  { %v2442_v4 = vpop.xlane.xlu1 %2441 }
 0xb60   :  { %v2446_v26 = vmul.f32 0.03125, %v2442_v4 }
 0xb61   :  { %v2445_v27 = vpop.xlane.xlu0 %2444 }
 0xb62   :  { %v2448_v28 = vsub.f32 %v6585_v13, %v2446_v26  ;;  %v2447_v29 = vmul.f32 0.03125, %v2445_v27 }
 0xb63   :  { %v6638_v3 = vpop.permute.xlu1 %2770 }
 0xb64   :  { %v2449_v30 = vsub.f32 %v6590_v2, %v2447_v29  ;;  %v2450_v33 = vmul.f32 %v2448_v28, %v2448_v28 }
 0xb66   :  { %v2452_v42 = vsel %vm210_vm0, %v2450_v33, 0.0  ;;  %v2451_v39 = vmul.f32 %v2449_v30, %v2449_v30 }
 0xb67   :  { %2453 = vadd.xlane.f32.xlu0 %v2452_v42  ;;  %v6642_v5 = vpop.permute.xlu1 %2776 }
 0xb68   :  { %v2455_v35 = vsel %vm210_vm0, %v2451_v39, 0.0  ;;  %v2795_v8 = vcombine.low %v6638_v3, %v6642_v5  ;;  %v2796_v9 = vcombine.high %v6638_v3, %v6642_v5 }
 0xb6a   :  { %v2803_v63 = vrot.slane %v2795_v8, %v6208_v53  ;;  %v2810_v10 = vrot.slane %v2796_v9, %v6208_v53 }
 0xb6b   :  { %2456 = vadd.xlane.f32.xlu0 %v2455_v35 }
 0xb81   :  { %2773 = vrot.lane.b32.xlu0 %v6625_v22, %s5889_s7 }
 0xbf4   :  { %v2454_v48 = vpop.xlane.xlu0 %2453 }
 0xbf5   :  { %v2458_v49 = vmul.f32 0.03125, %v2454_v48 }
 0xbf7   :  { %v2460_v50 = vadd.f32 1e-05, %v2458_v49 }
 0xbf8   :  { %v2457_v51 = vpop.xlane.xlu0 %2456 }
 0xbf9   :  { %5552 = vrsqrt.f32 %v2460_v50  ;;  %v2459_v52 = vmul.f32 0.03125, %v2457_v51  ;;  %v5031_v51 = vld [vmem:[#allocation14] ss:$0 sm:$0xff] }
 0xbfb   :  { %v2461_v54 = vadd.f32 1e-05, %v2459_v52 }
 0xbfc   :  { %v6640_v62 = vpop.permute.xlu0 %2773 }
 0xbfd   :  { %5554 = vrsqrt.f32 %v2461_v54  ;;  %v2779_v6 = vcombine.low %v6625_v22, %v6640_v62  ;;  %v2780_v7 = vcombine.high %v6625_v22, %v6640_v62 }
 0xbff   :  { %v2787_v59 = vrot.slane %v2779_v6, %v6208_v53  ;;  %v2794_v60 = vrot.slane %v2780_v7, %v6208_v53 }
 0xc01   :  { %v2811_v11 = vcombine.low %v2787_v59, %v2803_v63  ;;  %v2812_v34 = vcombine.high %v2787_v59, %v2803_v63  ;;  %v2827_v14 = vcombine.low %v2794_v60, %v2810_v10  ;;  %v2828_v16 = vcombine.high %v2794_v60, %v2810_v10 }
 0xc03   :  { %v5553_v41 = vpop.eup %5552  ;;  %v2819_v17 = vrot.slane %v2811_v11, %v6218_v0  ;;  %v2826_v12 = vrot.slane %v2812_v34, %v6218_v0  ;;  %v2835_v18 = vrot.slane %v2827_v14, %v6218_v0  ;;  %v2842_v19 = vrot.slane %v2828_v16, %v6218_v0 }
 0xc04   :  { %v2464_v56 = vmul.f32 %v5553_v41, %v2448_v28 }
 0xc05   :  { %v2847_v20 = vcombine.low %v2819_v17, %v2826_v12  ;;  %v5041_v23 = vcombine.high %v2819_v17, %v2826_v12  ;;  %v2863_v25 = vcombine.low %v2835_v18, %v2842_v19  ;;  %v5042_v55 = vcombine.high %v2835_v18, %v2842_v19 }
 0xc06   :  { %v2472_v43 = vmul.f32 %v5029_v36, %v2464_v56 }
 0xc07   :  { %v5555_v31 = vpop.eup %5554  ;;  %v2854_v4 = vrot.slane %v2847_v20, %v6208_v53  ;;  %v2862_v26 = vrot.slane %v5041_v23, %v6208_v53  ;;  %v2870_v27 = vrot.slane %v2863_v25, %v6208_v53  ;;  %v2878_v28 = vrot.slane %v5042_v55, %v6208_v53 }
 0xc08   :  { %v2465_v61 = vmul.f32 %v5555_v31, %v2449_v30  ;;  %v2480_v57 = vadd.f32 %v5030_v32, %v2472_v43 }
 0xc09   :  { %v2879_v29 = vcombine.low %v2854_v4, %v2862_v26  ;;  %v2895_v30 = vcombine.low %v2870_v27, %v2878_v28  ;;  %v2880_v33 = vcombine.high %v2854_v4, %v2862_v26  ;;  %v2896_v42 = vcombine.high %v2870_v27, %v2878_v28 }
 0xc0a   :  { %v2473_v24 = vmul.f32 %v5029_v36, %v2465_v61 }
 0xc0b   :  { %v2887_v39 = vrot.slane %v2879_v29, %v6218_v0  ;;  %v2903_v35 = vrot.slane %v2895_v30, %v6218_v0  ;;  %v2894_v37 = vrot.slane %v2880_v33, %v6218_v0  ;;  %v2910_v38 = vrot.slane %v2896_v42, %v6218_v0 }
 0xc0c   :  { %v2481_v58 = vadd.f32 %v5030_v32, %v2473_v24 }
 0xc0d   :  { %v2911_v40 = vcombine.low %v2887_v39, %v2903_v35  ;;  %v2912_v21 = vcombine.high %v2887_v39, %v2903_v35  ;;  %v6668_v44 = vcombine.low %v2894_v37, %v2910_v38  ;;  %v6670_v45 = vcombine.high %v2894_v37, %v2910_v38 }
 0xc0e   :  { %v2482_v1 = vpack.c.bf16 %v2481_v58, %v2480_v57 }
 0xc0f   :  { %v3067_v47 = vpack.c.bf16 %v2911_v40, %v2911_v40  ;;  %v3068_v48 = vpack.c.bf16 %v2912_v21, %v2912_v21  ;;  %v3069_v39 = vpack.c.bf16 %v6668_v44, %v6668_v44  ;;  %v3070_v35 = vpack.c.bf16 %v6670_v45, %v6670_v45 }
 0xc10   :  { %5298 = vmatmul.mubr.msk.bf16.vlgmr.msra.gmra.mrb[28].mxu0 %vm210_vm0, %v2482_v1 }
 0xc11   :  { %5311 = vmatprep.mubr.msk.bf16.mxu0 %vm5888_vm1, %v5887_v15  ;;  %v3075_v49 = vsel %vm777_vm2, %v3067_v47, 0  ;;  %v3121_v50 = vsel %vm777_vm2, %v3068_v48, 0  ;;  %v3167_v47 = vsel %vm777_vm2, %v3069_v39, 0  ;;  %v3213_v48 = vsel %vm777_vm2, %v3070_v35, 0 }
 0xc12   :  { %5310 = vmatpush3.bf16.xpose.msra.mxu0 %v3075_v49  ;;  %5316 = vmatpush3.bf16.xpose.msra.mxu1 %v3121_v50 }
 0xc13   :  { %5321 = vmatprep.subr.bf16.mxu0 %v5887_v15  ;;  %5327 = vmatprep.subr.bf16.mxu1 %v5887_v15 }
 0xce3   :  { %v2543_v52 = vpop.f32.mrb[28].mxu0 }
 0xce4   :  { %v2544_v54 = vadd.f32 %v5031_v51, %v2543_v52  ;;  %v5299_v41 = vpop.f32.mrb[29].mxu0 }
 0xce5   :  { %v2546_v56 = vpop.f32.mrb[30].mxu0 }
 0xce6   :  { %v6676_v36 = vadd.f32 %v5031_v51, %v2546_v56  ;;  %v5300_v31 = vpop.f32.mrb[31].mxu0  ;;  %2630 = vrot.lane.b32.xlu0 %v2544_v54, %s5891_s29  ;;  %2624 = vrot.lane.b32.xlu1 %v2544_v54, %s5890_s12 }
 0xcea   :  { %2627 = vrot.lane.b32.xlu1 %v2544_v54, %s5889_s7 }
 0xd58   :  { %v2631_v43 = vpop.permute.xlu0 %2630  ;;  %v2625_v61 = vpop.permute.xlu1 %2624 }
 0xd59   :  { %v2649_v32 = vcombine.low %v2625_v61, %v2631_v43  ;;  %v2650_v24 = vcombine.high %v2625_v61, %v2631_v43 }
 0xd5b   :  { %v2657_v6 = vrot.slane %v2649_v32, %v6208_v53  ;;  %v2664_v7 = vrot.slane %v2650_v24, %v6208_v53 }
 0xd5c   :  { %v2628_v57 = vpop.permute.xlu1 %2627 }
 0xd5d   :  { %v2633_v58 = vcombine.low %v2544_v54, %v2628_v57  ;;  %v2634_v1 = vcombine.high %v2544_v54, %v2628_v57 }
 0xd5f   :  { %v2641_v8 = vrot.slane %v2633_v58, %v6208_v53  ;;  %v2648_v9 = vrot.slane %v2634_v1, %v6208_v53 }
 0xd61   :  { %v2665_v59 = vcombine.low %v2641_v8, %v2657_v6  ;;  %v2666_v60 = vcombine.high %v2641_v8, %v2657_v6  ;;  %v2681_v63 = vcombine.low %v2648_v9, %v2664_v7  ;;  %v2682_v10 = vcombine.high %v2648_v9, %v2664_v7 }
 0xd63   :  { %v2673_v11 = vrot.slane %v2665_v59, %v6218_v0  ;;  %v2680_v34 = vrot.slane %v2666_v60, %v6218_v0  ;;  %v2689_v14 = vrot.slane %v2681_v63, %v6218_v0  ;;  %v2696_v16 = vrot.slane %v2682_v10, %v6218_v0 }
 0xd65   :  { %v2701_v17 = vcombine.low %v2673_v11, %v2680_v34  ;;  %v5039_v12 = vcombine.high %v2673_v11, %v2680_v34  ;;  %v2717_v18 = vcombine.low %v2689_v14, %v2696_v16  ;;  %v5040_v19 = vcombine.high %v2689_v14, %v2696_v16 }
 0xd67   :  { %v2708_v20 = vrot.slane %v2701_v17, %v6208_v53  ;;  %v2716_v23 = vrot.slane %v5039_v12, %v6208_v53  ;;  %v2724_v25 = vrot.slane %v2717_v18, %v6208_v53  ;;  %v2732_v55 = vrot.slane %v5040_v19, %v6208_v53 }
 0xd69   :  { %v2733_v4 = vcombine.low %v2708_v20, %v2716_v23  ;;  %v2749_v26 = vcombine.low %v2724_v25, %v2732_v55  ;;  %v2734_v27 = vcombine.high %v2708_v20, %v2716_v23  ;;  %v2750_v28 = vcombine.high %v2724_v25, %v2732_v55 }
 0xd6b   :  { %v2741_v29 = vrot.slane %v2733_v4, %v6218_v0  ;;  %v2757_v30 = vrot.slane %v2749_v26, %v6218_v0  ;;  %v2748_v40 = vrot.slane %v2734_v27, %v6218_v0  ;;  %v2764_v21 = vrot.slane %v2750_v28, %v6218_v0 }
 0xd6d   :  { %v2765_v33 = vcombine.low %v2741_v29, %v2757_v30  ;;  %v2766_v42 = vcombine.high %v2741_v29, %v2757_v30  ;;  %v2767_v44 = vcombine.low %v2748_v40, %v2764_v21  ;;  %v2768_v45 = vcombine.high %v2748_v40, %v2764_v21 }
 0xd6f   :  { %v3063_v37 = vpack.c.bf16 %v2765_v33, %v2765_v33  ;;  %v3064_v38 = vpack.c.bf16 %v2766_v42, %v2766_v42  ;;  %v3065_v49 = vpack.c.bf16 %v2767_v44, %v2767_v44  ;;  %v3066_v50 = vpack.c.bf16 %v2768_v45, %v2768_v45 }
 0xd71   :  { %5312 = vmatmul.mubr.msk.bf16.vlgmr.msra.gmra.mrb[32].mxu0 %vm777_vm2, %v3063_v37  ;;  %5318 = vmatmul.mubr.msk.bf16.vlgmr.msra.gmra.mrb[48].mxu1 %vm777_vm2, %v3064_v38 }
 0xd72   :  { %5322 = vmatpush3.bf16.xpose.msra.mxu0 %v3167_v47  ;;  %5328 = vmatpush3.bf16.xpose.msra.mxu1 %v3213_v48 }
 0xd73   :  { %5323 = vmatprep.mubr.msk.bf16.mxu0 %vm5888_vm1, %v5887_v15  ;;  %5329 = vmatprep.mubr.msk.bf16.mxu1 %vm5888_vm1, %v5887_v15 }
 0xd74   :  { %5333 = vmatprep.subr.bf16.mxu0 %v5887_v15  ;;  %5339 = vmatprep.subr.bf16.mxu1 %v5887_v15 }
 0xd79   :  { %5324 = vmatmul.mubr.msk.bf16.vlgmr.msra.gmra.mrb[36].mxu0 %vm777_vm2, %v3065_v49  ;;  %5330 = vmatmul.mubr.msk.bf16.vlgmr.msra.gmra.mrb[52].mxu1 %vm777_vm2, %v3066_v50 }
 0xd7a   :  { %5335 = vmatprep.mubr.msk.bf16.mxu0 %vm5888_vm1, %v5887_v15  ;;  %5341 = vmatprep.mubr.msk.bf16.mxu1 %vm5888_vm1, %v5887_v15 }
 0xe44   :  { %v3111_v51 = vpop.f32.mrb[32].mxu0  ;;  %v3157_v52 = vpop.f32.mrb[48].mxu1 }
 0xe45   :  { %v5313_v54 = vpop.f32.mrb[33].mxu0  ;;  %v5319_v41 = vpop.f32.mrb[49].mxu1  ;;  %v3255_v56 = vsel %vm777_vm2, %v3111_v51, -inf  ;;  %v3258_v31 = vsel %vm777_vm2, %v3157_v52, -inf }
 0xe46   :  { %3256 = vmax.xlane.f32.xlu1 %v3255_v56  ;;  %v3114_v43 = vpop.f32.mrb[34].mxu0  ;;  %3259 = vmax.xlane.f32.xlu0 %v3258_v31  ;;  %v3160_v61 = vpop.f32.mrb[50].mxu1 }
 0xe47   :  { %v5314_v32 = vpop.f32.mrb[35].mxu0  ;;  %v5320_v24 = vpop.f32.mrb[51].mxu1 }
 0xe4c   :  { %v3203_v57 = vpop.f32.mrb[36].mxu0  ;;  %v3249_v58 = vpop.f32.mrb[52].mxu1 }
 0xe4d   :  { %v5325_v1 = vpop.f32.mrb[37].mxu0  ;;  %v5331_v6 = vpop.f32.mrb[53].mxu1  ;;  %v3261_v7 = vsel %vm777_vm2, %v3203_v57, -inf  ;;  %v3264_v63 = vsel %vm777_vm2, %v3249_v58, -inf }
 0xe4e   :  { %v3206_v8 = vpop.f32.mrb[38].mxu0  ;;  %3262 = vmax.xlane.f32.xlu0 %v3261_v7  ;;  %v3252_v9 = vpop.f32.mrb[54].mxu1 }
 0xe4f   :  { %v5326_v59 = vpop.f32.mrb[39].mxu0  ;;  %v5332_v60 = vpop.f32.mrb[55].mxu1 }
 0xe52   :  { %3265 = vmax.xlane.f32.xlu0 %v3264_v63 }
 0xe57   :  { %2915 = vrot.lane.b32.xlu1 %v6625_v22, %s5892_s8 }
 0xe5b   :  { %2919 = vrot.lane.b32.xlu1 %v6640_v62, %s5892_s8 }
 0xe5f   :  { %2921 = vrot.lane.b32.xlu1 %v6642_v5, %s5892_s8 }
 0xe63   :  { %3792 = vrot.lane.b32.xlu1 %v6631_v46, %s5889_s7 }
 0xe67   :  { %3795 = vrot.lane.b32.xlu1 %v6631_v46, %s5891_s29 }
 0xe68   :  { %2917 = vrot.lane.b32.xlu0 %v6638_v3, %s5892_s8 }
 0xe6c   :  { %3789 = vrot.lane.b32.xlu0 %v6631_v46, %s5890_s12 }
 0xe70   :  { %3643 = vrot.lane.b32.xlu0 %v6676_v36, %s5890_s12  ;;  %s5899_s12 = smov [#allocation20]  }
 0xed3   :  { %v3257_v22 = vpop.xlane.xlu1 %3256  ;;  %v3260_v62 = vpop.xlane.xlu0 %3259 }
 0xed4   :  { %v3267_v10 = vsub.f32 %v3111_v51, %v3257_v22  ;;  %v3268_v11 = vsub.f32 %v3157_v52, %v3260_v62 }
 0xed6   :  { %v3271_v5 = vmul.f32 1.442695, %v3267_v10  ;;  %v3273_v34 = vmul.f32 1.442695, %v3268_v11 }
 0xed7   :  { %v2916_v14 = vpop.permute.xlu1 %2915 }
 0xed8   :  { %5556 = vpow2.f32 %v3271_v5 }
 0xed9   :  { %5558 = vpow2.f32 %v3273_v34 }
 0xedb   :  { %v3263_v16 = vpop.xlane.xlu0 %3262  ;;  %v2920_v12 = vpop.permute.xlu1 %2919 }
 0xedc   :  { %v3269_v17 = vsub.f32 %v3203_v57, %v3263_v16  ;;  %v2927_v23 = vcombine.low %v2916_v14, %v2920_v12  ;;  %v2928_v4 = vcombine.high %v2916_v14, %v2920_v12 }
 0xede   :  { %v3275_v18 = vmul.f32 1.442695, %v3269_v17  ;;  %v2935_v42 = vrot.slane %v2927_v23, %v6208_v53  ;;  %v2942_v35 = vrot.slane %v2928_v4, %v6208_v53 }
 0xedf   :  { %v3266_v3 = vpop.xlane.xlu0 %3265  ;;  %v2922_v26 = vpop.permute.xlu1 %2921 }
 0xee0   :  { %5560 = vpow2.f32 %v3275_v18  ;;  %v3270_v19 = vsub.f32 %v3249_v58, %v3266_v3 }
 0xee2   :  { %v6737_v20 = vpop.eup %5556  ;;  %v3277_v25 = vmul.f32 1.442695, %v3270_v19 }
 0xee3   :  { %v6739_v55 = vpop.eup %5558  ;;  %v2918_v27 = vpop.permute.xlu0 %2917  ;;  %v3279_v28 = vsel %vm777_vm2, %v6737_v20, 0.0 }
 0xee4   :  { %5562 = vpow2.f32 %v3277_v25  ;;  %v2943_v29 = vcombine.low %v2918_v27, %v2922_v26  ;;  %3280 = vadd.xlane.f32.xlu1 %v3279_v28  ;;  %v2944_v30 = vcombine.high %v2918_v27, %v2922_v26  ;;  %v3282_v33 = vsel %vm777_vm2, %v6739_v55, 0.0  ;;  %v6781_v16 = vpop.permute.xlu1 %3792 }
 0xee5   :  { %3283 = vadd.xlane.f32.xlu0 %v3282_v33  ;;  %v3798_v19 = vcombine.low %v6631_v46, %v6781_v16  ;;  %v3799_v23 = vcombine.high %v6631_v46, %v6781_v16 }
 0xee6   :  { %v2951_v39 = vrot.slane %v2943_v29, %v6208_v53  ;;  %v2958_v37 = vrot.slane %v2944_v30, %v6208_v53 }
 0xee7   :  { %v6785_v12 = vpop.permute.xlu0 %3789  ;;  %v3806_v26 = vrot.slane %v3798_v19, %v6208_v53  ;;  %v3813_v27 = vrot.slane %v3799_v23, %v6208_v53 }
 0xee8   :  { %v2959_v38 = vcombine.low %v2935_v42, %v2951_v39  ;;  %v2960_v40 = vcombine.high %v2935_v42, %v2951_v39  ;;  %v2975_v21 = vcombine.low %v2942_v35, %v2958_v37  ;;  %v2976_v47 = vcombine.high %v2942_v35, %v2958_v37  ;;  %v6783_v17 = vpop.permute.xlu1 %3795 }
 0xee9   :  { %v3814_v18 = vcombine.low %v6785_v12, %v6783_v17  ;;  %v3815_v3 = vcombine.high %v6785_v12, %v6783_v17 }
 0xeea   :  { %v6749_v48 = vpop.eup %5560  ;;  %v2967_v44 = vrot.slane %v2959_v38, %v6218_v0  ;;  %v2974_v45 = vrot.slane %v2960_v40, %v6218_v0  ;;  %v2983_v49 = vrot.slane %v2975_v21, %v6218_v0  ;;  %v2990_v50 = vrot.slane %v2976_v47, %v6218_v0 }
 0xeeb   :  { %v3285_v51 = vsel %vm777_vm2, %v6749_v48, 0.0  ;;  %v3822_v25 = vrot.slane %v3814_v18, %v6208_v53  ;;  %v3829_v4 = vrot.slane %v3815_v3, %v6208_v53  ;;  %v3644_v38 = vpop.permute.xlu0 %3643 }
 0xeec   :  { %v2995_v52 = vcombine.low %v2967_v44, %v2974_v45  ;;  %v5043_v54 = vcombine.high %v2967_v44, %v2974_v45  ;;  %3286 = vadd.xlane.f32.xlu1 %v3285_v51  ;;  %v3011_v41 = vcombine.low %v2983_v49, %v2990_v50  ;;  %v5044_v56 = vcombine.high %v2983_v49, %v2990_v50 }
 0xeed   :  { %v3830_v28 = vcombine.low %v3806_v26, %v3822_v25  ;;  %v3831_v29 = vcombine.high %v3806_v26, %v3822_v25  ;;  %v3846_v30 = vcombine.low %v3813_v27, %v3829_v4  ;;  %v3847_v33 = vcombine.high %v3813_v27, %v3829_v4 }
 0xeee   :  { %v6757_v31 = vpop.eup %5562  ;;  %v3002_v43 = vrot.slane %v2995_v52, %v6208_v53  ;;  %v3010_v61 = vrot.slane %v5043_v54, %v6208_v53  ;;  %v3018_v32 = vrot.slane %v3011_v41, %v6208_v53  ;;  %v3026_v24 = vrot.slane %v5044_v56, %v6208_v53 }
 0xeef   :  { %v3288_v57 = vsel %vm777_vm2, %v6757_v31, 0.0  ;;  %v3838_v42 = vrot.slane %v3830_v28, %v6218_v0  ;;  %v3845_v39 = vrot.slane %v3831_v29, %v6218_v0  ;;  %v3854_v35 = vrot.slane %v3846_v30, %v6218_v0 }
 0xef0   :  { %v3027_v58 = vcombine.low %v3002_v43, %v3010_v61  ;;  %3289 = vadd.xlane.f32.xlu0 %v3288_v57  ;;  %v3043_v1 = vcombine.low %v3018_v32, %v3026_v24  ;;  %v3028_v6 = vcombine.high %v3002_v43, %v3010_v61  ;;  %v3044_v8 = vcombine.high %v3018_v32, %v3026_v24 }
 0xef1   :  { %v3861_v37 = vrot.slane %v3847_v33, %v6218_v0  ;;  %v3866_v40 = vcombine.low %v3838_v42, %v3845_v39  ;;  %v5057_v47 = vcombine.high %v3838_v42, %v3845_v39 }
 0xef2   :  { %v3035_v7 = vrot.slane %v3027_v58, %v6218_v0  ;;  %v3051_v9 = vrot.slane %v3043_v1, %v6218_v0  ;;  %v3042_v59 = vrot.slane %v3028_v6, %v6218_v0  ;;  %v3058_v60 = vrot.slane %v3044_v8, %v6218_v0 }
 0xef3   :  { %v3882_v44 = vcombine.low %v3854_v35, %v3861_v37  ;;  %v5058_v45 = vcombine.high %v3854_v35, %v3861_v37  ;;  %v3873_v50 = vrot.slane %v3866_v40, %v6208_v53  ;;  %v3881_v51 = vrot.slane %v5057_v47, %v6208_v53 }
 0xef4   :  { %v3059_v63 = vcombine.low %v3035_v7, %v3051_v9  ;;  %v3060_v22 = vcombine.high %v3035_v7, %v3051_v9  ;;  %v6769_v62 = vcombine.low %v3042_v59, %v3058_v60  ;;  %v6771_v10 = vcombine.high %v3042_v59, %v3058_v60 }
 0xef5   :  { %v3889_v52 = vrot.slane %v3882_v44, %v6208_v53  ;;  %v3897_v54 = vrot.slane %v5058_v45, %v6208_v53  ;;  %v3898_v56 = vcombine.low %v3873_v50, %v3881_v51 }
 0xef6   :  { %v3303_v11 = vpack.c.bf16 %v3059_v63, %v3059_v63  ;;  %v3304_v5 = vpack.c.bf16 %v3060_v22, %v3060_v22  ;;  %v3305_v57 = vpack.c.bf16 %v6769_v62, %v6769_v62  ;;  %v3306_v59 = vpack.c.bf16 %v6771_v10, %v6771_v10 }
 0xef7   :  { %v3914_v43 = vcombine.low %v3889_v52, %v3897_v54  ;;  %v3906_v6 = vrot.slane %v3898_v56, %v6218_v0  ;;  %v3915_v26 = vcombine.high %v3889_v52, %v3897_v54 }
 0xef8   :  { %v3311_v34 = vsel %vm1017_vm3, %v3303_v11, 0  ;;  %v3357_v14 = vsel %vm1017_vm3, %v3304_v5, 0  ;;  %v3403_v22 = vsel %vm1017_vm3, %v3305_v57, 0  ;;  %v3449_v11 = vsel %vm1017_vm3, %v3306_v59, 0 }
 0xef9   :  { %5334 = vmatpush3.bf16.msra.mxu0 %v3311_v34  ;;  %5340 = vmatpush3.bf16.msra.mxu1 %v3357_v14  ;;  %v3922_v7 = vrot.slane %v3914_v43, %v6218_v0  ;;  %v3899_v14 = vcombine.high %v3873_v50, %v3881_v51  ;;  %v3929_v44 = vrot.slane %v3915_v26, %v6218_v0 }
 0xefa   :  { %5345 = vmatprep.subr.bf16.mxu0 %v5887_v15  ;;  %5351 = vmatprep.subr.bf16.mxu1 %v5887_v15 }
 0xefb   :  { %v3931_v4 = vcombine.high %v3906_v6, %v3922_v7  ;;  %v3913_v42 = vrot.slane %v3899_v14, %v6218_v0 }
 0xefd   :  { %3646 = vrot.lane.b32.xlu1 %v6676_v36, %s5889_s7  ;;  %v4087_v47 = vpack.c.bf16 %v3931_v4, %v3931_v4  ;;  %v3933_v57 = vcombine.high %v3913_v42, %v3929_v44 }
 0xeff   :  { %v4140_v43 = vsel %vm777_vm2, %v4087_v47, 0 }
 0xf06   :  { %3649 = vrot.lane.b32.xlu0 %v6676_v36, %s5891_s29  ;;  %s4970_s29 = sshll.u32 %s5899_s12, 4  ;;  %s4971_s29 = int_to_ptr.vmem [resolvable:$true] %s4970_s29 }
 0xf07   :  { %p5845_p5 = scmp.lt.s32.totalorder %s4971_s29, %s4971_s29 }
 0xf71   :  { %v3281_v21 = vpop.xlane.xlu1 %3280 }
 0xf72   :  { %5564 = vrcp.f32 %v3281_v21  ;;  %v3284_v49 = vpop.xlane.xlu0 %3283 }
 0xf73   :  { %5566 = vrcp.f32 %v3284_v49 }
 0xf79   :  { %v3287_v41 = vpop.xlane.xlu1 %3286 }
 0xf7a   :  { %5568 = vrcp.f32 %v3287_v41 }
 0xf7c   :  { %v5565_v61 = vpop.eup %5564 }
 0xf7d   :  { %v3295_v32 = vmul.f32 %v5565_v61, %v6737_v20  ;;  %v3647_v24 = vpop.permute.xlu1 %3646  ;;  %v5567_v58 = vpop.eup %5566 }
 0xf7e   :  { %v3290_v1 = vpop.xlane.xlu0 %3289  ;;  %v3296_v8 = vmul.f32 %v5567_v58, %v6739_v55  ;;  %v3652_v60 = vcombine.low %v6676_v36, %v3647_v24  ;;  %v3653_v20 = vcombine.high %v6676_v36, %v3647_v24  ;;  %v3930_v55 = vcombine.low %v3906_v6, %v3922_v7 }
 0xf7f   :  { %5570 = vrcp.f32 %v3290_v1  ;;  %v3299_v9 = vpack.c.bf16 %v3295_v32, %v3295_v32  ;;  %v3932_v24 = vcombine.low %v3913_v42, %v3929_v44 }
 0xf80   :  { %v3300_v63 = vpack.c.bf16 %v3296_v8, %v3296_v8  ;;  %v3660_v34 = vrot.slane %v3652_v60, %v6208_v53  ;;  %v3667_v3 = vrot.slane %v3653_v20, %v6208_v53  ;;  %v4086_v25 = vpack.c.bf16 %v3930_v55, %v3930_v55 }
 0xf81   :  { %5336 = vmatmul.mubr.msk.bf16.vlgmr.msra.gmra.mrb[40].mxu0 %vm777_vm2, %v3299_v9  ;;  %v4088_v59 = vpack.c.bf16 %v3932_v24, %v3932_v24  ;;  %v4089_v60 = vpack.c.bf16 %v3933_v57, %v3933_v57 }
 0xf82   :  { %5346 = vmatpush3.bf16.msra.mxu0 %v3403_v22  ;;  %v3650_v62 = vpop.permute.xlu0 %3649  ;;  %5347 = vmatprep.mubr.msk.bf16.mxu0 %vm5888_vm1, %v5887_v15  ;;  %v4094_v21 = vsel %vm777_vm2, %v4086_v25, 0 }
 0xf83   :  { %5342 = vmatmul.mubr.msk.bf16.vlgmr.msra.gmra.mrb[56].mxu1 %vm777_vm2, %v3300_v63  ;;  %v3668_v10 = vcombine.low %v3644_v38, %v3650_v62  ;;  %v3669_v5 = vcombine.high %v3644_v38, %v3650_v62  ;;  %5357 = vmatprep.subr.bf16.mxu0 %v5887_v15  ;;  %v4186_v55 = vsel %vm777_vm2, %v4088_v59, 0 }
 0xf84   :  { %v5569_v36 = vpop.eup %5568  ;;  %5352 = vmatpush3.bf16.msra.mxu1 %v3449_v11  ;;  %5353 = vmatprep.mubr.msk.bf16.mxu1 %vm5888_vm1, %v5887_v15  ;;  %v4232_v11 = vsel %vm777_vm2, %v4089_v60, 0 }
 0xf85   :  { %v3297_v18 = vmul.f32 %v5569_v36, %v6749_v48  ;;  %v3676_v19 = vrot.slane %v3668_v10, %v6208_v53  ;;  %v3683_v23 = vrot.slane %v3669_v5, %v6208_v53  ;;  %5363 = vmatprep.subr.bf16.mxu1 %v5887_v15 }
 0xf87   :  { %v3684_v27 = vcombine.low %v3660_v34, %v3676_v19  ;;  %v3685_v28 = vcombine.high %v3660_v34, %v3676_v19  ;;  %v3700_v29 = vcombine.low %v3667_v3, %v3683_v23  ;;  %v3701_v30 = vcombine.high %v3667_v3, %v3683_v23 }
 0xf88   :  { %v3301_v33 = vpack.c.bf16 %v3297_v18, %v3297_v18 }
 0xf89   :  { %v5571_v39 = vpop.eup %5570  ;;  %v3692_v48 = vrot.slane %v3684_v27, %v6218_v0  ;;  %v3699_v35 = vrot.slane %v3685_v28, %v6218_v0  ;;  %v3708_v37 = vrot.slane %v3700_v29, %v6218_v0  ;;  %v3715_v38 = vrot.slane %v3701_v30, %v6218_v0 }
 0xf8a   :  { %v3298_v40 = vmul.f32 %v5571_v39, %v6757_v31  ;;  %5348 = vmatmul.mubr.msk.bf16.vlgmr.msra.gmra.mrb[44].mxu0 %vm777_vm2, %v3301_v33 }
 0xf8b   :  { %v3720_v45 = vcombine.low %v3692_v48, %v3699_v35  ;;  %v5055_v49 = vcombine.high %v3692_v48, %v3699_v35  ;;  %v3736_v50 = vcombine.low %v3708_v37, %v3715_v38  ;;  %v5056_v51 = vcombine.high %v3708_v37, %v3715_v38  ;;  %5358 = vmatpush3.bf16.xpose.msra.mxu0 %v4094_v21 }
 0xf8c   :  { %v3302_v52 = vpack.c.bf16 %v3298_v40, %v3298_v40  ;;  %5359 = vmatprep.mubr.msk.bf16.mxu0 %vm5888_vm1, %v5887_v15  ;;  %5369 = vmatprep.subr.bf16.mxu0 %v5887_v15 }
 0xf8d   :  { %v3727_v31 = vrot.slane %v3720_v45, %v6208_v53  ;;  %v3735_v54 = vrot.slane %v5055_v49, %v6208_v53  ;;  %v3743_v41 = vrot.slane %v3736_v50, %v6208_v53  ;;  %v3751_v56 = vrot.slane %v5056_v51, %v6208_v53 }
 0xf8e   :  { %5354 = vmatmul.mubr.msk.bf16.vlgmr.msra.gmra.mrb[60].mxu1 %vm777_vm2, %v3302_v52 }
 0xf8f   :  { %v3752_v61 = vcombine.low %v3727_v31, %v3735_v54  ;;  %v3768_v32 = vcombine.low %v3743_v41, %v3751_v56  ;;  %5364 = vmatpush3.bf16.xpose.msra.mxu1 %v4140_v43  ;;  %5365 = vmatprep.mubr.msk.bf16.mxu1 %vm5888_vm1, %v5887_v15  ;;  %v3753_v58 = vcombine.high %v3727_v31, %v3735_v54 }
 0xf90   :  { %5375 = vmatprep.subr.bf16.mxu1 %v5887_v15  ;;  %v3769_v1 = vcombine.high %v3743_v41, %v3751_v56 }
 0xf91   :  { %v3760_v6 = vrot.slane %v3752_v61, %v6218_v0  ;;  %v3776_v7 = vrot.slane %v3768_v32, %v6218_v0  ;;  %v3767_v22 = vrot.slane %v3753_v58, %v6218_v0 }
 0xf92   :  { %v3783_v62 = vrot.slane %v3769_v1, %v6218_v0 }
 0xf93   :  { %v3784_v8 = vcombine.low %v3760_v6, %v3776_v7  ;;  %v3785_v9 = vcombine.high %v3760_v6, %v3776_v7 }
 0xf94   :  { %v3786_v10 = vcombine.low %v3767_v22, %v3783_v62  ;;  %v3787_v5 = vcombine.high %v3767_v22, %v3783_v62 }
 0xf95   :  { %v4082_v20 = vpack.c.bf16 %v3784_v8, %v3784_v8  ;;  %v4083_v63 = vpack.c.bf16 %v3785_v9, %v3785_v9 }
 0xf96   :  { %v4084_v36 = vpack.c.bf16 %v3786_v10, %v3786_v10  ;;  %v4085_v34 = vpack.c.bf16 %v3787_v5, %v3787_v5 }
 0xf97   :  { %5360 = vmatmul.mubr.msk.bf16.vlgmr.msra.gmra.mrb[48].mxu0 %vm777_vm2, %v4082_v20  ;;  %5366 = vmatmul.mubr.msk.bf16.vlgmr.msra.gmra.mrb[64].mxu1 %vm777_vm2, %v4083_v63 }
 0xf98   :  { %5370 = vmatpush3.bf16.xpose.msra.mxu0 %v4186_v55  ;;  %5376 = vmatpush3.bf16.xpose.msra.mxu1 %v4232_v11 }
 0xf99   :  { %5371 = vmatprep.mubr.msk.bf16.mxu0 %vm5888_vm1, %v5887_v15  ;;  %5377 = vmatprep.mubr.msk.bf16.mxu1 %vm5888_vm1, %v5887_v15 }
 0xf9a   :  { %5381 = vmatprep.subr.bf16.mxu0 %v5887_v15  ;;  %5387 = vmatprep.subr.bf16.mxu1 %v5887_v15 }
 0xf9f   :  { %5372 = vmatmul.mubr.msk.bf16.vlgmr.msra.gmra.mrb[52].mxu0 %vm777_vm2, %v4084_v36  ;;  %5378 = vmatmul.mubr.msk.bf16.vlgmr.msra.gmra.mrb[68].mxu1 %vm777_vm2, %v4085_v34 }
 0xfa0   :  { %5383 = vmatprep.mubr.msk.bf16.mxu0 %vm5888_vm1, %v5887_v15  ;;  %5389 = vmatprep.mubr.msk.bf16.mxu1 %vm5888_vm1, %v5887_v15 }
0x1054   :  { %v3347_v14 = vpop.f32.mrb[40].mxu0 }
0x1055   :  { %v5337_v18 = vpop.f32.mrb[41].mxu0 }
0x1056   :  { %v3393_v3 = vpop.f32.mrb[56].mxu1  ;;  %v3350_v19 = vpop.f32.mrb[42].mxu0 }
0x1057   :  { %v5343_v23 = vpop.f32.mrb[57].mxu1  ;;  %v5338_v25 = vpop.f32.mrb[43].mxu0 }
0x1058   :  { %v3396_v4 = vpop.f32.mrb[58].mxu1 }
0x1059   :  { %v5344_v26 = vpop.f32.mrb[59].mxu1 }
0x105d   :  { %v3439_v27 = vpop.f32.mrb[44].mxu0 }
0x105e   :  { %v3491_v28 = vcombine.low %v3347_v14, %v3439_v27  ;;  %v3492_v29 = vcombine.high %v3347_v14, %v3439_v27  ;;  %v5349_v30 = vpop.f32.mrb[45].mxu0 }
0x105f   :  { %v3442_v33 = vpop.f32.mrb[46].mxu0 }
0x1060   :  { %v5350_v42 = vpop.f32.mrb[47].mxu0  ;;  %v3499_v40 = vrot.slane %v3491_v28, %v6208_v53  ;;  %v3506_v21 = vrot.slane %v3492_v29, %v6208_v53 }
0x1061   :  { %v3485_v39 = vpop.f32.mrb[60].mxu1 }
0x1062   :  { %v3507_v48 = vcombine.low %v3393_v3, %v3485_v39  ;;  %v3508_v35 = vcombine.high %v3393_v3, %v3485_v39  ;;  %v5355_v37 = vpop.f32.mrb[61].mxu1 }
0x1063   :  { %v3488_v38 = vpop.f32.mrb[62].mxu1 }
0x1064   :  { %v3515_v47 = vrot.slane %v3507_v48, %v6208_v53  ;;  %v3522_v44 = vrot.slane %v3508_v35, %v6208_v53  ;;  %v5356_v45 = vpop.f32.mrb[63].mxu1 }
0x1066   :  { %v3523_v49 = vcombine.low %v3499_v40, %v3515_v47  ;;  %v3524_v50 = vcombine.high %v3499_v40, %v3515_v47  ;;  %v3539_v51 = vcombine.low %v3506_v21, %v3522_v44  ;;  %v3540_v52 = vcombine.high %v3506_v21, %v3522_v44 }
0x1068   :  { %v3531_v31 = vrot.slane %v3523_v49, %v6218_v0  ;;  %v3538_v54 = vrot.slane %v3524_v50, %v6218_v0  ;;  %v3547_v41 = vrot.slane %v3539_v51, %v6218_v0  ;;  %v3554_v56 = vrot.slane %v3540_v52, %v6218_v0 }
0x106a   :  { %v3559_v43 = vcombine.low %v3531_v31, %v3538_v54  ;;  %v5053_v61 = vcombine.high %v3531_v31, %v3538_v54  ;;  %v3575_v32 = vcombine.low %v3547_v41, %v3554_v56  ;;  %v5054_v24 = vcombine.high %v3547_v41, %v3554_v56  ;;  %v4130_v57 = vpop.f32.mrb[48].mxu0  ;;  %v4176_v58 = vpop.f32.mrb[64].mxu1 }
0x106b   :  { %v5361_v1 = vpop.f32.mrb[49].mxu0  ;;  %v5367_v6 = vpop.f32.mrb[65].mxu1  ;;  %v4274_v7 = vsel %vm777_vm2, %v4130_v57, -inf  ;;  %v4277_v8 = vsel %vm777_vm2, %v4176_v58, -inf }
0x106c   :  { %v3566_v9 = vrot.slane %v3559_v43, %v6208_v53  ;;  %v3574_v59 = vrot.slane %v5053_v61, %v6208_v53  ;;  %v3582_v60 = vrot.slane %v3575_v32, %v6208_v53  ;;  %v3590_v20 = vrot.slane %v5054_v24, %v6208_v53  ;;  %4275 = vmax.xlane.f32.xlu1 %v4274_v7  ;;  %v4133_v63 = vpop.f32.mrb[50].mxu0  ;;  %v4179_v22 = vpop.f32.mrb[66].mxu1 }
0x106d   :  { %4278 = vmax.xlane.f32.xlu0 %v4277_v8  ;;  %v5362_v62 = vpop.f32.mrb[51].mxu0  ;;  %v5368_v55 = vpop.f32.mrb[67].mxu1 }
0x106e   :  { %v3592_v11 = vcombine.high %v3566_v9, %v3574_v59  ;;  %v3608_v10 = vcombine.high %v3582_v60, %v3590_v20  ;;  %v3591_v5 = vcombine.low %v3566_v9, %v3574_v59  ;;  %v3607_v36 = vcombine.low %v3582_v60, %v3590_v20 }
0x1070   :  { %v6888_v34 = vrot.slane %v3592_v11, %v6218_v0  ;;  %v6891_v14 = vrot.slane %v3608_v10, %v6218_v0  ;;  %v6894_v18 = vrot.slane %v3591_v5, %v6218_v0  ;;  %v6897_v3 = vrot.slane %v3607_v36, %v6218_v0 }
0x1072   :  { %v4222_v19 = vpop.f32.mrb[52].mxu0  ;;  %v4268_v23 = vpop.f32.mrb[68].mxu1  ;;  %v3625_v25 = vcombine.low %v6888_v34, %v6891_v14  ;;  %v3623_v4 = vcombine.low %v6894_v18, %v6897_v3  ;;  %v3624_v26 = vcombine.high %v6894_v18, %v6897_v3  ;;  %v3626_v27 = vcombine.high %v6888_v34, %v6891_v14  ;;  %v5071_v18 = vld [vmem:[#allocation17] ss:$0 sm:$0xff] }
0x1073   :  { %v5373_v28 = vpop.f32.mrb[53].mxu0  ;;  %v5379_v29 = vpop.f32.mrb[69].mxu1  ;;  %v4280_v30 = vsel %vm777_vm2, %v4222_v19, -inf  ;;  %v4283_v35 = vsel %vm777_vm2, %v4268_v23, -inf }
0x1074   :  { %v4225_v33 = vpop.f32.mrb[54].mxu0  ;;  %4281 = vmax.xlane.f32.xlu0 %v4280_v30  ;;  %v4271_v42 = vpop.f32.mrb[70].mxu1 }
0x1075   :  { %v5374_v39 = vpop.f32.mrb[55].mxu0  ;;  %v5380_v48 = vpop.f32.mrb[71].mxu1 }
0x1078   :  { %4284 = vmax.xlane.f32.xlu0 %v4283_v35 }
0x107d   :  { %3934 = vrot.lane.b32.xlu1 %v6631_v46, %s5892_s8 }
0x10f9   :  { %v4276_v37 = vpop.xlane.xlu1 %4275 }
0x10fa   :  { %v4286_v38 = vsub.f32 %v4130_v57, %v4276_v37  ;;  %v4279_v40 = vpop.xlane.xlu0 %4278 }
0x10fb   :  { %v4287_v21 = vsub.f32 %v4176_v58, %v4279_v40 }
0x10fc   :  { %v4290_v47 = vmul.f32 1.442695, %v4286_v38 }
0x10fd   :  { %v4292_v44 = vmul.f32 1.442695, %v4287_v21 }
0x10fe   :  { %5572 = vpow2.f32 %v4290_v47 }
0x10ff   :  { %5574 = vpow2.f32 %v4292_v44 }
0x1101   :  { %v4282_v46 = vpop.xlane.xlu0 %4281 }
0x1102   :  { %v4288_v54 = vsub.f32 %v4222_v19, %v4282_v46 }
0x1104   :  { %v4294_v56 = vmul.f32 1.442695, %v4288_v54 }
0x1105   :  { %v4285_v52 = vpop.xlane.xlu0 %4284 }
0x1106   :  { %v4289_v31 = vsub.f32 %v4268_v23, %v4285_v52 }
0x1108   :  { %v6911_v45 = vpop.eup %5572  ;;  %v4296_v41 = vmul.f32 1.442695, %v4289_v31 }
0x1109   :  { %v6913_v49 = vpop.eup %5574  ;;  %v4298_v50 = vsel %vm777_vm2, %v6911_v45, 0.0 }
0x110a   :  { %4299 = vadd.xlane.f32.xlu1 %v4298_v50  ;;  %v4301_v51 = vsel %vm777_vm2, %v6913_v49, 0.0  ;;  %5576 = vpow2.f32 %v4296_v41 }
0x110b   :  { %4302 = vadd.xlane.f32.xlu0 %v4301_v51  ;;  %5578 = vpow2.f32 %v4294_v56 }
0x1114   :  { %v6925_v43 = vpop.eup %5576 }
0x1115   :  { %v6927_v61 = vpop.eup %5578 }
0x111b   :  { %3938 = vrot.lane.b32.xlu1 %v6781_v16, %s5892_s8  ;;  %v4307_v16 = vsel %vm777_vm2, %v6925_v43, 0.0 }
0x111f   :  { %3940 = vrot.lane.b32.xlu1 %v6783_v17, %s5892_s8  ;;  %v4304_v17 = vsel %vm777_vm2, %v6927_v61, 0.0 }
0x1121   :  { %3936 = vrot.lane.b32.xlu0 %v6785_v12, %s5892_s8  ;;  %v3935_v12 = vpop.permute.xlu1 %3934 }
0x1140   :  { %4308 = vadd.xlane.f32.xlu0 %v4307_v16 }
0x1143   :  { %4305 = vadd.xlane.f32.xlu1 %v4304_v17 }
0x1197   :  { %v4300_v32 = vpop.xlane.xlu1 %4299 }
0x1198   :  { %v4303_v24 = vpop.xlane.xlu0 %4302  ;;  %5580 = vrcp.f32 %v4300_v32 }
0x1199   :  { %5582 = vrcp.f32 %v4303_v24 }
0x119b   :  { %v3939_v57 = vpop.permute.xlu1 %3938 }
0x119c   :  { %v3946_v58 = vcombine.low %v3935_v12, %v3939_v57  ;;  %v3947_v1 = vcombine.high %v3935_v12, %v3939_v57  ;;  %v3937_v6 = vpop.permute.xlu0 %3936 }
0x119e   :  { %v3954_v59 = vrot.slane %v3946_v58, %v6208_v53  ;;  %v3961_v60 = vrot.slane %v3947_v1, %v6208_v53 }
0x119f   :  { %v3941_v7 = vpop.permute.xlu1 %3940 }
0x11a0   :  { %v3962_v8 = vcombine.low %v3937_v6, %v3941_v7  ;;  %v3963_v9 = vcombine.high %v3937_v6, %v3941_v7 }
0x11a2   :  { %v3970_v20 = vrot.slane %v3962_v8, %v6208_v53  ;;  %v3977_v63 = vrot.slane %v3963_v9, %v6208_v53  ;;  %v5581_v44 = vpop.eup %5580 }
0x11a3   :  { %v5583_v46 = vpop.eup %5582  ;;  %v4314_v56 = vmul.f32 %v5581_v44, %v6911_v45 }
0x11a4   :  { %v3978_v22 = vcombine.low %v3954_v59, %v3970_v20  ;;  %v3979_v62 = vcombine.high %v3954_v59, %v3970_v20  ;;  %v3994_v55 = vcombine.low %v3961_v60, %v3977_v63  ;;  %v3995_v11 = vcombine.high %v3961_v60, %v3977_v63 }
0x11a5   :  { %v4315_v16 = vmul.f32 %v5583_v46, %v6913_v49  ;;  %v4318_v1 = vpack.c.bf16 %v4314_v56, %v4314_v56 }
0x11a6   :  { %v3986_v10 = vrot.slane %v3978_v22, %v6218_v0  ;;  %v3993_v5 = vrot.slane %v3979_v62, %v6218_v0  ;;  %v4002_v36 = vrot.slane %v3994_v55, %v6218_v0  ;;  %v4009_v19 = vrot.slane %v3995_v11, %v6218_v0 }
0x11a7   :  { %v4319_v6 = vpack.c.bf16 %v4315_v16, %v4315_v16 }
0x11a8   :  { %v4014_v23 = vcombine.low %v3986_v10, %v3993_v5  ;;  %v5059_v28 = vcombine.high %v3986_v10, %v3993_v5  ;;  %v4030_v29 = vcombine.low %v4002_v36, %v4009_v19  ;;  %v5060_v30 = vcombine.high %v4002_v36, %v4009_v19 }
0x11aa   :  { %v4021_v33 = vrot.slane %v4014_v23, %v6208_v53  ;;  %v4029_v42 = vrot.slane %v5059_v28, %v6208_v53  ;;  %v4037_v39 = vrot.slane %v4030_v29, %v6208_v53  ;;  %v4045_v48 = vrot.slane %v5060_v30, %v6208_v53 }
0x11ac   :  { %v4046_v35 = vcombine.low %v4021_v33, %v4029_v42  ;;  %v4047_v37 = vcombine.high %v4021_v33, %v4029_v42  ;;  %v4062_v38 = vcombine.low %v4037_v39, %v4045_v48  ;;  %v4063_v40 = vcombine.high %v4037_v39, %v4045_v48 }
0x11ae   :  { %v4054_v21 = vrot.slane %v4046_v35, %v6218_v0  ;;  %v4061_v47 = vrot.slane %v4047_v37, %v6218_v0  ;;  %v4070_v50 = vrot.slane %v4062_v38, %v6218_v0  ;;  %v4077_v51 = vrot.slane %v4063_v40, %v6218_v0 }
0x11b0   :  { %v4078_v52 = vcombine.low %v4054_v21, %v4070_v50  ;;  %v4079_v31 = vcombine.high %v4054_v21, %v4070_v50  ;;  %v4080_v54 = vcombine.low %v4061_v47, %v4077_v51  ;;  %v4081_v41 = vcombine.high %v4061_v47, %v4077_v51 }
0x11b2   :  { %v4322_v17 = vpack.c.bf16 %v4078_v52, %v4078_v52  ;;  %v4323_v12 = vpack.c.bf16 %v4079_v31, %v4079_v31  ;;  %v4324_v57 = vpack.c.bf16 %v4080_v54, %v4080_v54  ;;  %v4325_v58 = vpack.c.bf16 %v4081_v41, %v4081_v41 }
0x11b4   :  { %v4330_v32 = vsel %vm1017_vm3, %v4322_v17, 0  ;;  %v4376_v24 = vsel %vm1017_vm3, %v4323_v12, 0  ;;  %v4422_v45 = vsel %vm1017_vm3, %v4324_v57, 0  ;;  %v4468_v49 = vsel %vm1017_vm3, %v4325_v58, 0 }
0x11b5   :  { %5382 = vmatpush3.bf16.msra.mxu0 %v4330_v32  ;;  %5388 = vmatpush3.bf16.msra.mxu1 %v4376_v24  ;;  %v5504_v24 = vld [vmem:[%s7115_s15] sm:$0xff]  }
0x11b6   :  { %5393 = vmatprep.subr.bf16.mxu0 %v5887_v15  ;;  %5399 = vmatprep.subr.bf16.mxu1 %v5887_v15 }
0x11b8   :  { %5384 = vmatmul.mubr.msk.bf16.vlgmr.msra.gmra.mrb[56].mxu0 %vm777_vm2, %v4318_v1  ;;  %5390 = vmatmul.mubr.msk.bf16.vlgmr.msra.gmra.mrb[72].mxu1 %vm777_vm2, %v4319_v6 }
0x11b9   :  { %5394 = vmatpush3.bf16.msra.mxu0 %v4422_v45  ;;  %5400 = vmatpush3.bf16.msra.mxu1 %v4468_v49 }
0x11ba   :  { %5401 = vmatprep.mubr.msk.bf16.mxu1 %vm5888_vm1, %v5887_v15  ;;  %5395 = vmatprep.mubr.msk.bf16.mxu0 %vm5888_vm1, %v5887_v15 }
0x11bb   :  { %5405 = vmatprep.subr.bf16.mxu0 %v5887_v15  ;;  %5413 = vmatprep.subr.bf16.mxu1 %v5887_v15 }
0x11cd   :  { %v4309_v7 = vpop.xlane.xlu0 %4308 }
0x11ce   :  { %5584 = vrcp.f32 %v4309_v7 }
0x11d0   :  { %v4306_v8 = vpop.xlane.xlu1 %4305 }
0x11d1   :  { %5586 = vrcp.f32 %v4306_v8 }
0x11d8   :  { %v5585_v9 = vpop.eup %5584 }
0x11d9   :  { %v4317_v59 = vmul.f32 %v5585_v9, %v6925_v43  ;;  %v5505_v9 = vld [vmem:[%s7115_s15 + $0x8] sm:$0xff]   ;;  %s5840_s15 = scalar_lea.vmem %s4971_s29, 256 }
0x11da   :  { %p5841_p4 = scmp.ne.s32.totalorder %s4971_s29, %s5840_s15  ;;  %p5846_p6 = scmp.lt.s32.totalorder %s5840_s15, %s5840_s15 }
0x11db   :  { %v5587_v60 = vpop.eup %5586  ;;  %v4321_v20 = vpack.c.bf16 %v4317_v59, %v4317_v59 }
0x11dc   :  { %v4316_v63 = vmul.f32 %v5587_v60, %v6927_v61  ;;  %p5847_p7 = por %p5846_p6, %p5845_p5 }
0x11dd   :  { %5402 = vmatmul.mubr.msk.bf16.vlgmr.msra.gmra.mrb[76].mxu1 %vm777_vm2, %v4321_v20 }
0x11de   :  { %v4320_v22 = vpack.c.bf16 %v4316_v63, %v4316_v63  ;;  %5417 = vmatprep.mubr.msk.bf16.mxu1 %vm5888_vm1, %v5887_v15  ;;  %p5848_p8 = pnand %p5847_p7, %p5841_p4 }
0x11e0   :  { %5396 = vmatmul.mubr.msk.bf16.vlgmr.msra.gmra.mrb[60].mxu0 %vm777_vm2, %v4320_v22 }
0x11e1   :  { %5409 = vmatprep.mubr.msk.bf16.mxu0 %vm5888_vm1, %v5887_v15  ;;  %5406 = vmatpush3.bf16.msra.mxu0 %v5504_v24 }
0x11e2   :  { %5407 = vmatprep.subr.bf16.mxu0 %v5887_v15 }
0x11e5   :  { %5408 = vmatpush3.bf16.msra.mxu0 %v5505_v9 }
0x11e6   :  { %5421 = vmatprep.subr.bf16.mxu0 %v5887_v15 }
0x128b   :  { %v4366_v62 = vpop.f32.mrb[56].mxu0  ;;  %v4412_v55 = vpop.f32.mrb[72].mxu1 }
0x128c   :  { %v5385_v11 = vpop.f32.mrb[57].mxu0  ;;  %v5391_v10 = vpop.f32.mrb[73].mxu1 }
0x128d   :  { %v4369_v43 = vpop.f32.mrb[58].mxu0  ;;  %v4415_v5 = vpop.f32.mrb[74].mxu1 }
0x128e   :  { %v5386_v36 = vpop.f32.mrb[59].mxu0  ;;  %v5392_v19 = vpop.f32.mrb[75].mxu1 }
0x12b0   :  { %v4504_v61 = vpop.f32.mrb[76].mxu1 }
0x12b1   :  { %v4526_v23 = vcombine.low %v4412_v55, %v4504_v61  ;;  %v4527_v28 = vcombine.high %v4412_v55, %v4504_v61  ;;  %v5403_v29 = vpop.f32.mrb[77].mxu1 }
0x12b2   :  { %v4507_v30 = vpop.f32.mrb[78].mxu1 }
0x12b3   :  { %v5404_v33 = vpop.f32.mrb[79].mxu1  ;;  %v4458_v42 = vpop.f32.mrb[60].mxu0  ;;  %v4534_v38 = vrot.slane %v4526_v23, %v6208_v53  ;;  %v4541_v40 = vrot.slane %v4527_v28, %v6208_v53 }
0x12b4   :  { %v4510_v39 = vcombine.low %v4366_v62, %v4458_v42  ;;  %v4511_v48 = vcombine.high %v4366_v62, %v4458_v42  ;;  %v5397_v35 = vpop.f32.mrb[61].mxu0 }
0x12b5   :  { %v4461_v37 = vpop.f32.mrb[62].mxu0 }
0x12b6   :  { %v4518_v21 = vrot.slane %v4510_v39, %v6208_v53  ;;  %v4525_v47 = vrot.slane %v4511_v48, %v6208_v53  ;;  %v5398_v44 = vpop.f32.mrb[63].mxu0 }
0x12b8   :  { %v4542_v50 = vcombine.low %v4518_v21, %v4534_v38  ;;  %v4543_v51 = vcombine.high %v4518_v21, %v4534_v38  ;;  %v4558_v46 = vcombine.low %v4525_v47, %v4541_v40  ;;  %v4559_v52 = vcombine.high %v4525_v47, %v4541_v40 }
0x12ba   :  { %v4550_v31 = vrot.slane %v4542_v50, %v6218_v0  ;;  %v4557_v54 = vrot.slane %v4543_v51, %v6218_v0  ;;  %v4566_v41 = vrot.slane %v4558_v46, %v6218_v0  ;;  %v4573_v56 = vrot.slane %v4559_v52, %v6218_v0 }
0x12bc   :  { %v4578_v16 = vcombine.low %v4550_v31, %v4557_v54  ;;  %v5069_v17 = vcombine.high %v4550_v31, %v4557_v54  ;;  %v4594_v12 = vcombine.low %v4566_v41, %v4573_v56  ;;  %v5070_v32 = vcombine.high %v4566_v41, %v4573_v56  ;;  %v5506_v56 = vld [vmem:[%s7119_s19] sm:$0xff]  }
0x12bd   :  { %5414 = vmatpush3.bf16.msra.mxu1 %v5506_v56 }
0x12be   :  { %v4585_v57 = vrot.slane %v4578_v16, %v6208_v53  ;;  %v4593_v58 = vrot.slane %v5069_v17, %v6208_v53  ;;  %v4601_v1 = vrot.slane %v4594_v12, %v6208_v53  ;;  %v4609_v6 = vrot.slane %v5070_v32, %v6208_v53  ;;  %v5507_v16 = vld [vmem:[%s7119_s19 + $0x8] sm:$0xff]   ;;  %5415 = vmatprep.subr.bf16.mxu1 %v5887_v15  ;;  %v5508_v17 = vld [vmem:[%s7121_s21] sm:$0xff]  }
0x12bf   :  { %v5509_v12 = vld [vmem:[%s7121_s21 + $0x8] sm:$0xff]  }
0x12c0   :  { %v4611_v45 = vcombine.high %v4585_v57, %v4593_v58  ;;  %v4627_v49 = vcombine.high %v4601_v1, %v4609_v6  ;;  %v4610_v7 = vcombine.low %v4585_v57, %v4593_v58  ;;  %v4626_v8 = vcombine.low %v4601_v1, %v4609_v6 }
0x12c1   :  { %5416 = vmatpush3.bf16.msra.mxu1 %v5507_v16 }
0x12c2   :  { %v4625_v59 = vrot.slane %v4611_v45, %v6218_v0  ;;  %v4641_v60 = vrot.slane %v4627_v49, %v6218_v0  ;;  %v4618_v20 = vrot.slane %v4610_v7, %v6218_v0  ;;  %v4634_v63 = vrot.slane %v4626_v8, %v6218_v0  ;;  %v5075_v7 = vld [vmem:[#allocation19] ss:$0 sm:$0xff] }
0x12c4   :  { %v4644_v53 = vcombine.low %v4625_v59, %v4641_v60  ;;  %v4643_v22 = vcombine.high %v4618_v20, %v4634_v63  ;;  %v4642_v62 = vcombine.low %v4618_v20, %v4634_v63  ;;  %v4645_v55 = vcombine.high %v4625_v59, %v4641_v60  ;;  %v5076_v60 = vld [vmem:[%s7118_s18] ss:$0 sm:$0xff] }
0x12c6   :  { %v5486_v11 = vpack.i.bf16 %v4644_v53, %v3625_v25  ;;  %v5481_v10 = vpack.i.bf16 %v4643_v22, %v3624_v26  ;;  %v5491_v43 = vpack.i.bf16 %v4645_v55, %v3626_v27  ;;  %v5511_v55 = vld [vmem:[%s7121_s21 + $0x18] sm:$0xff]  }
0x12c8   :  { %5487 = vrot.lane.b32.xlu1 %v5486_v11, %s5896_s25  ;;  %5482 = vrot.lane.b32.xlu0 %v5481_v10, %s5897_s28  ;;  %v5512_v11 = vld [vmem:[%s7121_s21 + $0x20] sm:$0xff]   ;;  %v5513_v10 = vld [vmem:[%s7121_s21 + $0x28] sm:$0xff]  }
0x12cc   :  { %5492 = vrot.lane.b32.xlu1 %v5491_v43, %s5898_s9  ;;  %v5514_v43 = vld [vmem:[%s7121_s21 + $0x30] sm:$0xff]  }
0x133a   :  { %v5488_v0 = vpop.permute.xlu1 %5487  ;;  %v5483_v5 = vpop.permute.xlu0 %5482 }
0x133b   :  { %v5485_v36 = vunpack.i.h.bf16 %v5483_v5  ;;  %v5484_v19 = vunpack.i.l.bf16 %v5483_v5  ;;  %v5490_v61 = vunpack.i.h.bf16 %v5488_v0  ;;  %v5489_v25 = vunpack.i.l.bf16 %v5488_v0  ;;  %v5515_v0 = vld [vmem:[%s7121_s21 + $0x38] sm:$0xff]   ;;  %v5077_v5 = vld [vmem:[%s7120_s20] ss:$0 sm:$0xff] }
0x133d   :  { %v3639_v26 = vsel %vm777_vm2, %v3623_v4, %v5484_v19  ;;  %v4658_v34 = vsel %vm777_vm2, %v4642_v62, %v5485_v36  ;;  %v5510_v62 = vld [vmem:[%s7121_s21 + $0x10] sm:$0xff]  }
0x133e   :  { %v5493_v14 = vpop.permute.xlu1 %5492  ;;  %v3640_v28 = vsel %vm1348_vm4, %v3639_v26, %v5489_v25  ;;  %v4659_v29 = vsel %vm1348_vm4, %v4658_v34, %v5490_v61 }
0x133f   :  { %v5495_v27 = vunpack.i.h.bf16 %v5493_v14  ;;  %v5494_v23 = vunpack.i.l.bf16 %v5493_v14 }
0x1341   :  { %v3641_v30 = vsel %vm1350_vm5, %v3640_v28, %v5494_v23  ;;  %v4660_v33 = vsel %vm1350_vm5, %v4659_v29, %v5495_v27 }
0x1342   :  { %v4661_v42 = vpack.c.bf16 %v4660_v33, %v3641_v30 }
0x1344   :  { %5410 = vmatmul.mubr.msk.bf16.vlgmr.msra.gmra.mrb[64].mxu0 %vm210_vm0, %v4661_v42 }
0x1345   :  { %5437 = vmatprep.mubr.msk.bf16.mxu0 %vm5888_vm1, %v5887_v15  ;;  %5422 = vmatpush3.bf16.msra.mxu0 %v5508_v17 }
0x1346   :  { %5423 = vmatprep.subr.bf16.mxu0 %v5887_v15 }
0x1349   :  { %5424 = vmatpush3.bf16.msra.mxu0 %v5509_v12 }
0x134a   :  { %5425 = vmatprep.subr.bf16.mxu0 %v5887_v15 }
0x134d   :  { %5426 = vmatpush3.bf16.msra.mxu0 %v5510_v62 }
0x134e   :  { %5427 = vmatprep.subr.bf16.mxu0 %v5887_v15 }
0x1351   :  { %5428 = vmatpush3.bf16.msra.mxu0 %v5511_v55 }
0x1352   :  { %5429 = vmatprep.subr.bf16.mxu0 %v5887_v15 }
0x1355   :  { %5430 = vmatpush3.bf16.msra.mxu0 %v5512_v11 }
0x1356   :  { %5431 = vmatprep.subr.bf16.mxu0 %v5887_v15 }
0x1359   :  { %5432 = vmatpush3.bf16.msra.mxu0 %v5513_v10 }
0x135a   :  { %5433 = vmatprep.subr.bf16.mxu0 %v5887_v15 }
0x135d   :  { %5434 = vmatpush3.bf16.msra.mxu0 %v5514_v43 }
0x135e   :  { %5435 = vmatprep.subr.bf16.mxu0 %v5887_v15 }
0x1361   :  { %5436 = vmatpush3.bf16.msra.mxu0 %v5515_v0 }
0x1417   :  { %v4717_v3 = vpop.f32.mrb[64].mxu0 }
0x1418   :  { %v4718_v4 = vadd.f32 %v5071_v18, %v4717_v3  ;;  %v5411_v39 = vpop.f32.mrb[65].mxu0 }
0x1419   :  { %v4720_v48 = vpop.f32.mrb[66].mxu0 }
0x141a   :  { %v7022_v35 = vadd.f32 %v4718_v4, %v6585_v13  ;;  %v4721_v37 = vadd.f32 %v5071_v18, %v4720_v48  ;;  %v5412_v38 = vpop.f32.mrb[67].mxu0  ;;  %v5081_v4 = vld [vmem:[%s7122_s22] ss:$0 sm:$0xff] }
0x141c   :  { %v7025_v40 = vadd.f32 %v4721_v37, %v6590_v2  ;;  %v4728_v21 = vsel %vm210_vm0, %v7022_v35, 0.0 }
0x141d   :  { %4729 = vadd.xlane.f32.xlu0 %v4728_v21 }
0x141e   :  { %v4731_v47 = vsel %vm210_vm0, %v7025_v40, 0.0 }
0x141f   :  { %4732 = vadd.xlane.f32.xlu1 %v4731_v47 }
0x14aa   :  { %v4730_v44 = vpop.xlane.xlu0 %4729 }
0x14ab   :  { %v4734_v50 = vmul.f32 0.03125, %v4730_v44 }
0x14ac   :  { %v4733_v51 = vpop.xlane.xlu1 %4732 }
0x14ad   :  { %v4736_v46 = vsub.f32 %v7022_v35, %v4734_v50  ;;  %v4735_v13 = vmul.f32 0.03125, %v4733_v51 }
0x14af   :  { %v4737_v52 = vsub.f32 %v7025_v40, %v4735_v13  ;;  %v4738_v31 = vmul.f32 %v4736_v46, %v4736_v46 }
0x14b1   :  { %v4740_v2 = vsel %vm210_vm0, %v4738_v31, 0.0  ;;  %v4739_v54 = vmul.f32 %v4737_v52, %v4737_v52 }
0x14b2   :  { %4741 = vadd.xlane.f32.xlu0 %v4740_v2 }
0x14b3   :  { %v4743_v41 = vsel %vm210_vm0, %v4739_v54, 0.0 }
0x14b6   :  { %4744 = vadd.xlane.f32.xlu0 %v4743_v41 }
0x153f   :  { %v4742_v32 = vpop.xlane.xlu0 %4741 }
0x1540   :  { %v4746_v24 = vmul.f32 0.03125, %v4742_v32 }
0x1542   :  { %v4748_v57 = vadd.f32 1e-05, %v4746_v24 }
0x1543   :  { %v4745_v58 = vpop.xlane.xlu0 %4744 }
0x1544   :  { %5588 = vrsqrt.f32 %v4748_v57  ;;  %v4747_v1 = vmul.f32 0.03125, %v4745_v58 }
0x1546   :  { %v4749_v6 = vadd.f32 1e-05, %v4747_v1 }
0x1548   :  { %5590 = vrsqrt.f32 %v4749_v6 }
0x154e   :  { %v5589_v45 = vpop.eup %5588 }
0x154f   :  { %v4752_v49 = vmul.f32 %v5589_v45, %v4736_v46 }
0x1551   :  { %v4760_v9 = vmul.f32 %v5075_v7, %v4752_v49 }
0x1552   :  { %v5591_v8 = vpop.eup %5590 }
0x1553   :  { %v4753_v59 = vmul.f32 %v5591_v8, %v4737_v52  ;;  %v4768_v63 = vadd.f32 %v5076_v60, %v4760_v9 }
0x1555   :  { %v4761_v20 = vmul.f32 %v5075_v7, %v4753_v59 }
0x1557   :  { %v4769_v53 = vadd.f32 %v5076_v60, %v4761_v20 }
0x1559   :  { %v4770_v22 = vpack.c.bf16 %v4769_v53, %v4768_v63 }
0x155b   :  { %5418 = vmatmul.mubr.msk.bf16.vlgmr.msra.gmra.mrb[80].mxu1 %vm210_vm0, %v4770_v22 }
0x162e   :  { %v4831_v36 = vpop.f32.mrb[80].mxu1 }
0x162f   :  { %v4832_v19 = vadd.f32 %v5077_v5, %v4831_v36  ;;  %v5419_v61 = vpop.f32.mrb[81].mxu1 }
0x1630   :  { %v4834_v25 = vpop.f32.mrb[82].mxu1 }
0x1631   :  { %v4840_v26 = vmul.f32 0.70710677, %v4832_v19  ;;  %v4835_v34 = vadd.f32 %v5077_v5, %v4834_v25  ;;  %v5420_v14 = vpop.f32.mrb[83].mxu1  ;;  %v4838_v29 = vmul.f32 0.5, %v4832_v19 }
0x1633   :  { %5592 = verf.f32 %v4840_v26  ;;  %v4841_v27 = vmul.f32 0.70710677, %v4835_v34  ;;  %v4839_v30 = vmul.f32 0.5, %v4835_v34 }
0x1635   :  { %5594 = verf.f32 %v4841_v27 }
0x163d   :  { %v5593_v15 = vpop.eup %5592 }
0x163e   :  { %v4844_v23 = vadd.f32 1.0, %v5593_v15 }
0x163f   :  { %v5595_v28 = vpop.eup %5594 }
0x1640   :  { %v4845_v33 = vadd.f32 1.0, %v5595_v28  ;;  %v4846_v42 = vmul.f32 %v4844_v23, %v4838_v29 }
0x1642   :  { %v4847_v18 = vmul.f32 %v4845_v33, %v4839_v30 }
0x1644   :  { %v4848_v3 = vpack.c.bf16 %v4847_v18, %v4846_v42 }
0x1646   :  { %5438 = vmatmul.mubr.bf16.vlgmr.msra.gmra.mrb[68].mxu0 %v4848_v3 }
0x1719   :  { %v4954_v39 = vpop.f32.mrb[68].mxu0 }
0x171a   :  { %v4955_v48 = vadd.f32 %v5081_v4, %v4954_v39  ;;  %v5439_v37 = vpop.f32.mrb[69].mxu0 }
0x171b   :  { %v4957_v38 = vpop.f32.mrb[70].mxu0 }
0x171c   :  { %v4961_v21 = vadd.f32 %v4955_v48, %v7022_v35  ;;  %v4958_v47 = vadd.f32 %v5081_v4, %v4957_v38  ;;  %v5440_v44 = vpop.f32.mrb[71].mxu0 }
0x171e   :  { %4963 = vst.msk [vmem:[#allocation20] sm:$0xff] %vm210_vm0, %v4961_v21  ;;  %v4962_v50 = vadd.f32 %v4958_v47, %v7025_v40 }
0x1720   :  { %4964 = vst.msk [vmem:[#allocation20 + $0x8] sm:$0xff] %vm210_vm0, %v4962_v50 }
0x1721   :  { %5851 = shalt.err (!%p5848_p8)
}
0x1722   :  { %s5852_s25 = scalar_lea.hbm %s7123_s23, 256 }
0x1723   :  { %p5853_p9 = scmp.ne.s32.totalorder %s7123_s23, %s5852_s25  ;;  %p5856_p10 = scmp.lt.u32.totalorder %s5852_s25, %s7123_s23 }
0x1725   :  { %p5858_p11 = pnand %p5856_p10, %p5853_p9 }
0x1727   :  { %5861 = shalt.err (!%p5858_p11)
}
0x1728   :  { %s5900_s16 = smov 128  }
0x1729   :  { %4976 = dma.vmem_to_hbm [thread:$0]  %s4971_s29, 256, %s7123_s23, [#allocation4], %s5900_s16, %s5900_s16, %s5897_s28  }
0x172a   :  { %5874 = dma.done.wait [#allocation4], 256  }
0x172b   :  { %5875 = vsyncadd [#allocation4], 4294967040 }
0x172c   :  { %4980 = vsyncpa [#allocation3], 1 }
0x172d   :  { %4981 = vsyncpa [#allocation6], 1 }
0x172e   :  { %4982 = vsyncpa [#allocation9], 1 }
0x172f   :  { %4983 = vsyncpa [#allocation12], 1 }
0x1730   :  { %4984 = vsyncpa [#allocation15], 1 }
0x1731   :  { %4985 = vsyncpa [#allocation18], 1 }
0x1732   :  { %4986 = vsyncpa [#allocation4], 1 }

</bundles_post_ra>
